<compile_context>
chip_gen: v6e
topology: v6e:2x2x1
jax: 0.10.0
libtpu: 0.0.40
codegen_flags: <defaults>
</compile_context>

<pallas_src>
import jax
import jax.numpy as jnp
import numpy as np
from jax.experimental import pallas as pl
from jax.experimental.pallas import tpu as pltpu

# ---- small, module-consistent shapes -------------------------------------
B, T, S = 2, 8, 8          # batch, trg seq, src seq
H, NH, PF = 32, 4, 64      # hid_dim, n_heads, pf_dim
HEAD = H // NH
NLAYERS = 2
EPS = 1e-12                # LayerNorm variance_epsilon
NEG = -1e10                # masked_fill value
BIG = 1e10
INV_SCALE = float(1.0 / np.sqrt(HEAD))


# ---- fused kernel ----------------------------------------------------------
def decoder_kernel(trg_ref, src_ref, keep_sa_ref, keep_ea_ref, poolw_ref,
                   ft_w_ref, ft_b_ref,
                   sa_wqkv_ref, sa_bqkv_ref, sa_wo_ref,
                   ea_wq_ref, ea_wkv_ref, ea_bkv_ref, ea_wo_ref,
                   pf_w1_ref, pf_b1_ref, pf_w2_ref,
                   vec_ref,
                   hw1_ref, hb1_ref, hw2_ref, hb2_ref,
                   hw3_ref, hb3_ref, hw4_ref, hb4_ref,
                   out_ref):
    f32 = jnp.float32

    def split_heads(mat, seq, col_off):
        # mat [B*seq, ncols] -> [NH*B, seq, HEAD], group index g = h*B + b
        return jnp.concatenate(
            [mat[:, col_off + h * HEAD: col_off + (h + 1) * HEAD]
             .reshape(B, seq, HEAD) for h in range(NH)], axis=0)

    def merge_heads(ctx):
        # ctx [NH*B, T, HEAD] (group order (h, b)) -> [B*T, H]
        return jnp.concatenate(
            [ctx[h * B:(h + 1) * B].reshape(B * T, HEAD) for h in range(NH)],
            axis=-1)

    def attention(qh, kh, vh, keep, wo, bo):
        # batched over all (head, batch) groups at once
        e = jnp.einsum('gqd,gkd->gqk', qh, kh,
                       preferred_element_type=f32) * INV_SCALE
        # exact masked_fill(mask==0, -1e10):  e*keep + (keep-1)*1e10
        e = e * keep + (keep - 1.0) * BIG
        e = e - jnp.max(e, axis=-1, keepdims=True)
        p = jnp.exp(e)
        p = p * pl.reciprocal(jnp.sum(p, axis=-1, keepdims=True), approx=True)
        ctx = jnp.einsum('gqk,gkd->gqd', p, vh, preferred_element_type=f32)
        return jnp.dot(merge_heads(ctx), wo, preferred_element_type=f32) + bo

    def layernorm(y, g, b):
        # matches PyTorch module: (x - mean) / (unbiased_std + eps)
        mean = jnp.mean(y, axis=-1, keepdims=True)
        d = y - mean
        std = jnp.sqrt(jnp.sum(d * d, axis=-1, keepdims=True) * (1.0 / (H - 1)))
        return g * (d * pl.reciprocal(std + EPS, approx=True)) + b

    keep_sa = keep_sa_ref[...]        # [NH*B, T, T]
    keep_ea = keep_ea_ref[...]        # [NH*B, T, S]
    src = src_ref[...]                # [B*S, H]

    # ft projection (dropout = identity everywhere)
    x = jnp.dot(trg_ref[...], ft_w_ref[...],
                preferred_element_type=f32) + ft_b_ref[...]   # [B*T, H]

    for l in range(NLAYERS):          # static loop over layers
        V = vec_ref[l]                # [10, H] packed small vectors
        sa_bo, ea_bq, ea_bo, pf_b2 = V[0:1], V[1:2], V[2:3], V[3:4]
        g1, b1 = V[4:5], V[5:6]
        g2, b2 = V[6:7], V[7:8]
        g3, b3 = V[8:9], V[9:10]

        # --- self attention: fused QKV matmul -----------------------------
        qkv = jnp.dot(x, sa_wqkv_ref[l],
                      preferred_element_type=f32) + sa_bqkv_ref[l]  # [B*T,3H]
        sa = attention(split_heads(qkv, T, 0),
                       split_heads(qkv, T, H),
                       split_heads(qkv, T, 2 * H),
                       keep_sa, sa_wo_ref[l], sa_bo)
        x = layernorm(x + sa, g1, b1)

        # --- cross attention: Q from trg, fused K/V from src --------------
        q = jnp.dot(x, ea_wq_ref[l], preferred_element_type=f32) + ea_bq
        kv = jnp.dot(src, ea_wkv_ref[l],
                     preferred_element_type=f32) + ea_bkv_ref[l]    # [B*S,2H]
        ea = attention(split_heads(q, T, 0),
                       split_heads(kv, S, 0),
                       split_heads(kv, S, H),
                       keep_ea, ea_wo_ref[l], ea_bo)
        x = layernorm(x + ea, g2, b2)

        # --- positionwise FFN (Conv1d k=1 == per-position linear) ---------
        h1 = jnp.maximum(jnp.dot(x, pf_w1_ref[l],
                                 preferred_element_type=f32) + pf_b1_ref[l], 0.0)
        ff = jnp.dot(h1, pf_w2_ref[l], preferred_element_type=f32) + pf_b2
        x = layernorm(x + ff, g3, b3)

    # --- masked mean pool expressed as one matmul + output MLP -------------
    pooled = jnp.dot(poolw_ref[...], x, preferred_element_type=f32)   # [B, H]
    h = jnp.maximum(jnp.dot(pooled, hw1_ref[...],
                            preferred_element_type=f32) + hb1_ref[...], 0.0)
    h = jnp.maximum(jnp.dot(h, hw2_ref[...],
                            preferred_element_type=f32) + hb2_ref[...], 0.0)
    h = jnp.maximum(jnp.dot(h, hw3_ref[...],
                            preferred_element_type=f32) + hb3_ref[...], 0.0)
    out_ref[...] = jnp.dot(h, hw4_ref[...],
                           preferred_element_type=f32) + hb4_ref[...]  # [B,1]


# ---- host-side packing / prep ----------------------------------------------
def pack_layer_params(layers):
    sa_wqkv, sa_bqkv, sa_wo = [], [], []
    ea_wq, ea_wkv, ea_bkv, ea_wo = [], [], [], []
    pf_w1, pf_b1, pf_w2, vec = [], [], [], []
    for lp in layers:
        (swq, sbq, swk, sbk, swv, sbv, swo, sbo,
         ewq, ebq, ewk, ebk, ewv, ebv, ewo, ebo,
         w1, fb1, w2, fb2, g1, lb1, g2, lb2, g3, lb3) = lp
        sa_wqkv.append(jnp.concatenate([swq, swk, swv], axis=1))   # [H, 3H]
        sa_bqkv.append(jnp.concatenate([sbq, sbk, sbv], axis=1))   # [1, 3H]
        sa_wo.append(swo)
        ea_wq.append(ewq)
        ea_wkv.append(jnp.concatenate([ewk, ewv], axis=1))         # [H, 2H]
        ea_bkv.append(jnp.concatenate([ebk, ebv], axis=1))         # [1, 2H]
        ea_wo.append(ewo)
        pf_w1.append(w1); pf_b1.append(fb1); pf_w2.append(w2)
        vec.append(jnp.concatenate(
            [sbo, ebq, ebo, fb2, g1, lb1, g2, lb2, g3, lb3], axis=0))  # [10, H]
    st = lambda xs: jnp.stack(xs, axis=0)
    return (st(sa_wqkv), st(sa_bqkv), st(sa_wo),
            st(ea_wq), st(ea_wkv), st(ea_bkv), st(ea_wo),
            st(pf_w1), st(pf_b1), st(pf_w2), st(vec))


def prep_inputs(trg, src, trg_mask4, cross_mask4):
    tmask2 = trg_mask4[:, 0, :, 0]    # [B, T]
    cmask2 = cross_mask4[:, 0, 0, :]  # [B, S]
    # keep masks expanded to the (head, batch) group layout used in-kernel
    keep_sa = jnp.tile(jnp.broadcast_to(tmask2[:, :, None], (B, T, T)),
                       (NH, 1, 1))                                  # [NH*B,T,T]
    keep_ea = jnp.tile(jnp.broadcast_to(cmask2[:, None, :], (B, T, S)),
                       (NH, 1, 1))                                  # [NH*B,T,S]
    # masked mean pool as a [B, B*T] matmul weight (block diagonal)
    wnorm = tmask2 / jnp.sum(tmask2, axis=1, keepdims=True)         # [B, T]
    poolw = (jnp.eye(B, dtype=jnp.float32)[:, :, None]
             * wnorm[:, None, :]).reshape(B, B * T)                 # [B, B*T]
    return (trg.reshape(B * T, H), src.reshape(B * S, H),
            keep_sa, keep_ea, poolw)


def _zero_map(nd):
    return lambda i: (0,) * nd


def pallas_decoder(trg, src, trg_mask4, cross_mask4, ft_w, ft_b, layers, head):
    trg_f, src_f, keep_sa, keep_ea, poolw = prep_inputs(
        trg, src, trg_mask4, cross_mask4)
    packed = pack_layer_params(layers)
    args = (trg_f, src_f, keep_sa, keep_ea, poolw, ft_w, ft_b) \
        + packed + tuple(head)
    in_specs = [pl.BlockSpec(a.shape, _zero_map(a.ndim)) for a in args]
    out = pl.pallas_call(
        decoder_kernel,
        out_shape=jax.ShapeDtypeStruct((B, 1), jnp.float32),
        grid=(1,),
        in_specs=in_specs,
        out_specs=pl.BlockSpec((B, 1), lambda i: (0, 0)),
        compiler_params=pltpu.CompilerParams(
            dimension_semantics=("arbitrary",)),
    )(*args)
    return out.reshape(B, 1, 1)       # matches label.unsqueeze(1) -> [B,1,1]


# ---- parameter init (deterministic, synthetic; weights are (in,out)) -------
def init_params(key):
    cnt = [0]

    def w(*shape, scale=0.05):
        cnt[0] += 1
        return (scale * jax.random.normal(jax.random.fold_in(key, cnt[0]),
                                          shape)).astype(jnp.float32)

    ft_w, ft_b = w(H, H), w(1, H)

    def attn_params():
        return (w(H, H), w(1, H), w(H, H), w(1, H),
                w(H, H), w(1, H), w(H, H), w(1, H))

    layers = []
    for _ in range(NLAYERS):
        lp = attn_params() + attn_params() + (
            w(H, PF), w(1, PF), w(PF, H), w(1, H),
            jnp.ones((1, H), jnp.float32), jnp.zeros((1, H), jnp.float32),
            jnp.ones((1, H), jnp.float32), jnp.zeros((1, H), jnp.float32),
            jnp.ones((1, H), jnp.float32), jnp.zeros((1, H), jnp.float32),
        )
        layers.append(lp)

    head = (w(H, 256), w(1, 256), w(256, 64), w(1, 64),
            w(64, 32), w(1, 32), w(32, 1), w(1, 1))
    return ft_w, ft_b, layers, head


# ---- pure-JAX reference (mirrors the PyTorch forward) -----------------------
def ref_layernorm(x, g, b):
    mean = x.mean(-1, keepdims=True)
    std = jnp.sqrt(((x - mean) ** 2).sum(-1, keepdims=True) / (x.shape[-1] - 1))
    return g * ((x - mean) / (std + EPS)) + b


def ref_mha(q_in, kv_in, wq, bq, wk, bk, wv, bv, wo, bo, mask):
    Bq, Tq, _ = q_in.shape
    Tk = kv_in.shape[1]
    Q = (q_in @ wq + bq).reshape(Bq, Tq, NH, HEAD).transpose(0, 2, 1, 3)
    K = (kv_in @ wk + bk).reshape(Bq, Tk, NH, HEAD).transpose(0, 2, 1, 3)
    V = (kv_in @ wv + bv).reshape(Bq, Tk, NH, HEAD).transpose(0, 2, 1, 3)
    e = (Q @ K.transpose(0, 1, 3, 2)) / np.float32(np.sqrt(HEAD))
    if mask is not None:
        e = jnp.where(mask == 0, NEG, e)
    a = jax.nn.softmax(e, axis=-1)
    x = (a @ V).transpose(0, 2, 1, 3).reshape(Bq, Tq, H)
    return x @ wo + bo


def ref_decoder(trg, src, trg_mask4, cross_mask4, ft_w, ft_b, layers, head):
    x = trg @ ft_w + ft_b
    for lp in layers:
        (sa_wq, sa_bq, sa_wk, sa_bk, sa_wv, sa_bv, sa_wo, sa_bo,
         ea_wq, ea_bq, ea_wk, ea_bk, ea_wv, ea_bv, ea_wo, ea_bo,
         pf_w1, pf_b1, pf_w2, pf_b2,
         g1, b1, g2, b2, g3, b3) = lp
        x = ref_layernorm(x + ref_mha(x, x, sa_wq, sa_bq, sa_wk, sa_bk,
                                      sa_wv, sa_bv, sa_wo, sa_bo, trg_mask4),
                          g1, b1)
        x = ref_layernorm(x + ref_mha(x, src, ea_wq, ea_bq, ea_wk, ea_bk,
                                      ea_wv, ea_bv, ea_wo, ea_bo, cross_mask4),
                          g2, b2)
        ff = jnp.maximum(x @ pf_w1 + pf_b1, 0.0) @ pf_w2 + pf_b2
        x = ref_layernorm(x + ff, g3, b3)
    m2 = trg_mask4[:, 0, :, 0]
    label = jnp.sum(x * m2[:, :, None], axis=1) / jnp.sum(m2, axis=1,
                                                          keepdims=True)
    label = label[:, None, :]
    w1, b1, w2, b2, w3, b3, w4, b4 = head
    label = jnp.maximum(label @ w1 + b1, 0.0)
    label = jnp.maximum(label @ w2 + b2, 0.0)
    label = jnp.maximum(label @ w3 + b3, 0.0)
    return label @ w4 + b4            # [B, 1, 1]


if __name__ == "__main__":
    key = jax.random.PRNGKey(0)
    k_trg, k_src, k_par = jax.random.split(key, 3)

    trg = jax.random.normal(k_trg, (B, T, H), dtype=jnp.float32)
    src = jax.random.normal(k_src, (B, S, H), dtype=jnp.float32)

    tmask2 = jnp.array([[1, 1, 1, 1, 1, 1, 1, 1],
                        [1, 1, 1, 1, 1, 0, 0, 0]], dtype=jnp.float32)
    cmask2 = jnp.array([[1, 1, 1, 1, 1, 1, 1, 1],
                        [1, 1, 1, 1, 1, 1, 0, 0]], dtype=jnp.float32)
    trg_mask4 = tmask2[:, None, :, None]     # [B, 1, T, 1]
    cross_mask4 = cmask2[:, None, None, :]   # [B, 1, 1, S]

    ft_w, ft_b, layers, head = init_params(k_par)

    out = pallas_decoder(trg, src, trg_mask4, cross_mask4,
                         ft_w, ft_b, layers, head)
    out = jax.block_until_ready(out)

    ref = ref_decoder(trg, src, trg_mask4, cross_mask4,
                      ft_w, ft_b, layers, head)
    assert out.shape == (B, 1, 1)
    assert jnp.allclose(out, ref, atol=3e-3, rtol=3e-3), (out, ref)

    # TODO(synk): dropout is treated as identity (inference/eval mode).
    print("KERNEL_OK")
</pallas_src>

<mosaic_0001>
module attributes {stable_mosaic.version = 11 : i64} {
  func.func @decoder_kernel(%arg0: i32, %arg1: memref<16x32xf32, #tpu.memory_space<vmem>>, %arg2: memref<16x32xf32, #tpu.memory_space<vmem>>, %arg3: memref<8x8x8xf32, #tpu.memory_space<vmem>>, %arg4: memref<8x8x8xf32, #tpu.memory_space<vmem>>, %arg5: memref<2x16xf32, #tpu.memory_space<vmem>>, %arg6: memref<32x32xf32, #tpu.memory_space<vmem>>, %arg7: memref<1x32xf32, #tpu.memory_space<vmem>>, %arg8: memref<2x32x96xf32, #tpu.memory_space<vmem>>, %arg9: memref<2x1x96xf32, #tpu.memory_space<vmem>>, %arg10: memref<2x32x32xf32, #tpu.memory_space<vmem>>, %arg11: memref<2x32x32xf32, #tpu.memory_space<vmem>>, %arg12: memref<2x32x64xf32, #tpu.memory_space<vmem>>, %arg13: memref<2x1x64xf32, #tpu.memory_space<vmem>>, %arg14: memref<2x32x32xf32, #tpu.memory_space<vmem>>, %arg15: memref<2x32x64xf32, #tpu.memory_space<vmem>>, %arg16: memref<2x1x64xf32, #tpu.memory_space<vmem>>, %arg17: memref<2x64x32xf32, #tpu.memory_space<vmem>>, %arg18: memref<2x10x32xf32, #tpu.memory_space<vmem>>, %arg19: memref<32x256xf32, #tpu.memory_space<vmem>>, %arg20: memref<1x256xf32, #tpu.memory_space<vmem>>, %arg21: memref<256x64xf32, #tpu.memory_space<vmem>>, %arg22: memref<1x64xf32, #tpu.memory_space<vmem>>, %arg23: memref<64x32xf32, #tpu.memory_space<vmem>>, %arg24: memref<1x32xf32, #tpu.memory_space<vmem>>, %arg25: memref<32x1xf32, #tpu.memory_space<vmem>>, %arg26: memref<1x1xf32, #tpu.memory_space<vmem>>, %arg27: memref<2x1xf32, #tpu.memory_space<vmem>>) attributes {dimension_semantics = [#tpu.dimension_semantics<arbitrary>], iteration_bounds = array<i64: 1>, scalar_prefetch = 0 : i64, scratch_operands = 0 : i64, tpu.core_type = #tpu.core_type<tc>, window_params = [{pipeline_mode = #tpu.pipeline_mode<synchronous>, transform_indices = @transform_0, window_bounds = array<i64: 16, 32>}, {pipeline_mode = #tpu.pipeline_mode<synchronous>, transform_indices = @transform_1, window_bounds = array<i64: 16, 32>}, {pipeline_mode = #tpu.pipeline_mode<synchronous>, transform_indices = @transform_2, window_bounds = array<i64: 8, 8, 8>}, {pipeline_mode = #tpu.pipeline_mode<synchronous>, transform_indices = @transform_3, window_bounds = array<i64: 8, 8, 8>}, {pipeline_mode = #tpu.pipeline_mode<synchronous>, transform_indices = @transform_4, window_bounds = array<i64: 2, 16>}, {pipeline_mode = #tpu.pipeline_mode<synchronous>, transform_indices = @transform_5, window_bounds = array<i64: 32, 32>}, {pipeline_mode = #tpu.pipeline_mode<synchronous>, transform_indices = @transform_6, window_bounds = array<i64: 1, 32>}, {pipeline_mode = #tpu.pipeline_mode<synchronous>, transform_indices = @transform_7, window_bounds = array<i64: 2, 32, 96>}, {pipeline_mode = #tpu.pipeline_mode<synchronous>, transform_indices = @transform_8, window_bounds = array<i64: 2, 1, 96>}, {pipeline_mode = #tpu.pipeline_mode<synchronous>, transform_indices = @transform_9, window_bounds = array<i64: 2, 32, 32>}, {pipeline_mode = #tpu.pipeline_mode<synchronous>, transform_indices = @transform_10, window_bounds = array<i64: 2, 32, 32>}, {pipeline_mode = #tpu.pipeline_mode<synchronous>, transform_indices = @transform_11, window_bounds = array<i64: 2, 32, 64>}, {pipeline_mode = #tpu.pipeline_mode<synchronous>, transform_indices = @transform_12, window_bounds = array<i64: 2, 1, 64>}, {pipeline_mode = #tpu.pipeline_mode<synchronous>, transform_indices = @transform_13, window_bounds = array<i64: 2, 32, 32>}, {pipeline_mode = #tpu.pipeline_mode<synchronous>, transform_indices = @transform_14, window_bounds = array<i64: 2, 32, 64>}, {pipeline_mode = #tpu.pipeline_mode<synchronous>, transform_indices = @transform_15, window_bounds = array<i64: 2, 1, 64>}, {pipeline_mode = #tpu.pipeline_mode<synchronous>, transform_indices = @transform_16, window_bounds = array<i64: 2, 64, 32>}, {pipeline_mode = #tpu.pipeline_mode<synchronous>, transform_indices = @transform_17, window_bounds = array<i64: 2, 10, 32>}, {pipeline_mode = #tpu.pipeline_mode<synchronous>, transform_indices = @transform_18, window_bounds = array<i64: 32, 256>}, {pipeline_mode = #tpu.pipeline_mode<synchronous>, transform_indices = @transform_19, window_bounds = array<i64: 1, 256>}, {pipeline_mode = #tpu.pipeline_mode<synchronous>, transform_indices = @transform_20, window_bounds = array<i64: 256, 64>}, {pipeline_mode = #tpu.pipeline_mode<synchronous>, transform_indices = @transform_21, window_bounds = array<i64: 1, 64>}, {pipeline_mode = #tpu.pipeline_mode<synchronous>, transform_indices = @transform_22, window_bounds = array<i64: 64, 32>}, {pipeline_mode = #tpu.pipeline_mode<synchronous>, transform_indices = @transform_23, window_bounds = array<i64: 1, 32>}, {pipeline_mode = #tpu.pipeline_mode<synchronous>, transform_indices = @transform_24, window_bounds = array<i64: 32, 1>}, {pipeline_mode = #tpu.pipeline_mode<synchronous>, transform_indices = @transform_25, window_bounds = array<i64: 1, 1>}, {pipeline_mode = #tpu.pipeline_mode<synchronous>, transform_indices = @transform_26, window_bounds = array<i64: 2, 1>}]} {
    %c0 = arith.constant 0 : index
    %c0_0 = arith.constant 0 : index
    %c0_1 = arith.constant 0 : index
    %0 = vector.load %arg3[%c0, %c0_0, %c0_1] : memref<8x8x8xf32, #tpu.memory_space<vmem>>, vector<8x8x8xf32>
    %c0_2 = arith.constant 0 : index
    %c0_3 = arith.constant 0 : index
    %c0_4 = arith.constant 0 : index
    %1 = vector.load %arg4[%c0_2, %c0_3, %c0_4] : memref<8x8x8xf32, #tpu.memory_space<vmem>>, vector<8x8x8xf32>
    %c0_5 = arith.constant 0 : index
    %c0_6 = arith.constant 0 : index
    %2 = vector.load %arg2[%c0_5, %c0_6] : memref<16x32xf32, #tpu.memory_space<vmem>>, vector<16x32xf32>
    %c0_7 = arith.constant 0 : index
    %c0_8 = arith.constant 0 : index
    %3 = vector.load %arg1[%c0_7, %c0_8] : memref<16x32xf32, #tpu.memory_space<vmem>>, vector<16x32xf32>
    %c0_9 = arith.constant 0 : index
    %c0_10 = arith.constant 0 : index
    %4 = vector.load %arg6[%c0_9, %c0_10] : memref<32x32xf32, #tpu.memory_space<vmem>>, vector<32x32xf32>
    %cst = arith.constant dense<0.000000e+00> : vector<16x32xf32>
    %5 = tpu.matmul %3, %4, %cst {dimension_numbers = #tpu.dot_dimension_numbers<[1], [0], [0], [1], [0, 0, 1, 1], [], []>} : vector<16x32xf32>, vector<32x32xf32>, vector<16x32xf32> -> vector<16x32xf32>
    %c0_11 = arith.constant 0 : index
    %c0_12 = arith.constant 0 : index
    %6 = vector.load %arg7[%c0_11, %c0_12] : memref<1x32xf32, #tpu.memory_space<vmem>>, vector<1x32xf32>
    %7 = vector.broadcast %6 : vector<1x32xf32> to vector<16x32xf32>
    %8 = arith.addf %5, %7 : vector<16x32xf32>
    %c0_13 = arith.constant 0 : index
    %c0_14 = arith.constant 0 : index
    %c0_15 = arith.constant 0 : index
    %9 = vector.load %arg18[%c0_13, %c0_14, %c0_15] : memref<2x10x32xf32, #tpu.memory_space<vmem>>, vector<1x10x32xf32>
    %10 = vector.shape_cast %9 : vector<1x10x32xf32> to vector<10x32xf32>
    %11 = vector.extract_strided_slice %10 {offsets = [0, 0], sizes = [1, 32], strides = [1, 1]} : vector<10x32xf32> to vector<1x32xf32>
    %12 = vector.extract_strided_slice %10 {offsets = [1, 0], sizes = [1, 32], strides = [1, 1]} : vector<10x32xf32> to vector<1x32xf32>
    %13 = vector.extract_strided_slice %10 {offsets = [2, 0], sizes = [1, 32], strides = [1, 1]} : vector<10x32xf32> to vector<1x32xf32>
    %14 = vector.extract_strided_slice %10 {offsets = [3, 0], sizes = [1, 32], strides = [1, 1]} : vector<10x32xf32> to vector<1x32xf32>
    %15 = vector.extract_strided_slice %10 {offsets = [4, 0], sizes = [1, 32], strides = [1, 1]} : vector<10x32xf32> to vector<1x32xf32>
    %16 = vector.extract_strided_slice %10 {offsets = [5, 0], sizes = [1, 32], strides = [1, 1]} : vector<10x32xf32> to vector<1x32xf32>
    %17 = vector.extract_strided_slice %10 {offsets = [6, 0], sizes = [1, 32], strides = [1, 1]} : vector<10x32xf32> to vector<1x32xf32>
    %18 = vector.extract_strided_slice %10 {offsets = [7, 0], sizes = [1, 32], strides = [1, 1]} : vector<10x32xf32> to vector<1x32xf32>
    %19 = vector.extract_strided_slice %10 {offsets = [8, 0], sizes = [1, 32], strides = [1, 1]} : vector<10x32xf32> to vector<1x32xf32>
    %20 = vector.extract_strided_slice %10 {offsets = [9, 0], sizes = [1, 32], strides = [1, 1]} : vector<10x32xf32> to vector<1x32xf32>
    %c0_16 = arith.constant 0 : index
    %c0_17 = arith.constant 0 : index
    %c0_18 = arith.constant 0 : index
    %21 = vector.load %arg8[%c0_16, %c0_17, %c0_18] : memref<2x32x96xf32, #tpu.memory_space<vmem>>, vector<1x32x96xf32>
    %22 = vector.shape_cast %21 : vector<1x32x96xf32> to vector<32x96xf32>
    %cst_19 = arith.constant dense<0.000000e+00> : vector<16x96xf32>
    %23 = tpu.matmul %8, %22, %cst_19 {dimension_numbers = #tpu.dot_dimension_numbers<[1], [0], [0], [1], [0, 0, 1, 1], [], []>} : vector<16x32xf32>, vector<32x96xf32>, vector<16x96xf32> -> vector<16x96xf32>
    %c0_20 = arith.constant 0 : index
    %c0_21 = arith.constant 0 : index
    %c0_22 = arith.constant 0 : index
    %24 = vector.load %arg9[%c0_20, %c0_21, %c0_22] : memref<2x1x96xf32, #tpu.memory_space<vmem>>, vector<1x1x96xf32>
    %25 = vector.shape_cast %24 : vector<1x1x96xf32> to vector<1x96xf32>
    %26 = vector.broadcast %25 : vector<1x96xf32> to vector<16x96xf32>
    %27 = arith.addf %23, %26 : vector<16x96xf32>
    %28 = vector.extract_strided_slice %27 {offsets = [0, 0], sizes = [16, 8], strides = [1, 1]} : vector<16x96xf32> to vector<16x8xf32>
    %29 = vector.shape_cast %28 : vector<16x8xf32> to vector<2x8x8xf32>
    %30 = vector.extract_strided_slice %27 {offsets = [0, 8], sizes = [16, 8], strides = [1, 1]} : vector<16x96xf32> to vector<16x8xf32>
    %31 = vector.shape_cast %30 : vector<16x8xf32> to vector<2x8x8xf32>
    %32 = vector.extract_strided_slice %27 {offsets = [0, 16], sizes = [16, 8], strides = [1, 1]} : vector<16x96xf32> to vector<16x8xf32>
    %33 = vector.shape_cast %32 : vector<16x8xf32> to vector<2x8x8xf32>
    %34 = vector.extract_strided_slice %27 {offsets = [0, 24], sizes = [16, 8], strides = [1, 1]} : vector<16x96xf32> to vector<16x8xf32>
    %35 = vector.shape_cast %34 : vector<16x8xf32> to vector<2x8x8xf32>
    %36 = tpu.concatenate %29, %31, %33, %35 in 0 : vector<2x8x8xf32>, vector<2x8x8xf32>, vector<2x8x8xf32>, vector<2x8x8xf32> -> vector<8x8x8xf32>
    %37 = vector.extract_strided_slice %27 {offsets = [0, 32], sizes = [16, 8], strides = [1, 1]} : vector<16x96xf32> to vector<16x8xf32>
    %38 = vector.shape_cast %37 : vector<16x8xf32> to vector<2x8x8xf32>
    %39 = vector.extract_strided_slice %27 {offsets = [0, 40], sizes = [16, 8], strides = [1, 1]} : vector<16x96xf32> to vector<16x8xf32>
    %40 = vector.shape_cast %39 : vector<16x8xf32> to vector<2x8x8xf32>
    %41 = vector.extract_strided_slice %27 {offsets = [0, 48], sizes = [16, 8], strides = [1, 1]} : vector<16x96xf32> to vector<16x8xf32>
    %42 = vector.shape_cast %41 : vector<16x8xf32> to vector<2x8x8xf32>
    %43 = vector.extract_strided_slice %27 {offsets = [0, 56], sizes = [16, 8], strides = [1, 1]} : vector<16x96xf32> to vector<16x8xf32>
    %44 = vector.shape_cast %43 : vector<16x8xf32> to vector<2x8x8xf32>
    %45 = tpu.concatenate %38, %40, %42, %44 in 0 : vector<2x8x8xf32>, vector<2x8x8xf32>, vector<2x8x8xf32>, vector<2x8x8xf32> -> vector<8x8x8xf32>
    %46 = vector.extract_strided_slice %27 {offsets = [0, 64], sizes = [16, 8], strides = [1, 1]} : vector<16x96xf32> to vector<16x8xf32>
    %47 = vector.shape_cast %46 : vector<16x8xf32> to vector<2x8x8xf32>
    %48 = vector.extract_strided_slice %27 {offsets = [0, 72], sizes = [16, 8], strides = [1, 1]} : vector<16x96xf32> to vector<16x8xf32>
    %49 = vector.shape_cast %48 : vector<16x8xf32> to vector<2x8x8xf32>
    %50 = vector.extract_strided_slice %27 {offsets = [0, 80], sizes = [16, 8], strides = [1, 1]} : vector<16x96xf32> to vector<16x8xf32>
    %51 = vector.shape_cast %50 : vector<16x8xf32> to vector<2x8x8xf32>
    %52 = vector.extract_strided_slice %27 {offsets = [0, 88], sizes = [16, 8], strides = [1, 1]} : vector<16x96xf32> to vector<16x8xf32>
    %53 = vector.shape_cast %52 : vector<16x8xf32> to vector<2x8x8xf32>
    %54 = tpu.concatenate %47, %49, %51, %53 in 0 : vector<2x8x8xf32>, vector<2x8x8xf32>, vector<2x8x8xf32>, vector<2x8x8xf32> -> vector<8x8x8xf32>
    %c0_23 = arith.constant 0 : index
    %c0_24 = arith.constant 0 : index
    %c0_25 = arith.constant 0 : index
    %55 = vector.load %arg10[%c0_23, %c0_24, %c0_25] : memref<2x32x32xf32, #tpu.memory_space<vmem>>, vector<1x32x32xf32>
    %56 = vector.shape_cast %55 : vector<1x32x32xf32> to vector<32x32xf32>
    "tpu.trace_start"() <{level = 10 : i32, message = "gqd,gkd->gqk"}> : () -> ()
    %cst_26 = arith.constant dense<0.000000e+00> : vector<8x8x8xf32>
    %57 = tpu.matmul %36, %45, %cst_26 {dimension_numbers = #tpu.dot_dimension_numbers<[2], [2], [1], [1], [0, 0, 0, 1, 1, 1], [0], [0]>} : vector<8x8x8xf32>, vector<8x8x8xf32>, vector<8x8x8xf32> -> vector<8x8x8xf32>
    "tpu.trace_stop"() : () -> ()
    %cst_27 = arith.constant 0.353553385 : f32
    %58 = vector.broadcast %cst_27 : f32 to vector<8x8x8xf32>
    %59 = arith.mulf %57, %58 : vector<8x8x8xf32>
    %60 = arith.mulf %59, %0 : vector<8x8x8xf32>
    %cst_28 = arith.constant 1.000000e+00 : f32
    %61 = vector.broadcast %cst_28 : f32 to vector<8x8x8xf32>
    %62 = arith.subf %0, %61 : vector<8x8x8xf32>
    %cst_29 = arith.constant 1.000000e+10 : f32
    %63 = vector.broadcast %cst_29 : f32 to vector<8x8x8xf32>
    %64 = arith.mulf %62, %63 : vector<8x8x8xf32>
    %65 = arith.addf %60, %64 : vector<8x8x8xf32>
    %cst_30 = arith.constant dense<0xFF800000> : vector<8x8xf32>
    %66 = vector.multi_reduction <maximumf>, %65, %cst_30 [2] : vector<8x8x8xf32> to vector<8x8xf32>
    %67 = vector.shape_cast %66 : vector<8x8xf32> to vector<8x8x1xf32>
    %68 = vector.broadcast %67 : vector<8x8x1xf32> to vector<8x8x8xf32>
    %69 = arith.subf %65, %68 : vector<8x8x8xf32>
    %70 = math.exp %69 : vector<8x8x8xf32>
    %cst_31 = arith.constant dense<0.000000e+00> : vector<8x8xf32>
    %71 = vector.multi_reduction <add>, %70, %cst_31 [2] : vector<8x8x8xf32> to vector<8x8xf32>
    %72 = vector.shape_cast %71 : vector<8x8xf32> to vector<8x8x1xf32>
    %73 = tpu.reciprocal %72 {approx = true} : vector<8x8x1xf32> -> vector<8x8x1xf32>
    %74 = vector.broadcast %73 : vector<8x8x1xf32> to vector<8x8x8xf32>
    %75 = arith.mulf %70, %74 : vector<8x8x8xf32>
    "tpu.trace_start"() <{level = 10 : i32, message = "gqk,gkd->gqd"}> : () -> ()
    %cst_32 = arith.constant dense<0.000000e+00> : vector<8x8x8xf32>
    %76 = tpu.matmul %75, %54, %cst_32 {dimension_numbers = #tpu.dot_dimension_numbers<[2], [1], [1], [2], [0, 0, 0, 1, 1, 2], [0], [0]>} : vector<8x8x8xf32>, vector<8x8x8xf32>, vector<8x8x8xf32> -> vector<8x8x8xf32>
    "tpu.trace_stop"() : () -> ()
    %77 = vector.extract_strided_slice %76 {offsets = [0, 0, 0], sizes = [2, 8, 8], strides = [1, 1, 1]} : vector<8x8x8xf32> to vector<2x8x8xf32>
    %78 = vector.shape_cast %77 : vector<2x8x8xf32> to vector<16x8xf32>
    %79 = vector.extract_strided_slice %76 {offsets = [2, 0, 0], sizes = [2, 8, 8], strides = [1, 1, 1]} : vector<8x8x8xf32> to vector<2x8x8xf32>
    %80 = vector.shape_cast %79 : vector<2x8x8xf32> to vector<16x8xf32>
    %81 = vector.extract_strided_slice %76 {offsets = [4, 0, 0], sizes = [2, 8, 8], strides = [1, 1, 1]} : vector<8x8x8xf32> to vector<2x8x8xf32>
    %82 = vector.shape_cast %81 : vector<2x8x8xf32> to vector<16x8xf32>
    %83 = vector.extract_strided_slice %76 {offsets = [6, 0, 0], sizes = [2, 8, 8], strides = [1, 1, 1]} : vector<8x8x8xf32> to vector<2x8x8xf32>
    %84 = vector.shape_cast %83 : vector<2x8x8xf32> to vector<16x8xf32>
    %85 = tpu.concatenate %78, %80, %82, %84 in 1 : vector<16x8xf32>, vector<16x8xf32>, vector<16x8xf32>, vector<16x8xf32> -> vector<16x32xf32>
    %cst_33 = arith.constant dense<0.000000e+00> : vector<16x32xf32>
    %86 = tpu.matmul %85, %56, %cst_33 {dimension_numbers = #tpu.dot_dimension_numbers<[1], [0], [0], [1], [0, 0, 1, 1], [], []>} : vector<16x32xf32>, vector<32x32xf32>, vector<16x32xf32> -> vector<16x32xf32>
    %87 = vector.broadcast %11 : vector<1x32xf32> to vector<16x32xf32>
    %88 = arith.addf %86, %87 : vector<16x32xf32>
    %89 = arith.addf %8, %88 : vector<16x32xf32>
    %cst_34 = arith.constant dense<0.000000e+00> : vector<16xf32>
    %90 = vector.multi_reduction <add>, %89, %cst_34 [1] : vector<16x32xf32> to vector<16xf32>
    %91 = vector.shape_cast %90 : vector<16xf32> to vector<16x1xf32>
    %cst_35 = arith.constant 3.200000e+01 : f32
    %92 = vector.broadcast %cst_35 : f32 to vector<16x1xf32>
    %93 = arith.divf %91, %92 : vector<16x1xf32>
    %94 = vector.broadcast %93 : vector<16x1xf32> to vector<16x32xf32>
    %95 = arith.subf %89, %94 : vector<16x32xf32>
    %96 = arith.mulf %95, %95 : vector<16x32xf32>
    %cst_36 = arith.constant dense<0.000000e+00> : vector<16xf32>
    %97 = vector.multi_reduction <add>, %96, %cst_36 [1] : vector<16x32xf32> to vector<16xf32>
    %98 = vector.shape_cast %97 : vector<16xf32> to vector<16x1xf32>
    %cst_37 = arith.constant 0.0322580636 : f32
    %99 = vector.broadcast %cst_37 : f32 to vector<16x1xf32>
    %100 = arith.mulf %98, %99 : vector<16x1xf32>
    %101 = math.sqrt %100 : vector<16x1xf32>
    %cst_38 = arith.constant 9.99999996E-13 : f32
    %102 = vector.broadcast %cst_38 : f32 to vector<16x1xf32>
    %103 = arith.addf %101, %102 : vector<16x1xf32>
    %104 = tpu.reciprocal %103 {approx = true} : vector<16x1xf32> -> vector<16x1xf32>
    %105 = vector.broadcast %104 : vector<16x1xf32> to vector<16x32xf32>
    %106 = arith.mulf %95, %105 : vector<16x32xf32>
    %107 = vector.broadcast %15 : vector<1x32xf32> to vector<16x32xf32>
    %108 = arith.mulf %107, %106 : vector<16x32xf32>
    %109 = vector.broadcast %16 : vector<1x32xf32> to vector<16x32xf32>
    %110 = arith.addf %108, %109 : vector<16x32xf32>
    %c0_39 = arith.constant 0 : index
    %c0_40 = arith.constant 0 : index
    %c0_41 = arith.constant 0 : index
    %111 = vector.load %arg11[%c0_39, %c0_40, %c0_41] : memref<2x32x32xf32, #tpu.memory_space<vmem>>, vector<1x32x32xf32>
    %112 = vector.shape_cast %111 : vector<1x32x32xf32> to vector<32x32xf32>
    %cst_42 = arith.constant dense<0.000000e+00> : vector<16x32xf32>
    %113 = tpu.matmul %110, %112, %cst_42 {dimension_numbers = #tpu.dot_dimension_numbers<[1], [0], [0], [1], [0, 0, 1, 1], [], []>} : vector<16x32xf32>, vector<32x32xf32>, vector<16x32xf32> -> vector<16x32xf32>
    %114 = vector.broadcast %12 : vector<1x32xf32> to vector<16x32xf32>
    %115 = arith.addf %113, %114 : vector<16x32xf32>
    %c0_43 = arith.constant 0 : index
    %c0_44 = arith.constant 0 : index
    %c0_45 = arith.constant 0 : index
    %116 = vector.load %arg12[%c0_43, %c0_44, %c0_45] : memref<2x32x64xf32, #tpu.memory_space<vmem>>, vector<1x32x64xf32>
    %117 = vector.shape_cast %116 : vector<1x32x64xf32> to vector<32x64xf32>
    %cst_46 = arith.constant dense<0.000000e+00> : vector<16x64xf32>
    %118 = tpu.matmul %2, %117, %cst_46 {dimension_numbers = #tpu.dot_dimension_numbers<[1], [0], [0], [1], [0, 0, 1, 1], [], []>} : vector<16x32xf32>, vector<32x64xf32>, vector<16x64xf32> -> vector<16x64xf32>
    %c0_47 = arith.constant 0 : index
    %c0_48 = arith.constant 0 : index
    %c0_49 = arith.constant 0 : index
    %119 = vector.load %arg13[%c0_47, %c0_48, %c0_49] : memref<2x1x64xf32, #tpu.memory_space<vmem>>, vector<1x1x64xf32>
    %120 = vector.shape_cast %119 : vector<1x1x64xf32> to vector<1x64xf32>
    %121 = vector.broadcast %120 : vector<1x64xf32> to vector<16x64xf32>
    %122 = arith.addf %118, %121 : vector<16x64xf32>
    %123 = vector.extract_strided_slice %115 {offsets = [0, 0], sizes = [16, 8], strides = [1, 1]} : vector<16x32xf32> to vector<16x8xf32>
    %124 = vector.shape_cast %123 : vector<16x8xf32> to vector<2x8x8xf32>
    %125 = vector.extract_strided_slice %115 {offsets = [0, 8], sizes = [16, 8], strides = [1, 1]} : vector<16x32xf32> to vector<16x8xf32>
    %126 = vector.shape_cast %125 : vector<16x8xf32> to vector<2x8x8xf32>
    %127 = vector.extract_strided_slice %115 {offsets = [0, 16], sizes = [16, 8], strides = [1, 1]} : vector<16x32xf32> to vector<16x8xf32>
    %128 = vector.shape_cast %127 : vector<16x8xf32> to vector<2x8x8xf32>
    %129 = vector.extract_strided_slice %115 {offsets = [0, 24], sizes = [16, 8], strides = [1, 1]} : vector<16x32xf32> to vector<16x8xf32>
    %130 = vector.shape_cast %129 : vector<16x8xf32> to vector<2x8x8xf32>
    %131 = tpu.concatenate %124, %126, %128, %130 in 0 : vector<2x8x8xf32>, vector<2x8x8xf32>, vector<2x8x8xf32>, vector<2x8x8xf32> -> vector<8x8x8xf32>
    %132 = vector.extract_strided_slice %122 {offsets = [0, 0], sizes = [16, 8], strides = [1, 1]} : vector<16x64xf32> to vector<16x8xf32>
    %133 = vector.shape_cast %132 : vector<16x8xf32> to vector<2x8x8xf32>
    %134 = vector.extract_strided_slice %122 {offsets = [0, 8], sizes = [16, 8], strides = [1, 1]} : vector<16x64xf32> to vector<16x8xf32>
    %135 = vector.shape_cast %134 : vector<16x8xf32> to vector<2x8x8xf32>
    %136 = vector.extract_strided_slice %122 {offsets = [0, 16], sizes = [16, 8], strides = [1, 1]} : vector<16x64xf32> to vector<16x8xf32>
    %137 = vector.shape_cast %136 : vector<16x8xf32> to vector<2x8x8xf32>
    %138 = vector.extract_strided_slice %122 {offsets = [0, 24], sizes = [16, 8], strides = [1, 1]} : vector<16x64xf32> to vector<16x8xf32>
    %139 = vector.shape_cast %138 : vector<16x8xf32> to vector<2x8x8xf32>
    %140 = tpu.concatenate %133, %135, %137, %139 in 0 : vector<2x8x8xf32>, vector<2x8x8xf32>, vector<2x8x8xf32>, vector<2x8x8xf32> -> vector<8x8x8xf32>
    %141 = vector.extract_strided_slice %122 {offsets = [0, 32], sizes = [16, 8], strides = [1, 1]} : vector<16x64xf32> to vector<16x8xf32>
    %142 = vector.shape_cast %141 : vector<16x8xf32> to vector<2x8x8xf32>
    %143 = vector.extract_strided_slice %122 {offsets = [0, 40], sizes = [16, 8], strides = [1, 1]} : vector<16x64xf32> to vector<16x8xf32>
    %144 = vector.shape_cast %143 : vector<16x8xf32> to vector<2x8x8xf32>
    %145 = vector.extract_strided_slice %122 {offsets = [0, 48], sizes = [16, 8], strides = [1, 1]} : vector<16x64xf32> to vector<16x8xf32>
    %146 = vector.shape_cast %145 : vector<16x8xf32> to vector<2x8x8xf32>
    %147 = vector.extract_strided_slice %122 {offsets = [0, 56], sizes = [16, 8], strides = [1, 1]} : vector<16x64xf32> to vector<16x8xf32>
    %148 = vector.shape_cast %147 : vector<16x8xf32> to vector<2x8x8xf32>
    %149 = tpu.concatenate %142, %144, %146, %148 in 0 : vector<2x8x8xf32>, vector<2x8x8xf32>, vector<2x8x8xf32>, vector<2x8x8xf32> -> vector<8x8x8xf32>
    %c0_50 = arith.constant 0 : index
    %c0_51 = arith.constant 0 : index
    %c0_52 = arith.constant 0 : index
    %150 = vector.load %arg14[%c0_50, %c0_51, %c0_52] : memref<2x32x32xf32, #tpu.memory_space<vmem>>, vector<1x32x32xf32>
    %151 = vector.shape_cast %150 : vector<1x32x32xf32> to vector<32x32xf32>
    "tpu.trace_start"() <{level = 10 : i32, message = "gqd,gkd->gqk"}> : () -> ()
    %cst_53 = arith.constant dense<0.000000e+00> : vector<8x8x8xf32>
    %152 = tpu.matmul %131, %140, %cst_53 {dimension_numbers = #tpu.dot_dimension_numbers<[2], [2], [1], [1], [0, 0, 0, 1, 1, 1], [0], [0]>} : vector<8x8x8xf32>, vector<8x8x8xf32>, vector<8x8x8xf32> -> vector<8x8x8xf32>
    "tpu.trace_stop"() : () -> ()
    %cst_54 = arith.constant 0.353553385 : f32
    %153 = vector.broadcast %cst_54 : f32 to vector<8x8x8xf32>
    %154 = arith.mulf %152, %153 : vector<8x8x8xf32>
    %155 = arith.mulf %154, %1 : vector<8x8x8xf32>
    %cst_55 = arith.constant 1.000000e+00 : f32
    %156 = vector.broadcast %cst_55 : f32 to vector<8x8x8xf32>
    %157 = arith.subf %1, %156 : vector<8x8x8xf32>
    %cst_56 = arith.constant 1.000000e+10 : f32
    %158 = vector.broadcast %cst_56 : f32 to vector<8x8x8xf32>
    %159 = arith.mulf %157, %158 : vector<8x8x8xf32>
    %160 = arith.addf %155, %159 : vector<8x8x8xf32>
    %cst_57 = arith.constant dense<0xFF800000> : vector<8x8xf32>
    %161 = vector.multi_reduction <maximumf>, %160, %cst_57 [2] : vector<8x8x8xf32> to vector<8x8xf32>
    %162 = vector.shape_cast %161 : vector<8x8xf32> to vector<8x8x1xf32>
    %163 = vector.broadcast %162 : vector<8x8x1xf32> to vector<8x8x8xf32>
    %164 = arith.subf %160, %163 : vector<8x8x8xf32>
    %165 = math.exp %164 : vector<8x8x8xf32>
    %cst_58 = arith.constant dense<0.000000e+00> : vector<8x8xf32>
    %166 = vector.multi_reduction <add>, %165, %cst_58 [2] : vector<8x8x8xf32> to vector<8x8xf32>
    %167 = vector.shape_cast %166 : vector<8x8xf32> to vector<8x8x1xf32>
    %168 = tpu.reciprocal %167 {approx = true} : vector<8x8x1xf32> -> vector<8x8x1xf32>
    %169 = vector.broadcast %168 : vector<8x8x1xf32> to vector<8x8x8xf32>
    %170 = arith.mulf %165, %169 : vector<8x8x8xf32>
    "tpu.trace_start"() <{level = 10 : i32, message = "gqk,gkd->gqd"}> : () -> ()
    %cst_59 = arith.constant dense<0.000000e+00> : vector<8x8x8xf32>
    %171 = tpu.matmul %170, %149, %cst_59 {dimension_numbers = #tpu.dot_dimension_numbers<[2], [1], [1], [2], [0, 0, 0, 1, 1, 2], [0], [0]>} : vector<8x8x8xf32>, vector<8x8x8xf32>, vector<8x8x8xf32> -> vector<8x8x8xf32>
    "tpu.trace_stop"() : () -> ()
    %172 = vector.extract_strided_slice %171 {offsets = [0, 0, 0], sizes = [2, 8, 8], strides = [1, 1, 1]} : vector<8x8x8xf32> to vector<2x8x8xf32>
    %173 = vector.shape_cast %172 : vector<2x8x8xf32> to vector<16x8xf32>
    %174 = vector.extract_strided_slice %171 {offsets = [2, 0, 0], sizes = [2, 8, 8], strides = [1, 1, 1]} : vector<8x8x8xf32> to vector<2x8x8xf32>
    %175 = vector.shape_cast %174 : vector<2x8x8xf32> to vector<16x8xf32>
    %176 = vector.extract_strided_slice %171 {offsets = [4, 0, 0], sizes = [2, 8, 8], strides = [1, 1, 1]} : vector<8x8x8xf32> to vector<2x8x8xf32>
    %177 = vector.shape_cast %176 : vector<2x8x8xf32> to vector<16x8xf32>
    %178 = vector.extract_strided_slice %171 {offsets = [6, 0, 0], sizes = [2, 8, 8], strides = [1, 1, 1]} : vector<8x8x8xf32> to vector<2x8x8xf32>
    %179 = vector.shape_cast %178 : vector<2x8x8xf32> to vector<16x8xf32>
    %180 = tpu.concatenate %173, %175, %177, %179 in 1 : vector<16x8xf32>, vector<16x8xf32>, vector<16x8xf32>, vector<16x8xf32> -> vector<16x32xf32>
    %cst_60 = arith.constant dense<0.000000e+00> : vector<16x32xf32>
    %181 = tpu.matmul %180, %151, %cst_60 {dimension_numbers = #tpu.dot_dimension_numbers<[1], [0], [0], [1], [0, 0, 1, 1], [], []>} : vector<16x32xf32>, vector<32x32xf32>, vector<16x32xf32> -> vector<16x32xf32>
    %182 = vector.broadcast %13 : vector<1x32xf32> to vector<16x32xf32>
    %183 = arith.addf %181, %182 : vector<16x32xf32>
    %184 = arith.addf %110, %183 : vector<16x32xf32>
    %cst_61 = arith.constant dense<0.000000e+00> : vector<16xf32>
    %185 = vector.multi_reduction <add>, %184, %cst_61 [1] : vector<16x32xf32> to vector<16xf32>
    %186 = vector.shape_cast %185 : vector<16xf32> to vector<16x1xf32>
    %cst_62 = arith.constant 3.200000e+01 : f32
    %187 = vector.broadcast %cst_62 : f32 to vector<16x1xf32>
    %188 = arith.divf %186, %187 : vector<16x1xf32>
    %189 = vector.broadcast %188 : vector<16x1xf32> to vector<16x32xf32>
    %190 = arith.subf %184, %189 : vector<16x32xf32>
    %191 = arith.mulf %190, %190 : vector<16x32xf32>
    %cst_63 = arith.constant dense<0.000000e+00> : vector<16xf32>
    %192 = vector.multi_reduction <add>, %191, %cst_63 [1] : vector<16x32xf32> to vector<16xf32>
    %193 = vector.shape_cast %192 : vector<16xf32> to vector<16x1xf32>
    %cst_64 = arith.constant 0.0322580636 : f32
    %194 = vector.broadcast %cst_64 : f32 to vector<16x1xf32>
    %195 = arith.mulf %193, %194 : vector<16x1xf32>
    %196 = math.sqrt %195 : vector<16x1xf32>
    %cst_65 = arith.constant 9.99999996E-13 : f32
    %197 = vector.broadcast %cst_65 : f32 to vector<16x1xf32>
    %198 = arith.addf %196, %197 : vector<16x1xf32>
    %199 = tpu.reciprocal %198 {approx = true} : vector<16x1xf32> -> vector<16x1xf32>
    %200 = vector.broadcast %199 : vector<16x1xf32> to vector<16x32xf32>
    %201 = arith.mulf %190, %200 : vector<16x32xf32>
    %202 = vector.broadcast %17 : vector<1x32xf32> to vector<16x32xf32>
    %203 = arith.mulf %202, %201 : vector<16x32xf32>
    %204 = vector.broadcast %18 : vector<1x32xf32> to vector<16x32xf32>
    %205 = arith.addf %203, %204 : vector<16x32xf32>
    %c0_66 = arith.constant 0 : index
    %c0_67 = arith.constant 0 : index
    %c0_68 = arith.constant 0 : index
    %206 = vector.load %arg15[%c0_66, %c0_67, %c0_68] : memref<2x32x64xf32, #tpu.memory_space<vmem>>, vector<1x32x64xf32>
    %207 = vector.shape_cast %206 : vector<1x32x64xf32> to vector<32x64xf32>
    %cst_69 = arith.constant dense<0.000000e+00> : vector<16x64xf32>
    %208 = tpu.matmul %205, %207, %cst_69 {dimension_numbers = #tpu.dot_dimension_numbers<[1], [0], [0], [1], [0, 0, 1, 1], [], []>} : vector<16x32xf32>, vector<32x64xf32>, vector<16x64xf32> -> vector<16x64xf32>
    %c0_70 = arith.constant 0 : index
    %c0_71 = arith.constant 0 : index
    %c0_72 = arith.constant 0 : index
    %209 = vector.load %arg16[%c0_70, %c0_71, %c0_72] : memref<2x1x64xf32, #tpu.memory_space<vmem>>, vector<1x1x64xf32>
    %210 = vector.shape_cast %209 : vector<1x1x64xf32> to vector<1x64xf32>
    %211 = vector.broadcast %210 : vector<1x64xf32> to vector<16x64xf32>
    %212 = arith.addf %208, %211 : vector<16x64xf32>
    %cst_73 = arith.constant 0.000000e+00 : f32
    %213 = vector.broadcast %cst_73 : f32 to vector<16x64xf32>
    %214 = arith.maximumf %212, %213 : vector<16x64xf32>
    %c0_74 = arith.constant 0 : index
    %c0_75 = arith.constant 0 : index
    %c0_76 = arith.constant 0 : index
    %215 = vector.load %arg17[%c0_74, %c0_75, %c0_76] : memref<2x64x32xf32, #tpu.memory_space<vmem>>, vector<1x64x32xf32>
    %216 = vector.shape_cast %215 : vector<1x64x32xf32> to vector<64x32xf32>
    %cst_77 = arith.constant dense<0.000000e+00> : vector<16x32xf32>
    %217 = tpu.matmul %214, %216, %cst_77 {dimension_numbers = #tpu.dot_dimension_numbers<[1], [0], [0], [1], [0, 0, 1, 1], [], []>} : vector<16x64xf32>, vector<64x32xf32>, vector<16x32xf32> -> vector<16x32xf32>
    %218 = vector.broadcast %14 : vector<1x32xf32> to vector<16x32xf32>
    %219 = arith.addf %217, %218 : vector<16x32xf32>
    %220 = arith.addf %205, %219 : vector<16x32xf32>
    %cst_78 = arith.constant dense<0.000000e+00> : vector<16xf32>
    %221 = vector.multi_reduction <add>, %220, %cst_78 [1] : vector<16x32xf32> to vector<16xf32>
    %222 = vector.shape_cast %221 : vector<16xf32> to vector<16x1xf32>
    %cst_79 = arith.constant 3.200000e+01 : f32
    %223 = vector.broadcast %cst_79 : f32 to vector<16x1xf32>
    %224 = arith.divf %222, %223 : vector<16x1xf32>
    %225 = vector.broadcast %224 : vector<16x1xf32> to vector<16x32xf32>
    %226 = arith.subf %220, %225 : vector<16x32xf32>
    %227 = arith.mulf %226, %226 : vector<16x32xf32>
    %cst_80 = arith.constant dense<0.000000e+00> : vector<16xf32>
    %228 = vector.multi_reduction <add>, %227, %cst_80 [1] : vector<16x32xf32> to vector<16xf32>
    %229 = vector.shape_cast %228 : vector<16xf32> to vector<16x1xf32>
    %cst_81 = arith.constant 0.0322580636 : f32
    %230 = vector.broadcast %cst_81 : f32 to vector<16x1xf32>
    %231 = arith.mulf %229, %230 : vector<16x1xf32>
    %232 = math.sqrt %231 : vector<16x1xf32>
    %cst_82 = arith.constant 9.99999996E-13 : f32
    %233 = vector.broadcast %cst_82 : f32 to vector<16x1xf32>
    %234 = arith.addf %232, %233 : vector<16x1xf32>
    %235 = tpu.reciprocal %234 {approx = true} : vector<16x1xf32> -> vector<16x1xf32>
    %236 = vector.broadcast %235 : vector<16x1xf32> to vector<16x32xf32>
    %237 = arith.mulf %226, %236 : vector<16x32xf32>
    %238 = vector.broadcast %19 : vector<1x32xf32> to vector<16x32xf32>
    %239 = arith.mulf %238, %237 : vector<16x32xf32>
    %240 = vector.broadcast %20 : vector<1x32xf32> to vector<16x32xf32>
    %241 = arith.addf %239, %240 : vector<16x32xf32>
    %c1 = arith.constant 1 : index
    %c0_83 = arith.constant 0 : index
    %c0_84 = arith.constant 0 : index
    %242 = vector.load %arg18[%c1, %c0_83, %c0_84] : memref<2x10x32xf32, #tpu.memory_space<vmem>>, vector<1x10x32xf32>
    %243 = vector.shape_cast %242 : vector<1x10x32xf32> to vector<10x32xf32>
    %244 = vector.extract_strided_slice %243 {offsets = [0, 0], sizes = [1, 32], strides = [1, 1]} : vector<10x32xf32> to vector<1x32xf32>
    %245 = vector.extract_strided_slice %243 {offsets = [1, 0], sizes = [1, 32], strides = [1, 1]} : vector<10x32xf32> to vector<1x32xf32>
    %246 = vector.extract_strided_slice %243 {offsets = [2, 0], sizes = [1, 32], strides = [1, 1]} : vector<10x32xf32> to vector<1x32xf32>
    %247 = vector.extract_strided_slice %243 {offsets = [3, 0], sizes = [1, 32], strides = [1, 1]} : vector<10x32xf32> to vector<1x32xf32>
    %248 = vector.extract_strided_slice %243 {offsets = [4, 0], sizes = [1, 32], strides = [1, 1]} : vector<10x32xf32> to vector<1x32xf32>
    %249 = vector.extract_strided_slice %243 {offsets = [5, 0], sizes = [1, 32], strides = [1, 1]} : vector<10x32xf32> to vector<1x32xf32>
    %250 = vector.extract_strided_slice %243 {offsets = [6, 0], sizes = [1, 32], strides = [1, 1]} : vector<10x32xf32> to vector<1x32xf32>
    %251 = vector.extract_strided_slice %243 {offsets = [7, 0], sizes = [1, 32], strides = [1, 1]} : vector<10x32xf32> to vector<1x32xf32>
    %252 = vector.extract_strided_slice %243 {offsets = [8, 0], sizes = [1, 32], strides = [1, 1]} : vector<10x32xf32> to vector<1x32xf32>
    %253 = vector.extract_strided_slice %243 {offsets = [9, 0], sizes = [1, 32], strides = [1, 1]} : vector<10x32xf32> to vector<1x32xf32>
    %c1_85 = arith.constant 1 : index
    %c0_86 = arith.constant 0 : index
    %c0_87 = arith.constant 0 : index
    %254 = vector.load %arg8[%c1_85, %c0_86, %c0_87] : memref<2x32x96xf32, #tpu.memory_space<vmem>>, vector<1x32x96xf32>
    %255 = vector.shape_cast %254 : vector<1x32x96xf32> to vector<32x96xf32>
    %cst_88 = arith.constant dense<0.000000e+00> : vector<16x96xf32>
    %256 = tpu.matmul %241, %255, %cst_88 {dimension_numbers = #tpu.dot_dimension_numbers<[1], [0], [0], [1], [0, 0, 1, 1], [], []>} : vector<16x32xf32>, vector<32x96xf32>, vector<16x96xf32> -> vector<16x96xf32>
    %c1_89 = arith.constant 1 : index
    %c0_90 = arith.constant 0 : index
    %c0_91 = arith.constant 0 : index
    %257 = vector.load %arg9[%c1_89, %c0_90, %c0_91] : memref<2x1x96xf32, #tpu.memory_space<vmem>>, vector<1x1x96xf32>
    %258 = vector.shape_cast %257 : vector<1x1x96xf32> to vector<1x96xf32>
    %259 = vector.broadcast %258 : vector<1x96xf32> to vector<16x96xf32>
    %260 = arith.addf %256, %259 : vector<16x96xf32>
    %261 = vector.extract_strided_slice %260 {offsets = [0, 0], sizes = [16, 8], strides = [1, 1]} : vector<16x96xf32> to vector<16x8xf32>
    %262 = vector.shape_cast %261 : vector<16x8xf32> to vector<2x8x8xf32>
    %263 = vector.extract_strided_slice %260 {offsets = [0, 8], sizes = [16, 8], strides = [1, 1]} : vector<16x96xf32> to vector<16x8xf32>
    %264 = vector.shape_cast %263 : vector<16x8xf32> to vector<2x8x8xf32>
    %265 = vector.extract_strided_slice %260 {offsets = [0, 16], sizes = [16, 8], strides = [1, 1]} : vector<16x96xf32> to vector<16x8xf32>
    %266 = vector.shape_cast %265 : vector<16x8xf32> to vector<2x8x8xf32>
    %267 = vector.extract_strided_slice %260 {offsets = [0, 24], sizes = [16, 8], strides = [1, 1]} : vector<16x96xf32> to vector<16x8xf32>
    %268 = vector.shape_cast %267 : vector<16x8xf32> to vector<2x8x8xf32>
    %269 = tpu.concatenate %262, %264, %266, %268 in 0 : vector<2x8x8xf32>, vector<2x8x8xf32>, vector<2x8x8xf32>, vector<2x8x8xf32> -> vector<8x8x8xf32>
    %270 = vector.extract_strided_slice %260 {offsets = [0, 32], sizes = [16, 8], strides = [1, 1]} : vector<16x96xf32> to vector<16x8xf32>
    %271 = vector.shape_cast %270 : vector<16x8xf32> to vector<2x8x8xf32>
    %272 = vector.extract_strided_slice %260 {offsets = [0, 40], sizes = [16, 8], strides = [1, 1]} : vector<16x96xf32> to vector<16x8xf32>
    %273 = vector.shape_cast %272 : vector<16x8xf32> to vector<2x8x8xf32>
    %274 = vector.extract_strided_slice %260 {offsets = [0, 48], sizes = [16, 8], strides = [1, 1]} : vector<16x96xf32> to vector<16x8xf32>
    %275 = vector.shape_cast %274 : vector<16x8xf32> to vector<2x8x8xf32>
    %276 = vector.extract_strided_slice %260 {offsets = [0, 56], sizes = [16, 8], strides = [1, 1]} : vector<16x96xf32> to vector<16x8xf32>
    %277 = vector.shape_cast %276 : vector<16x8xf32> to vector<2x8x8xf32>
    %278 = tpu.concatenate %271, %273, %275, %277 in 0 : vector<2x8x8xf32>, vector<2x8x8xf32>, vector<2x8x8xf32>, vector<2x8x8xf32> -> vector<8x8x8xf32>
    %279 = vector.extract_strided_slice %260 {offsets = [0, 64], sizes = [16, 8], strides = [1, 1]} : vector<16x96xf32> to vector<16x8xf32>
    %280 = vector.shape_cast %279 : vector<16x8xf32> to vector<2x8x8xf32>
    %281 = vector.extract_strided_slice %260 {offsets = [0, 72], sizes = [16, 8], strides = [1, 1]} : vector<16x96xf32> to vector<16x8xf32>
    %282 = vector.shape_cast %281 : vector<16x8xf32> to vector<2x8x8xf32>
    %283 = vector.extract_strided_slice %260 {offsets = [0, 80], sizes = [16, 8], strides = [1, 1]} : vector<16x96xf32> to vector<16x8xf32>
    %284 = vector.shape_cast %283 : vector<16x8xf32> to vector<2x8x8xf32>
    %285 = vector.extract_strided_slice %260 {offsets = [0, 88], sizes = [16, 8], strides = [1, 1]} : vector<16x96xf32> to vector<16x8xf32>
    %286 = vector.shape_cast %285 : vector<16x8xf32> to vector<2x8x8xf32>
    %287 = tpu.concatenate %280, %282, %284, %286 in 0 : vector<2x8x8xf32>, vector<2x8x8xf32>, vector<2x8x8xf32>, vector<2x8x8xf32> -> vector<8x8x8xf32>
    %c1_92 = arith.constant 1 : index
    %c0_93 = arith.constant 0 : index
    %c0_94 = arith.constant 0 : index
    %288 = vector.load %arg10[%c1_92, %c0_93, %c0_94] : memref<2x32x32xf32, #tpu.memory_space<vmem>>, vector<1x32x32xf32>
    %289 = vector.shape_cast %288 : vector<1x32x32xf32> to vector<32x32xf32>
    "tpu.trace_start"() <{level = 10 : i32, message = "gqd,gkd->gqk"}> : () -> ()
    %cst_95 = arith.constant dense<0.000000e+00> : vector<8x8x8xf32>
    %290 = tpu.matmul %269, %278, %cst_95 {dimension_numbers = #tpu.dot_dimension_numbers<[2], [2], [1], [1], [0, 0, 0, 1, 1, 1], [0], [0]>} : vector<8x8x8xf32>, vector<8x8x8xf32>, vector<8x8x8xf32> -> vector<8x8x8xf32>
    "tpu.trace_stop"() : () -> ()
    %cst_96 = arith.constant 0.353553385 : f32
    %291 = vector.broadcast %cst_96 : f32 to vector<8x8x8xf32>
    %292 = arith.mulf %290, %291 : vector<8x8x8xf32>
    %293 = arith.mulf %292, %0 : vector<8x8x8xf32>
    %cst_97 = arith.constant 1.000000e+00 : f32
    %294 = vector.broadcast %cst_97 : f32 to vector<8x8x8xf32>
    %295 = arith.subf %0, %294 : vector<8x8x8xf32>
    %cst_98 = arith.constant 1.000000e+10 : f32
    %296 = vector.broadcast %cst_98 : f32 to vector<8x8x8xf32>
    %297 = arith.mulf %295, %296 : vector<8x8x8xf32>
    %298 = arith.addf %293, %297 : vector<8x8x8xf32>
    %cst_99 = arith.constant dense<0xFF800000> : vector<8x8xf32>
    %299 = vector.multi_reduction <maximumf>, %298, %cst_99 [2] : vector<8x8x8xf32> to vector<8x8xf32>
    %300 = vector.shape_cast %299 : vector<8x8xf32> to vector<8x8x1xf32>
    %301 = vector.broadcast %300 : vector<8x8x1xf32> to vector<8x8x8xf32>
    %302 = arith.subf %298, %301 : vector<8x8x8xf32>
    %303 = math.exp %302 : vector<8x8x8xf32>
    %cst_100 = arith.constant dense<0.000000e+00> : vector<8x8xf32>
    %304 = vector.multi_reduction <add>, %303, %cst_100 [2] : vector<8x8x8xf32> to vector<8x8xf32>
    %305 = vector.shape_cast %304 : vector<8x8xf32> to vector<8x8x1xf32>
    %306 = tpu.reciprocal %305 {approx = true} : vector<8x8x1xf32> -> vector<8x8x1xf32>
    %307 = vector.broadcast %306 : vector<8x8x1xf32> to vector<8x8x8xf32>
    %308 = arith.mulf %303, %307 : vector<8x8x8xf32>
    "tpu.trace_start"() <{level = 10 : i32, message = "gqk,gkd->gqd"}> : () -> ()
    %cst_101 = arith.constant dense<0.000000e+00> : vector<8x8x8xf32>
    %309 = tpu.matmul %308, %287, %cst_101 {dimension_numbers = #tpu.dot_dimension_numbers<[2], [1], [1], [2], [0, 0, 0, 1, 1, 2], [0], [0]>} : vector<8x8x8xf32>, vector<8x8x8xf32>, vector<8x8x8xf32> -> vector<8x8x8xf32>
    "tpu.trace_stop"() : () -> ()
    %310 = vector.extract_strided_slice %309 {offsets = [0, 0, 0], sizes = [2, 8, 8], strides = [1, 1, 1]} : vector<8x8x8xf32> to vector<2x8x8xf32>
    %311 = vector.shape_cast %310 : vector<2x8x8xf32> to vector<16x8xf32>
    %312 = vector.extract_strided_slice %309 {offsets = [2, 0, 0], sizes = [2, 8, 8], strides = [1, 1, 1]} : vector<8x8x8xf32> to vector<2x8x8xf32>
    %313 = vector.shape_cast %312 : vector<2x8x8xf32> to vector<16x8xf32>
    %314 = vector.extract_strided_slice %309 {offsets = [4, 0, 0], sizes = [2, 8, 8], strides = [1, 1, 1]} : vector<8x8x8xf32> to vector<2x8x8xf32>
    %315 = vector.shape_cast %314 : vector<2x8x8xf32> to vector<16x8xf32>
    %316 = vector.extract_strided_slice %309 {offsets = [6, 0, 0], sizes = [2, 8, 8], strides = [1, 1, 1]} : vector<8x8x8xf32> to vector<2x8x8xf32>
    %317 = vector.shape_cast %316 : vector<2x8x8xf32> to vector<16x8xf32>
    %318 = tpu.concatenate %311, %313, %315, %317 in 1 : vector<16x8xf32>, vector<16x8xf32>, vector<16x8xf32>, vector<16x8xf32> -> vector<16x32xf32>
    %cst_102 = arith.constant dense<0.000000e+00> : vector<16x32xf32>
    %319 = tpu.matmul %318, %289, %cst_102 {dimension_numbers = #tpu.dot_dimension_numbers<[1], [0], [0], [1], [0, 0, 1, 1], [], []>} : vector<16x32xf32>, vector<32x32xf32>, vector<16x32xf32> -> vector<16x32xf32>
    %320 = vector.broadcast %244 : vector<1x32xf32> to vector<16x32xf32>
    %321 = arith.addf %319, %320 : vector<16x32xf32>
    %322 = arith.addf %241, %321 : vector<16x32xf32>
    %cst_103 = arith.constant dense<0.000000e+00> : vector<16xf32>
    %323 = vector.multi_reduction <add>, %322, %cst_103 [1] : vector<16x32xf32> to vector<16xf32>
    %324 = vector.shape_cast %323 : vector<16xf32> to vector<16x1xf32>
    %cst_104 = arith.constant 3.200000e+01 : f32
    %325 = vector.broadcast %cst_104 : f32 to vector<16x1xf32>
    %326 = arith.divf %324, %325 : vector<16x1xf32>
    %327 = vector.broadcast %326 : vector<16x1xf32> to vector<16x32xf32>
    %328 = arith.subf %322, %327 : vector<16x32xf32>
    %329 = arith.mulf %328, %328 : vector<16x32xf32>
    %cst_105 = arith.constant dense<0.000000e+00> : vector<16xf32>
    %330 = vector.multi_reduction <add>, %329, %cst_105 [1] : vector<16x32xf32> to vector<16xf32>
    %331 = vector.shape_cast %330 : vector<16xf32> to vector<16x1xf32>
    %cst_106 = arith.constant 0.0322580636 : f32
    %332 = vector.broadcast %cst_106 : f32 to vector<16x1xf32>
    %333 = arith.mulf %331, %332 : vector<16x1xf32>
    %334 = math.sqrt %333 : vector<16x1xf32>
    %cst_107 = arith.constant 9.99999996E-13 : f32
    %335 = vector.broadcast %cst_107 : f32 to vector<16x1xf32>
    %336 = arith.addf %334, %335 : vector<16x1xf32>
    %337 = tpu.reciprocal %336 {approx = true} : vector<16x1xf32> -> vector<16x1xf32>
    %338 = vector.broadcast %337 : vector<16x1xf32> to vector<16x32xf32>
    %339 = arith.mulf %328, %338 : vector<16x32xf32>
    %340 = vector.broadcast %248 : vector<1x32xf32> to vector<16x32xf32>
    %341 = arith.mulf %340, %339 : vector<16x32xf32>
    %342 = vector.broadcast %249 : vector<1x32xf32> to vector<16x32xf32>
    %343 = arith.addf %341, %342 : vector<16x32xf32>
    %c1_108 = arith.constant 1 : index
    %c0_109 = arith.constant 0 : index
    %c0_110 = arith.constant 0 : index
    %344 = vector.load %arg11[%c1_108, %c0_109, %c0_110] : memref<2x32x32xf32, #tpu.memory_space<vmem>>, vector<1x32x32xf32>
    %345 = vector.shape_cast %344 : vector<1x32x32xf32> to vector<32x32xf32>
    %cst_111 = arith.constant dense<0.000000e+00> : vector<16x32xf32>
    %346 = tpu.matmul %343, %345, %cst_111 {dimension_numbers = #tpu.dot_dimension_numbers<[1], [0], [0], [1], [0, 0, 1, 1], [], []>} : vector<16x32xf32>, vector<32x32xf32>, vector<16x32xf32> -> vector<16x32xf32>
    %347 = vector.broadcast %245 : vector<1x32xf32> to vector<16x32xf32>
    %348 = arith.addf %346, %347 : vector<16x32xf32>
    %c1_112 = arith.constant 1 : index
    %c0_113 = arith.constant 0 : index
    %c0_114 = arith.constant 0 : index
    %349 = vector.load %arg12[%c1_112, %c0_113, %c0_114] : memref<2x32x64xf32, #tpu.memory_space<vmem>>, vector<1x32x64xf32>
    %350 = vector.shape_cast %349 : vector<1x32x64xf32> to vector<32x64xf32>
    %cst_115 = arith.constant dense<0.000000e+00> : vector<16x64xf32>
    %351 = tpu.matmul %2, %350, %cst_115 {dimension_numbers = #tpu.dot_dimension_numbers<[1], [0], [0], [1], [0, 0, 1, 1], [], []>} : vector<16x32xf32>, vector<32x64xf32>, vector<16x64xf32> -> vector<16x64xf32>
    %c1_116 = arith.constant 1 : index
    %c0_117 = arith.constant 0 : index
    %c0_118 = arith.constant 0 : index
    %352 = vector.load %arg13[%c1_116, %c0_117, %c0_118] : memref<2x1x64xf32, #tpu.memory_space<vmem>>, vector<1x1x64xf32>
    %353 = vector.shape_cast %352 : vector<1x1x64xf32> to vector<1x64xf32>
    %354 = vector.broadcast %353 : vector<1x64xf32> to vector<16x64xf32>
    %355 = arith.addf %351, %354 : vector<16x64xf32>
    %356 = vector.extract_strided_slice %348 {offsets = [0, 0], sizes = [16, 8], strides = [1, 1]} : vector<16x32xf32> to vector<16x8xf32>
    %357 = vector.shape_cast %356 : vector<16x8xf32> to vector<2x8x8xf32>
    %358 = vector.extract_strided_slice %348 {offsets = [0, 8], sizes = [16, 8], strides = [1, 1]} : vector<16x32xf32> to vector<16x8xf32>
    %359 = vector.shape_cast %358 : vector<16x8xf32> to vector<2x8x8xf32>
    %360 = vector.extract_strided_slice %348 {offsets = [0, 16], sizes = [16, 8], strides = [1, 1]} : vector<16x32xf32> to vector<16x8xf32>
    %361 = vector.shape_cast %360 : vector<16x8xf32> to vector<2x8x8xf32>
    %362 = vector.extract_strided_slice %348 {offsets = [0, 24], sizes = [16, 8], strides = [1, 1]} : vector<16x32xf32> to vector<16x8xf32>
    %363 = vector.shape_cast %362 : vector<16x8xf32> to vector<2x8x8xf32>
    %364 = tpu.concatenate %357, %359, %361, %363 in 0 : vector<2x8x8xf32>, vector<2x8x8xf32>, vector<2x8x8xf32>, vector<2x8x8xf32> -> vector<8x8x8xf32>
    %365 = vector.extract_strided_slice %355 {offsets = [0, 0], sizes = [16, 8], strides = [1, 1]} : vector<16x64xf32> to vector<16x8xf32>
    %366 = vector.shape_cast %365 : vector<16x8xf32> to vector<2x8x8xf32>
    %367 = vector.extract_strided_slice %355 {offsets = [0, 8], sizes = [16, 8], strides = [1, 1]} : vector<16x64xf32> to vector<16x8xf32>
    %368 = vector.shape_cast %367 : vector<16x8xf32> to vector<2x8x8xf32>
    %369 = vector.extract_strided_slice %355 {offsets = [0, 16], sizes = [16, 8], strides = [1, 1]} : vector<16x64xf32> to vector<16x8xf32>
    %370 = vector.shape_cast %369 : vector<16x8xf32> to vector<2x8x8xf32>
    %371 = vector.extract_strided_slice %355 {offsets = [0, 24], sizes = [16, 8], strides = [1, 1]} : vector<16x64xf32> to vector<16x8xf32>
    %372 = vector.shape_cast %371 : vector<16x8xf32> to vector<2x8x8xf32>
    %373 = tpu.concatenate %366, %368, %370, %372 in 0 : vector<2x8x8xf32>, vector<2x8x8xf32>, vector<2x8x8xf32>, vector<2x8x8xf32> -> vector<8x8x8xf32>
    %374 = vector.extract_strided_slice %355 {offsets = [0, 32], sizes = [16, 8], strides = [1, 1]} : vector<16x64xf32> to vector<16x8xf32>
    %375 = vector.shape_cast %374 : vector<16x8xf32> to vector<2x8x8xf32>
    %376 = vector.extract_strided_slice %355 {offsets = [0, 40], sizes = [16, 8], strides = [1, 1]} : vector<16x64xf32> to vector<16x8xf32>
    %377 = vector.shape_cast %376 : vector<16x8xf32> to vector<2x8x8xf32>
    %378 = vector.extract_strided_slice %355 {offsets = [0, 48], sizes = [16, 8], strides = [1, 1]} : vector<16x64xf32> to vector<16x8xf32>
    %379 = vector.shape_cast %378 : vector<16x8xf32> to vector<2x8x8xf32>
    %380 = vector.extract_strided_slice %355 {offsets = [0, 56], sizes = [16, 8], strides = [1, 1]} : vector<16x64xf32> to vector<16x8xf32>
    %381 = vector.shape_cast %380 : vector<16x8xf32> to vector<2x8x8xf32>
    %382 = tpu.concatenate %375, %377, %379, %381 in 0 : vector<2x8x8xf32>, vector<2x8x8xf32>, vector<2x8x8xf32>, vector<2x8x8xf32> -> vector<8x8x8xf32>
    %c1_119 = arith.constant 1 : index
    %c0_120 = arith.constant 0 : index
    %c0_121 = arith.constant 0 : index
    %383 = vector.load %arg14[%c1_119, %c0_120, %c0_121] : memref<2x32x32xf32, #tpu.memory_space<vmem>>, vector<1x32x32xf32>
    %384 = vector.shape_cast %383 : vector<1x32x32xf32> to vector<32x32xf32>
    "tpu.trace_start"() <{level = 10 : i32, message = "gqd,gkd->gqk"}> : () -> ()
    %cst_122 = arith.constant dense<0.000000e+00> : vector<8x8x8xf32>
    %385 = tpu.matmul %364, %373, %cst_122 {dimension_numbers = #tpu.dot_dimension_numbers<[2], [2], [1], [1], [0, 0, 0, 1, 1, 1], [0], [0]>} : vector<8x8x8xf32>, vector<8x8x8xf32>, vector<8x8x8xf32> -> vector<8x8x8xf32>
    "tpu.trace_stop"() : () -> ()
    %cst_123 = arith.constant 0.353553385 : f32
    %386 = vector.broadcast %cst_123 : f32 to vector<8x8x8xf32>
    %387 = arith.mulf %385, %386 : vector<8x8x8xf32>
    %388 = arith.mulf %387, %1 : vector<8x8x8xf32>
    %cst_124 = arith.constant 1.000000e+00 : f32
    %389 = vector.broadcast %cst_124 : f32 to vector<8x8x8xf32>
    %390 = arith.subf %1, %389 : vector<8x8x8xf32>
    %cst_125 = arith.constant 1.000000e+10 : f32
    %391 = vector.broadcast %cst_125 : f32 to vector<8x8x8xf32>
    %392 = arith.mulf %390, %391 : vector<8x8x8xf32>
    %393 = arith.addf %388, %392 : vector<8x8x8xf32>
    %cst_126 = arith.constant dense<0xFF800000> : vector<8x8xf32>
    %394 = vector.multi_reduction <maximumf>, %393, %cst_126 [2] : vector<8x8x8xf32> to vector<8x8xf32>
    %395 = vector.shape_cast %394 : vector<8x8xf32> to vector<8x8x1xf32>
    %396 = vector.broadcast %395 : vector<8x8x1xf32> to vector<8x8x8xf32>
    %397 = arith.subf %393, %396 : vector<8x8x8xf32>
    %398 = math.exp %397 : vector<8x8x8xf32>
    %cst_127 = arith.constant dense<0.000000e+00> : vector<8x8xf32>
    %399 = vector.multi_reduction <add>, %398, %cst_127 [2] : vector<8x8x8xf32> to vector<8x8xf32>
    %400 = vector.shape_cast %399 : vector<8x8xf32> to vector<8x8x1xf32>
    %401 = tpu.reciprocal %400 {approx = true} : vector<8x8x1xf32> -> vector<8x8x1xf32>
    %402 = vector.broadcast %401 : vector<8x8x1xf32> to vector<8x8x8xf32>
    %403 = arith.mulf %398, %402 : vector<8x8x8xf32>
    "tpu.trace_start"() <{level = 10 : i32, message = "gqk,gkd->gqd"}> : () -> ()
    %cst_128 = arith.constant dense<0.000000e+00> : vector<8x8x8xf32>
    %404 = tpu.matmul %403, %382, %cst_128 {dimension_numbers = #tpu.dot_dimension_numbers<[2], [1], [1], [2], [0, 0, 0, 1, 1, 2], [0], [0]>} : vector<8x8x8xf32>, vector<8x8x8xf32>, vector<8x8x8xf32> -> vector<8x8x8xf32>
    "tpu.trace_stop"() : () -> ()
    %405 = vector.extract_strided_slice %404 {offsets = [0, 0, 0], sizes = [2, 8, 8], strides = [1, 1, 1]} : vector<8x8x8xf32> to vector<2x8x8xf32>
    %406 = vector.shape_cast %405 : vector<2x8x8xf32> to vector<16x8xf32>
    %407 = vector.extract_strided_slice %404 {offsets = [2, 0, 0], sizes = [2, 8, 8], strides = [1, 1, 1]} : vector<8x8x8xf32> to vector<2x8x8xf32>
    %408 = vector.shape_cast %407 : vector<2x8x8xf32> to vector<16x8xf32>
    %409 = vector.extract_strided_slice %404 {offsets = [4, 0, 0], sizes = [2, 8, 8], strides = [1, 1, 1]} : vector<8x8x8xf32> to vector<2x8x8xf32>
    %410 = vector.shape_cast %409 : vector<2x8x8xf32> to vector<16x8xf32>
    %411 = vector.extract_strided_slice %404 {offsets = [6, 0, 0], sizes = [2, 8, 8], strides = [1, 1, 1]} : vector<8x8x8xf32> to vector<2x8x8xf32>
    %412 = vector.shape_cast %411 : vector<2x8x8xf32> to vector<16x8xf32>
    %413 = tpu.concatenate %406, %408, %410, %412 in 1 : vector<16x8xf32>, vector<16x8xf32>, vector<16x8xf32>, vector<16x8xf32> -> vector<16x32xf32>
    %cst_129 = arith.constant dense<0.000000e+00> : vector<16x32xf32>
    %414 = tpu.matmul %413, %384, %cst_129 {dimension_numbers = #tpu.dot_dimension_numbers<[1], [0], [0], [1], [0, 0, 1, 1], [], []>} : vector<16x32xf32>, vector<32x32xf32>, vector<16x32xf32> -> vector<16x32xf32>
    %415 = vector.broadcast %246 : vector<1x32xf32> to vector<16x32xf32>
    %416 = arith.addf %414, %415 : vector<16x32xf32>
    %417 = arith.addf %343, %416 : vector<16x32xf32>
    %cst_130 = arith.constant dense<0.000000e+00> : vector<16xf32>
    %418 = vector.multi_reduction <add>, %417, %cst_130 [1] : vector<16x32xf32> to vector<16xf32>
    %419 = vector.shape_cast %418 : vector<16xf32> to vector<16x1xf32>
    %cst_131 = arith.constant 3.200000e+01 : f32
    %420 = vector.broadcast %cst_131 : f32 to vector<16x1xf32>
    %421 = arith.divf %419, %420 : vector<16x1xf32>
    %422 = vector.broadcast %421 : vector<16x1xf32> to vector<16x32xf32>
    %423 = arith.subf %417, %422 : vector<16x32xf32>
    %424 = arith.mulf %423, %423 : vector<16x32xf32>
    %cst_132 = arith.constant dense<0.000000e+00> : vector<16xf32>
    %425 = vector.multi_reduction <add>, %424, %cst_132 [1] : vector<16x32xf32> to vector<16xf32>
    %426 = vector.shape_cast %425 : vector<16xf32> to vector<16x1xf32>
    %cst_133 = arith.constant 0.0322580636 : f32
    %427 = vector.broadcast %cst_133 : f32 to vector<16x1xf32>
    %428 = arith.mulf %426, %427 : vector<16x1xf32>
    %429 = math.sqrt %428 : vector<16x1xf32>
    %cst_134 = arith.constant 9.99999996E-13 : f32
    %430 = vector.broadcast %cst_134 : f32 to vector<16x1xf32>
    %431 = arith.addf %429, %430 : vector<16x1xf32>
    %432 = tpu.reciprocal %431 {approx = true} : vector<16x1xf32> -> vector<16x1xf32>
    %433 = vector.broadcast %432 : vector<16x1xf32> to vector<16x32xf32>
    %434 = arith.mulf %423, %433 : vector<16x32xf32>
    %435 = vector.broadcast %250 : vector<1x32xf32> to vector<16x32xf32>
    %436 = arith.mulf %435, %434 : vector<16x32xf32>
    %437 = vector.broadcast %251 : vector<1x32xf32> to vector<16x32xf32>
    %438 = arith.addf %436, %437 : vector<16x32xf32>
    %c1_135 = arith.constant 1 : index
    %c0_136 = arith.constant 0 : index
    %c0_137 = arith.constant 0 : index
    %439 = vector.load %arg15[%c1_135, %c0_136, %c0_137] : memref<2x32x64xf32, #tpu.memory_space<vmem>>, vector<1x32x64xf32>
    %440 = vector.shape_cast %439 : vector<1x32x64xf32> to vector<32x64xf32>
    %cst_138 = arith.constant dense<0.000000e+00> : vector<16x64xf32>
    %441 = tpu.matmul %438, %440, %cst_138 {dimension_numbers = #tpu.dot_dimension_numbers<[1], [0], [0], [1], [0, 0, 1, 1], [], []>} : vector<16x32xf32>, vector<32x64xf32>, vector<16x64xf32> -> vector<16x64xf32>
    %c1_139 = arith.constant 1 : index
    %c0_140 = arith.constant 0 : index
    %c0_141 = arith.constant 0 : index
    %442 = vector.load %arg16[%c1_139, %c0_140, %c0_141] : memref<2x1x64xf32, #tpu.memory_space<vmem>>, vector<1x1x64xf32>
    %443 = vector.shape_cast %442 : vector<1x1x64xf32> to vector<1x64xf32>
    %444 = vector.broadcast %443 : vector<1x64xf32> to vector<16x64xf32>
    %445 = arith.addf %441, %444 : vector<16x64xf32>
    %cst_142 = arith.constant 0.000000e+00 : f32
    %446 = vector.broadcast %cst_142 : f32 to vector<16x64xf32>
    %447 = arith.maximumf %445, %446 : vector<16x64xf32>
    %c1_143 = arith.constant 1 : index
    %c0_144 = arith.constant 0 : index
    %c0_145 = arith.constant 0 : index
    %448 = vector.load %arg17[%c1_143, %c0_144, %c0_145] : memref<2x64x32xf32, #tpu.memory_space<vmem>>, vector<1x64x32xf32>
    %449 = vector.shape_cast %448 : vector<1x64x32xf32> to vector<64x32xf32>
    %cst_146 = arith.constant dense<0.000000e+00> : vector<16x32xf32>
    %450 = tpu.matmul %447, %449, %cst_146 {dimension_numbers = #tpu.dot_dimension_numbers<[1], [0], [0], [1], [0, 0, 1, 1], [], []>} : vector<16x64xf32>, vector<64x32xf32>, vector<16x32xf32> -> vector<16x32xf32>
    %451 = vector.broadcast %247 : vector<1x32xf32> to vector<16x32xf32>
    %452 = arith.addf %450, %451 : vector<16x32xf32>
    %453 = arith.addf %438, %452 : vector<16x32xf32>
    %cst_147 = arith.constant dense<0.000000e+00> : vector<16xf32>
    %454 = vector.multi_reduction <add>, %453, %cst_147 [1] : vector<16x32xf32> to vector<16xf32>
    %455 = vector.shape_cast %454 : vector<16xf32> to vector<16x1xf32>
    %cst_148 = arith.constant 3.200000e+01 : f32
    %456 = vector.broadcast %cst_148 : f32 to vector<16x1xf32>
    %457 = arith.divf %455, %456 : vector<16x1xf32>
    %458 = vector.broadcast %457 : vector<16x1xf32> to vector<16x32xf32>
    %459 = arith.subf %453, %458 : vector<16x32xf32>
    %460 = arith.mulf %459, %459 : vector<16x32xf32>
    %cst_149 = arith.constant dense<0.000000e+00> : vector<16xf32>
    %461 = vector.multi_reduction <add>, %460, %cst_149 [1] : vector<16x32xf32> to vector<16xf32>
    %462 = vector.shape_cast %461 : vector<16xf32> to vector<16x1xf32>
    %cst_150 = arith.constant 0.0322580636 : f32
    %463 = vector.broadcast %cst_150 : f32 to vector<16x1xf32>
    %464 = arith.mulf %462, %463 : vector<16x1xf32>
    %465 = math.sqrt %464 : vector<16x1xf32>
    %cst_151 = arith.constant 9.99999996E-13 : f32
    %466 = vector.broadcast %cst_151 : f32 to vector<16x1xf32>
    %467 = arith.addf %465, %466 : vector<16x1xf32>
    %468 = tpu.reciprocal %467 {approx = true} : vector<16x1xf32> -> vector<16x1xf32>
    %469 = vector.broadcast %468 : vector<16x1xf32> to vector<16x32xf32>
    %470 = arith.mulf %459, %469 : vector<16x32xf32>
    %471 = vector.broadcast %252 : vector<1x32xf32> to vector<16x32xf32>
    %472 = arith.mulf %471, %470 : vector<16x32xf32>
    %473 = vector.broadcast %253 : vector<1x32xf32> to vector<16x32xf32>
    %474 = arith.addf %472, %473 : vector<16x32xf32>
    %c0_152 = arith.constant 0 : index
    %c0_153 = arith.constant 0 : index
    %475 = vector.load %arg5[%c0_152, %c0_153] : memref<2x16xf32, #tpu.memory_space<vmem>>, vector<2x16xf32>
    %cst_154 = arith.constant dense<0.000000e+00> : vector<2x32xf32>
    %476 = tpu.matmul %475, %474, %cst_154 {dimension_numbers = #tpu.dot_dimension_numbers<[1], [0], [0], [1], [0, 0, 1, 1], [], []>} : vector<2x16xf32>, vector<16x32xf32>, vector<2x32xf32> -> vector<2x32xf32>
    %c0_155 = arith.constant 0 : index
    %c0_156 = arith.constant 0 : index
    %477 = vector.load %arg19[%c0_155, %c0_156] : memref<32x256xf32, #tpu.memory_space<vmem>>, vector<32x256xf32>
    %cst_157 = arith.constant dense<0.000000e+00> : vector<2x256xf32>
    %478 = tpu.matmul %476, %477, %cst_157 {dimension_numbers = #tpu.dot_dimension_numbers<[1], [0], [0], [1], [0, 0, 1, 1], [], []>} : vector<2x32xf32>, vector<32x256xf32>, vector<2x256xf32> -> vector<2x256xf32>
    %c0_158 = arith.constant 0 : index
    %c0_159 = arith.constant 0 : index
    %479 = vector.load %arg20[%c0_158, %c0_159] : memref<1x256xf32, #tpu.memory_space<vmem>>, vector<1x256xf32>
    %480 = vector.broadcast %479 : vector<1x256xf32> to vector<2x256xf32>
    %481 = arith.addf %478, %480 : vector<2x256xf32>
    %cst_160 = arith.constant 0.000000e+00 : f32
    %482 = vector.broadcast %cst_160 : f32 to vector<2x256xf32>
    %483 = arith.maximumf %481, %482 : vector<2x256xf32>
    %c0_161 = arith.constant 0 : index
    %c0_162 = arith.constant 0 : index
    %484 = vector.load %arg21[%c0_161, %c0_162] : memref<256x64xf32, #tpu.memory_space<vmem>>, vector<256x64xf32>
    %cst_163 = arith.constant dense<0.000000e+00> : vector<2x64xf32>
    %485 = tpu.matmul %483, %484, %cst_163 {dimension_numbers = #tpu.dot_dimension_numbers<[1], [0], [0], [1], [0, 0, 1, 1], [], []>} : vector<2x256xf32>, vector<256x64xf32>, vector<2x64xf32> -> vector<2x64xf32>
    %c0_164 = arith.constant 0 : index
    %c0_165 = arith.constant 0 : index
    %486 = vector.load %arg22[%c0_164, %c0_165] : memref<1x64xf32, #tpu.memory_space<vmem>>, vector<1x64xf32>
    %487 = vector.broadcast %486 : vector<1x64xf32> to vector<2x64xf32>
    %488 = arith.addf %485, %487 : vector<2x64xf32>
    %cst_166 = arith.constant 0.000000e+00 : f32
    %489 = vector.broadcast %cst_166 : f32 to vector<2x64xf32>
    %490 = arith.maximumf %488, %489 : vector<2x64xf32>
    %c0_167 = arith.constant 0 : index
    %c0_168 = arith.constant 0 : index
    %491 = vector.load %arg23[%c0_167, %c0_168] : memref<64x32xf32, #tpu.memory_space<vmem>>, vector<64x32xf32>
    %cst_169 = arith.constant dense<0.000000e+00> : vector<2x32xf32>
    %492 = tpu.matmul %490, %491, %cst_169 {dimension_numbers = #tpu.dot_dimension_numbers<[1], [0], [0], [1], [0, 0, 1, 1], [], []>} : vector<2x64xf32>, vector<64x32xf32>, vector<2x32xf32> -> vector<2x32xf32>
    %c0_170 = arith.constant 0 : index
    %c0_171 = arith.constant 0 : index
    %493 = vector.load %arg24[%c0_170, %c0_171] : memref<1x32xf32, #tpu.memory_space<vmem>>, vector<1x32xf32>
    %494 = vector.broadcast %493 : vector<1x32xf32> to vector<2x32xf32>
    %495 = arith.addf %492, %494 : vector<2x32xf32>
    %cst_172 = arith.constant 0.000000e+00 : f32
    %496 = vector.broadcast %cst_172 : f32 to vector<2x32xf32>
    %497 = arith.maximumf %495, %496 : vector<2x32xf32>
    %c0_173 = arith.constant 0 : index
    %c0_174 = arith.constant 0 : index
    %498 = vector.load %arg25[%c0_173, %c0_174] : memref<32x1xf32, #tpu.memory_space<vmem>>, vector<32x1xf32>
    %cst_175 = arith.constant dense<0.000000e+00> : vector<2x1xf32>
    %499 = tpu.matmul %497, %498, %cst_175 {dimension_numbers = #tpu.dot_dimension_numbers<[1], [0], [0], [1], [0, 0, 1, 1], [], []>} : vector<2x32xf32>, vector<32x1xf32>, vector<2x1xf32> -> vector<2x1xf32>
    %c0_176 = arith.constant 0 : index
    %c0_177 = arith.constant 0 : index
    %500 = vector.load %arg26[%c0_176, %c0_177] : memref<1x1xf32, #tpu.memory_space<vmem>>, vector<1x1xf32>
    %501 = vector.broadcast %500 : vector<1x1xf32> to vector<2x1xf32>
    %502 = arith.addf %499, %501 : vector<2x1xf32>
    %c0_178 = arith.constant 0 : index
    %c0_179 = arith.constant 0 : index
    %503 = vector.load %arg27[%c0_178, %c0_179] : memref<2x1xf32, #tpu.memory_space<vmem>>, vector<2x1xf32>
    tpu.vector_store %arg27[%c0_178, %c0_179], %502 {strides = array<i32>} : memref<2x1xf32, #tpu.memory_space<vmem>>, vector<2x1xf32>,
    return
  }
  func.func @transform_0(%arg0: i32) -> (i32, i32) {
    %c0_i32 = arith.constant 0 : i32
    %c0_i32_0 = arith.constant 0 : i32
    %c0_i32_1 = arith.constant 0 : i32
    return %c0_i32, %c0_i32_0 : i32, i32
  }
  func.func @transform_1(%arg0: i32) -> (i32, i32) {
    %c0_i32 = arith.constant 0 : i32
    %c0_i32_0 = arith.constant 0 : i32
    %c0_i32_1 = arith.constant 0 : i32
    return %c0_i32, %c0_i32_0 : i32, i32
  }
  func.func @transform_2(%arg0: i32) -> (i32, i32, i32) {
    %c0_i32 = arith.constant 0 : i32
    %c0_i32_0 = arith.constant 0 : i32
    %c0_i32_1 = arith.constant 0 : i32
    %c0_i32_2 = arith.constant 0 : i32
    return %c0_i32, %c0_i32_0, %c0_i32_1 : i32, i32, i32
  }
  func.func @transform_3(%arg0: i32) -> (i32, i32, i32) {
    %c0_i32 = arith.constant 0 : i32
    %c0_i32_0 = arith.constant 0 : i32
    %c0_i32_1 = arith.constant 0 : i32
    %c0_i32_2 = arith.constant 0 : i32
    return %c0_i32, %c0_i32_0, %c0_i32_1 : i32, i32, i32
  }
  func.func @transform_4(%arg0: i32) -> (i32, i32) {
    %c0_i32 = arith.constant 0 : i32
    %c0_i32_0 = arith.constant 0 : i32
    %c0_i32_1 = arith.constant 0 : i32
    return %c0_i32, %c0_i32_0 : i32, i32
  }
  func.func @transform_5(%arg0: i32) -> (i32, i32) {
    %c0_i32 = arith.constant 0 : i32
    %c0_i32_0 = arith.constant 0 : i32
    %c0_i32_1 = arith.constant 0 : i32
    return %c0_i32, %c0_i32_0 : i32, i32
  }
  func.func @transform_6(%arg0: i32) -> (i32, i32) {
    %c0_i32 = arith.constant 0 : i32
    %c0_i32_0 = arith.constant 0 : i32
    %c0_i32_1 = arith.constant 0 : i32
    return %c0_i32, %c0_i32_0 : i32, i32
  }
  func.func @transform_7(%arg0: i32) -> (i32, i32, i32) {
    %c0_i32 = arith.constant 0 : i32
    %c0_i32_0 = arith.constant 0 : i32
    %c0_i32_1 = arith.constant 0 : i32
    %c0_i32_2 = arith.constant 0 : i32
    return %c0_i32, %c0_i32_0, %c0_i32_1 : i32, i32, i32
  }
  func.func @transform_8(%arg0: i32) -> (i32, i32, i32) {
    %c0_i32 = arith.constant 0 : i32
    %c0_i32_0 = arith.constant 0 : i32
    %c0_i32_1 = arith.constant 0 : i32
    %c0_i32_2 = arith.constant 0 : i32
    return %c0_i32, %c0_i32_0, %c0_i32_1 : i32, i32, i32
  }
  func.func @transform_9(%arg0: i32) -> (i32, i32, i32) {
    %c0_i32 = arith.constant 0 : i32
    %c0_i32_0 = arith.constant 0 : i32
    %c0_i32_1 = arith.constant 0 : i32
    %c0_i32_2 = arith.constant 0 : i32
    return %c0_i32, %c0_i32_0, %c0_i32_1 : i32, i32, i32
  }
  func.func @transform_10(%arg0: i32) -> (i32, i32, i32) {
    %c0_i32 = arith.constant 0 : i32
    %c0_i32_0 = arith.constant 0 : i32
    %c0_i32_1 = arith.constant 0 : i32
    %c0_i32_2 = arith.constant 0 : i32
    return %c0_i32, %c0_i32_0, %c0_i32_1 : i32, i32, i32
  }
  func.func @transform_11(%arg0: i32) -> (i32, i32, i32) {
    %c0_i32 = arith.constant 0 : i32
    %c0_i32_0 = arith.constant 0 : i32
    %c0_i32_1 = arith.constant 0 : i32
    %c0_i32_2 = arith.constant 0 : i32
    return %c0_i32, %c0_i32_0, %c0_i32_1 : i32, i32, i32
  }
  func.func @transform_12(%arg0: i32) -> (i32, i32, i32) {
    %c0_i32 = arith.constant 0 : i32
    %c0_i32_0 = arith.constant 0 : i32
    %c0_i32_1 = arith.constant 0 : i32
    %c0_i32_2 = arith.constant 0 : i32
    return %c0_i32, %c0_i32_0, %c0_i32_1 : i32, i32, i32
  }
  func.func @transform_13(%arg0: i32) -> (i32, i32, i32) {
    %c0_i32 = arith.constant 0 : i32
    %c0_i32_0 = arith.constant 0 : i32
    %c0_i32_1 = arith.constant 0 : i32
    %c0_i32_2 = arith.constant 0 : i32
    return %c0_i32, %c0_i32_0, %c0_i32_1 : i32, i32, i32
  }
  func.func @transform_14(%arg0: i32) -> (i32, i32, i32) {
    %c0_i32 = arith.constant 0 : i32
    %c0_i32_0 = arith.constant 0 : i32
    %c0_i32_1 = arith.constant 0 : i32
    %c0_i32_2 = arith.constant 0 : i32
    return %c0_i32, %c0_i32_0, %c0_i32_1 : i32, i32, i32
  }
  func.func @transform_15(%arg0: i32) -> (i32, i32, i32) {
    %c0_i32 = arith.constant 0 : i32
    %c0_i32_0 = arith.constant 0 : i32
    %c0_i32_1 = arith.constant 0 : i32
    %c0_i32_2 = arith.constant 0 : i32
    return %c0_i32, %c0_i32_0, %c0_i32_1 : i32, i32, i32
  }
  func.func @transform_16(%arg0: i32) -> (i32, i32, i32) {
    %c0_i32 = arith.constant 0 : i32
    %c0_i32_0 = arith.constant 0 : i32
    %c0_i32_1 = arith.constant 0 : i32
    %c0_i32_2 = arith.constant 0 : i32
    return %c0_i32, %c0_i32_0, %c0_i32_1 : i32, i32, i32
  }
  func.func @transform_17(%arg0: i32) -> (i32, i32, i32) {
    %c0_i32 = arith.constant 0 : i32
    %c0_i32_0 = arith.constant 0 : i32
    %c0_i32_1 = arith.constant 0 : i32
    %c0_i32_2 = arith.constant 0 : i32
    return %c0_i32, %c0_i32_0, %c0_i32_1 : i32, i32, i32
  }
  func.func @transform_18(%arg0: i32) -> (i32, i32) {
    %c0_i32 = arith.constant 0 : i32
    %c0_i32_0 = arith.constant 0 : i32
    %c0_i32_1 = arith.constant 0 : i32
    return %c0_i32, %c0_i32_0 : i32, i32
  }
  func.func @transform_19(%arg0: i32) -> (i32, i32) {
    %c0_i32 = arith.constant 0 : i32
    %c0_i32_0 = arith.constant 0 : i32
    %c0_i32_1 = arith.constant 0 : i32
    return %c0_i32, %c0_i32_0 : i32, i32
  }
  func.func @transform_20(%arg0: i32) -> (i32, i32) {
    %c0_i32 = arith.constant 0 : i32
    %c0_i32_0 = arith.constant 0 : i32
    %c0_i32_1 = arith.constant 0 : i32
    return %c0_i32, %c0_i32_0 : i32, i32
  }
  func.func @transform_21(%arg0: i32) -> (i32, i32) {
    %c0_i32 = arith.constant 0 : i32
    %c0_i32_0 = arith.constant 0 : i32
    %c0_i32_1 = arith.constant 0 : i32
    return %c0_i32, %c0_i32_0 : i32, i32
  }
  func.func @transform_22(%arg0: i32) -> (i32, i32) {
    %c0_i32 = arith.constant 0 : i32
    %c0_i32_0 = arith.constant 0 : i32
    %c0_i32_1 = arith.constant 0 : i32
    return %c0_i32, %c0_i32_0 : i32, i32
  }
  func.func @transform_23(%arg0: i32) -> (i32, i32) {
    %c0_i32 = arith.constant 0 : i32
    %c0_i32_0 = arith.constant 0 : i32
    %c0_i32_1 = arith.constant 0 : i32
    return %c0_i32, %c0_i32_0 : i32, i32
  }
  func.func @transform_24(%arg0: i32) -> (i32, i32) {
    %c0_i32 = arith.constant 0 : i32
    %c0_i32_0 = arith.constant 0 : i32
    %c0_i32_1 = arith.constant 0 : i32
    return %c0_i32, %c0_i32_0 : i32, i32
  }
  func.func @transform_25(%arg0: i32) -> (i32, i32) {
    %c0_i32 = arith.constant 0 : i32
    %c0_i32_0 = arith.constant 0 : i32
    %c0_i32_1 = arith.constant 0 : i32
    return %c0_i32, %c0_i32_0 : i32, i32
  }
  func.func @transform_26(%arg0: i32) -> (i32, i32) {
    %c0_i32 = arith.constant 0 : i32
    %c0_i32_0 = arith.constant 0 : i32
    %c0_i32_1 = arith.constant 0 : i32
    return %c0_i32, %c0_i32_0 : i32, i32
  }
}

</mosaic_0001>

<bundles_post_ra>
// kernel: tpu_custom_call.1
= control target key start
LH: loop header
LB: loop body
LE: loop exit
PB: predicated region body
PF: predicated region fallthrough
CT: control target
= control target key end

     0   :  { %s10966_s0 = inlined_call_operand.hbm [shape: f32[16,32], index: 0, kind: input, shape index: {}]   ;;  %s10967_s1 = inlined_call_operand.hbm [shape: f32[16,32], index: 1, kind: input, shape index: {}]   ;;  %s10968_s2 = inlined_call_operand.vmem [shape: f32[8,8,8], index: 2, kind: input, shape index: {}]   ;;  %s10969_s3 = inlined_call_operand.vmem [shape: f32[8,8,8], index: 3, kind: input, shape index: {}]   ;;  %s10970_s4 = inlined_call_operand.vmem [shape: f32[2,16], index: 4, kind: input, shape index: {}]   ;;  %s10971_s5 = inlined_call_operand.hbm [shape: f32[32,32], index: 5, kind: input, shape index: {}]   ;;  %s10972_s6 = inlined_call_operand.hbm [shape: f32[1,32], index: 6, kind: input, shape index: {}]   ;;  %s10973_s7 = inlined_call_operand.vmem [shape: f32[2,32,96], index: 7, kind: input, shape index: {}]   ;;  %s10974_s8 = inlined_call_operand.hbm [shape: f32[2,1,96], index: 8, kind: input, shape index: {}]   ;;  %s10975_s9 = inlined_call_operand.vmem [shape: f32[2,32,32], index: 9, kind: input, shape index: {}]   ;;  %s10976_s10 = inlined_call_operand.vmem [shape: f32[2,32,32], index: 10, kind: input, shape index: {}]   ;;  %s10977_s11 = inlined_call_operand.vmem [shape: f32[2,32,64], index: 11, kind: input, shape index: {}]   ;;  %s10978_s12 = inlined_call_operand.hbm [shape: f32[2,1,64], index: 12, kind: input, shape index: {}]   ;;  %s10979_s13 = inlined_call_operand.vmem [shape: f32[2,32,32], index: 13, kind: input, shape index: {}]   ;;  %s10980_s14 = inlined_call_operand.vmem [shape: f32[2,32,64], index: 14, kind: input, shape index: {}]   ;;  %s10981_s15 = inlined_call_operand.hbm [shape: f32[2,1,64], index: 15, kind: input, shape index: {}]   ;;  %s10982_s16 = inlined_call_operand.vmem [shape: f32[2,64,32], index: 16, kind: input, shape index: {}]   ;;  %s10983_s17 = inlined_call_operand.vmem [shape: f32[2,10,32], index: 17, kind: input, shape index: {}]   ;;  %s10984_s18 = inlined_call_operand.vmem [shape: f32[32,256], index: 18, kind: input, shape index: {}]   ;;  %s10985_s19 = inlined_call_operand.vmem [shape: f32[1,256], index: 19, kind: input, shape index: {}]   ;;  %s10986_s20 = inlined_call_operand.vmem [shape: f32[256,64], index: 20, kind: input, shape index: {}]   ;;  %s10987_s21 = inlined_call_operand.vmem [shape: f32[1,64], index: 21, kind: input, shape index: {}]   ;;  %s10988_s22 = inlined_call_operand.vmem [shape: f32[64,32], index: 22, kind: input, shape index: {}]   ;;  %s10989_s23 = inlined_call_operand.hbm [shape: f32[1,32], index: 23, kind: input, shape index: {}]   ;;  %s10990_s24 = inlined_call_operand.vmem [shape: f32[32,1], index: 24, kind: input, shape index: {}]   ;;  %s10991_s25 = inlined_call_operand.<no memory space> [shape: f32[1,1], index: 25, kind: input, shape index: {}]   ;;  %s10992_s26 = inlined_call_operand.vmem [shape: f32[2,1], index: 26, kind: output, shape index: {}]  }
   0x1   :  { %11002 = sst [smem:[#allocation21_spill]] %s10966_s0  ;;  %v31_v0 = vstv %s10991_s25 }
   0x2   :  { %11003 = sst [smem:[#allocation22_spill]] %s10967_s1  ;;  %32 = vst [vmem:[#allocation2] sm:$0x1] %v31_v0 }
   0x3   :  { %11004 = sst [smem:[#allocation23_spill]] %s10968_s2 }
   0x4   :  { %11005 = sst [smem:[#allocation24_spill]] %s10969_s3 }
   0x5   :  { %11006 = sst [smem:[#allocation25_spill]] %s10970_s4 }
   0x6   :  { %11007 = sst [smem:[#allocation26_spill]] %s10971_s5 }
   0x7   :  { %11008 = sst [smem:[#allocation27_spill]] %s10972_s6 }
   0x8   :  { %11009 = sst [smem:[#allocation28_spill]] %s10973_s7 }
   0x9   :  { %11010 = sst [smem:[#allocation29_spill]] %s10974_s8 }
   0xa   :  { %11011 = sst [smem:[#allocation30_spill]] %s10975_s9 }
   0xb   :  { %11012 = sst [smem:[#allocation31_spill]] %s10976_s10 }
   0xc   :  { %33 = vsyncpa [#allocation4], 0 }
   0xd   :  { %34 = vsyncpa [#allocation6], 0 }
   0xe   :  { %35 = vsyncpa [#allocation9], 0 }
   0xf   :  { %36 = vsyncpa [#allocation12], 0 }
  0x10   :  { %37 = vsyncpa [#allocation15], 0  ;;  %s9288_s7 = smov [#allocation5]   ;;  %s9289_s8 = smov [#allocation8]  }
  0x11   :  { %s55_s28 = sshll.u32 %s9288_s7, 4  ;;  %s86_s4 = sshll.u32 %s9289_s8, 4  ;;  %s56_s28 = int_to_ptr.vmem [resolvable:$true] %s55_s28  ;;  %s87_s4 = int_to_ptr.vmem [resolvable:$true] %s86_s4 }
  0x12   :  { %s9126_s29 = scalar_lea.vmem %s56_s28, 256  ;;  %p9131_p1 = scmp.lt.s32.totalorder %s56_s28, %s56_s28 }
  0x13   :  { %p9127_p0 = scmp.ne.s32.totalorder %s56_s28, %s9126_s29  ;;  %p9132_p2 = scmp.lt.s32.totalorder %s9126_s29, %s9126_s29 }
  0x15   :  { %p9133_p3 = por %p9132_p2, %p9131_p1 }
  0x17   :  { %p9134_p4 = pnand %p9133_p3, %p9127_p0 }
  0x19   :  { %9137 = shalt.err (!%p9134_p4)
}
  0x1a   :  { %s9290_s25 = smov 128   ;;  %s9291_s0 = smov 8  }
  0x1b   :  { %s11013_s2 = sld [smem:[#allocation22_spill]]  ;;  %s9146_s5 = scalar_lea.vmem %s87_s4, 16 }
  0x1c   :  { %p9147_p5 = scmp.ne.s32.totalorder %s87_s4, %s9146_s5  ;;  %s9150_s10 = scalar_lea.vmem %s87_s4, 32 }
  0x1d   :  { %p9151_p6 = scmp.lt.s32.totalorder %s87_s4, %s87_s4  ;;  %p9152_p7 = scmp.lt.s32.totalorder %s9150_s10, %s9146_s5 }
  0x1f   :  { %p9153_p8 = por %p9152_p7, %p9151_p6 }
  0x21   :  { %61 = dma.hbm_to_vmem [thread:$0]  %s11013_s2, 256, %s56_s28, [#allocation6], %s9290_s25, %s9290_s25, %s9291_s0  }
  0x22   :  { %p9154_p9 = pnand %p9153_p8, %p9147_p5 }
  0x24   :  { %9157 = shalt.err (!%p9154_p9)
}
  0x25   :  { %s11014_s27 = sld [smem:[#allocation27_spill]]  ;;  %s9292_s3 = smov [#allocation11]  }
  0x26   :  { %s115_s7 = sshll.u32 %s9292_s3, 4  ;;  %s9293_s8 = smov [#allocation3]   ;;  %s116_s7 = int_to_ptr.vmem [resolvable:$true] %s115_s7 }
  0x27   :  { %s43_s29 = sshll.u32 %s9293_s8, 4  ;;  %s9166_s9 = scalar_lea.vmem %s116_s7, 32  ;;  %s44_s29 = int_to_ptr.vmem [resolvable:$true] %s43_s29 }
  0x28   :  { %p9167_p10 = scmp.ne.s32.totalorder %s116_s7, %s9166_s9  ;;  %p9171_p11 = scmp.lt.s32.totalorder %s116_s7, %s116_s7 }
  0x29   :  { %p9172_p12 = scmp.lt.s32.totalorder %s9166_s9, %s9166_s9 }
  0x2b   :  { %89 = dma.hbm_to_vmem [thread:$0]  %s11014_s27, 16, %s87_s4, [#allocation9]  }
  0x2c   :  { %p9173_p13 = por %p9172_p12, %p9171_p11 }
  0x2e   :  { %p9174_p0 = pnand %p9173_p13, %p9167_p10 }
  0x30   :  { %9177 = shalt.err (!%p9174_p0)
}
  0x31   :  { %s9294_s28 = smov 16   ;;  %s9295_s30 = smov 1  }
  0x32   :  { %121 = dma.hbm_to_vmem [thread:$0]  %s10978_s12, 32, %s116_s7, [#allocation12], %s9294_s28, %s9294_s28, %s9295_s30  }
  0x33   :  { %s9186_s5 = scalar_lea.vmem %s44_s29, 256  ;;  %p9191_p2 = scmp.lt.s32.totalorder %s44_s29, %s44_s29 }
  0x34   :  { %p9187_p1 = scmp.ne.s32.totalorder %s44_s29, %s9186_s5  ;;  %p9192_p3 = scmp.lt.s32.totalorder %s9186_s5, %s9186_s5 }
  0x36   :  { %p9193_p4 = por %p9192_p3, %p9191_p2 }
  0x38   :  { %p9194_p5 = pnand %p9193_p4, %p9187_p1 }
  0x3a   :  { %9197 = shalt.err (!%p9194_p5)
}
  0x3b   :  { %s11015_s1 = sld [smem:[#allocation21_spill]]  ;;  %s9296_s27 = smov [#allocation7]  }
  0x3c   :  { %s73_s3 = sshll.u32 %s9296_s27, 4  ;;  %s9297_s8 = smov [#allocation10]   ;;  %s74_s3 = int_to_ptr.vmem [resolvable:$true] %s73_s3 }
  0x3d   :  { %s97_s9 = sshll.u32 %s9297_s8, 4  ;;  %s9206_s12 = scalar_lea.vmem %s74_s3, 512  ;;  %s98_s9 = int_to_ptr.vmem [resolvable:$true] %s97_s9 }
  0x3e   :  { %p9207_p6 = scmp.ne.s32.totalorder %s74_s3, %s9206_s12  ;;  %p9211_p7 = scmp.lt.s32.totalorder %s74_s3, %s74_s3 }
  0x3f   :  { %p9212_p8 = scmp.lt.s32.totalorder %s9206_s12, %s9206_s12 }
  0x41   :  { %49 = dma.hbm_to_vmem [thread:$0]  %s11015_s1, 256, %s44_s29, [#allocation4], %s9290_s25, %s9290_s25, %s9291_s0  }
  0x42   :  { %p9213_p9 = por %p9212_p8, %p9211_p7 }
  0x44   :  { %p9214_p10 = pnand %p9213_p9, %p9207_p6 }
  0x46   :  { %9217 = shalt.err (!%p9214_p10)
}
  0x47   :  { %s11016_s4 = sld [smem:[#allocation26_spill]]  ;;  %s9226_s29 = scalar_lea.vmem %s98_s9, 32 }
  0x48   :  { %p9227_p11 = scmp.ne.s32.totalorder %s98_s9, %s9226_s29  ;;  %p9231_p12 = scmp.lt.s32.totalorder %s98_s9, %s98_s9 }
  0x49   :  { %p9232_p13 = scmp.lt.s32.totalorder %s9226_s29, %s9226_s29 }
  0x4b   :  { %p9233_p0 = por %p9232_p13, %p9231_p12 }
  0x4d   :  { %79 = dma.hbm_to_vmem [thread:$0]  %s11016_s4, 512, %s74_s3, [#allocation6], %s9290_s25, %s9290_s25, %s9291_s0  }
  0x4e   :  { %p9234_p1 = pnand %p9233_p0, %p9227_p11 }
  0x50   :  { %9237 = shalt.err (!%p9234_p1)
}
  0x51   :  { %s11017_s6 = sld [smem:[#allocation29_spill]]  ;;  %s9298_s1 = smov [#allocation13]  }
  0x52   :  { %s131_s27 = sshll.u32 %s9298_s1, 4  ;;  %s9299_s8 = smov [#allocation14]   ;;  %s132_s27 = int_to_ptr.vmem [resolvable:$true] %s131_s27 }
  0x53   :  { %s158_s12 = sshll.u32 %s9299_s8, 4  ;;  %s9246_s25 = scalar_lea.vmem %s132_s27, 32  ;;  %s159_s12 = int_to_ptr.vmem [resolvable:$true] %s158_s12 }
  0x54   :  { %p9247_p2 = scmp.ne.s32.totalorder %s132_s27, %s9246_s25  ;;  %p9251_p3 = scmp.lt.s32.totalorder %s132_s27, %s132_s27 }
  0x55   :  { %p9252_p4 = scmp.lt.s32.totalorder %s9246_s25, %s9246_s25 }
  0x57   :  { %103 = dma.hbm_to_vmem [thread:$0]  %s11017_s6, 32, %s98_s9, [#allocation9], %s9294_s28, %s9294_s28, %s9295_s30  }
  0x58   :  { %p9253_p5 = por %p9252_p4, %p9251_p3 }
  0x5a   :  { %p9254_p6 = pnand %p9253_p5, %p9247_p2 }
  0x5c   :  { %9257 = shalt.err (!%p9254_p6)
}
  0x5d   :  { %137 = dma.hbm_to_vmem [thread:$0]  %s10981_s15, 32, %s132_s27, [#allocation12], %s9294_s28, %s9294_s28, %s9295_s30  }
  0x5e   :  { %s9266_s9 = scalar_lea.vmem %s159_s12, 16  ;;  %s9270_s2 = scalar_lea.vmem %s159_s12, 32 }
  0x5f   :  { %p9267_p7 = scmp.ne.s32.totalorder %s159_s12, %s9266_s9  ;;  %p9271_p8 = scmp.lt.s32.totalorder %s159_s12, %s159_s12 }
  0x60   :  { %p9272_p9 = scmp.lt.s32.totalorder %s9270_s2, %s9266_s9 }
  0x62   :  { %p9273_p10 = por %p9272_p9, %p9271_p8 }
  0x64   :  { %p9274_p11 = pnand %p9273_p10, %p9267_p7 }
  0x66   :  { %9277 = shalt.err (!%p9274_p11)
}
  0x67   :  { %161 = dma.hbm_to_vmem [thread:$0]  %s10989_s23, 16, %s159_s12, [#allocation15]  }
  0x68   :  { %9278 = dma.done.wait [#allocation4], 256  }
  0x69   :  { %9279 = vsyncadd [#allocation4], 4294967040 }
  0x6a   :  { %9280 = dma.done.wait [#allocation6], 768  }
  0x6b   :  { %9281 = vsyncadd [#allocation6], 4294966528 }
  0x6c   :  { %9282 = dma.done.wait [#allocation9], 48  }
  0x6d   :  { %9283 = vsyncadd [#allocation9], 4294967248 }
  0x6e   :  { %9284 = dma.done.wait [#allocation12], 64  }
  0x6f   :  { %9285 = vsyncadd [#allocation12], 4294967232 }
  0x70   :  { %9286 = dma.done.wait [#allocation15], 16  }
  0x71   :  { %9287 = vsyncadd [#allocation15], 4294967280  ;;  %vm221_vm0 = vcmask 261120   ;;  %v213_v1 = vld [vmem:[#allocation7 + $0x18] sm:$0xff]  ;;  %v212_v2 = vld [vmem:[#allocation7 + $0x10] sm:$0xff]  ;;  %s11018_s30 = sld [smem:[#allocation28_spill]] }
  0x72   :  { %8365 = vmatprep.subr.mxu0 %v213_v1  ;;  %v208_v3 = vld [vmem:[#allocation3] sm:$0xff]  ;;  %v211_v4 = vld [vmem:[#allocation7 + $0x8] sm:$0xff]  ;;  %v9300_v17 = vmov 0.0   ;;  %s11000_s12 = smov 112   ;;  %s9302_s25 = smov 120   ;;  %vm9303_vm1 = vmmov 0  }
  0x73   :  { %8366 = vmatpush3.msra.mxu0 %v213_v1  ;;  %8373 = vmatprep.mubr.msk.f32.mxu0 %vm221_vm0, %v208_v3  ;;  %v210_v6 = vld [vmem:[#allocation7] sm:$0xff]  ;;  %v209_v7 = vld [vmem:[#allocation3 + $0x8] sm:$0xff]  ;;  %s9304_s3 = smov 104   ;;  %s9305_s7 = smov 96   ;;  %vm417_vm2 = vcmask 64512   ;;  %vm1786_vm3 = vcmask 130048  }
  0x74   :  { %8367 = vmatprep.subr.mxu0 %v212_v2  ;;  %v7897_v12 = vld [vmem:[#allocation8] ss:$0 sm:$0xff]  ;;  %v7900_v18 = vld [vmem:[#allocation10] ss:$0 sm:$0xff]  ;;  %s11019_s4 = sld [smem:[#allocation23_spill]]  ;;  %s10998_s5 = smov 64  }
  0x75   :  { %8368 = vmatpush3.msra.mxu0 %v212_v2  ;;  %s11020_s1 = sld [smem:[#allocation30_spill]]  ;;  %s9307_s23 = smov 24   ;;  %vm1789_vm4 = vcmask 195584   ;;  %vm3748_vm13 = vcmask 523264  }
  0x76   :  { %8369 = vmatprep.subr.mxu0 %v211_v4  ;;  %s11021_s9 = sld [smem:[#allocation31_spill]]  ;;  %s11023_s29 = smov 112  }
  0x77   :  { %v308_v5 = vld [vmem:[%s11018_s30 + $0x18] sm:$0xff]  ;;  %8370 = vmatpush3.msra.mxu0 %v211_v4  ;;  %v307_v8 = vld [vmem:[%s11018_s30 + $0x10] sm:$0xff]  ;;  %v306_v9 = vld [vmem:[%s11018_s30 + $0x8] sm:$0xff]  ;;  %s11022_s8 = sld [smem:[#allocation24_spill]]  ;;  %s11024_s15 = smov 64  }
  0x78   :  { %8376 = vmatprep.subr.mxu1 %v308_v5  ;;  %8371 = vmatprep.subr.mxu0 %v210_v6  ;;  %v305_v10 = vld [vmem:[%s11018_s30] sm:$0xff] }
  0x79   :  { %8377 = vmatpush3.msra.mxu1 %v308_v5  ;;  %8372 = vmatpush3.msra.mxu0 %v210_v6 }
  0x7a   :  { %8374 = vmatmul.mubr.msk.f32.vlgmr.msra.gmra.mxu0 %vm221_vm0, %v209_v7  ;;  %8378 = vmatprep.subr.mxu1 %v307_v8  ;;  %v191_v36 = vld [vmem:[%s11019_s4 + $0x8] sm:$0xff]  ;;  %v190_v37 = vld [vmem:[%s11019_s4] sm:$0xff]  ;;  %v192_v54 = vld [vmem:[%s11019_s4 + $0x10] sm:$0xff] }
  0x7b   :  { %8379 = vmatpush3.msra.mxu1 %v307_v8  ;;  %8387 = vmatprep.subr.mxu0 %v9300_v17  ;;  %v7920_v38 = vadd.f32 -1.0, %v191_v36  ;;  %v7919_v39 = vadd.f32 -1.0, %v190_v37  ;;  %v193_v55 = vld [vmem:[%s11019_s4 + $0x18] sm:$0xff]  ;;  %v194_v56 = vld [vmem:[%s11019_s4 + $0x20] sm:$0xff]  ;;  %v7921_v57 = vadd.f32 -1.0, %v192_v54  ;;  %v195_v62 = vld [vmem:[%s11019_s4 + $0x28] sm:$0xff] }
  0x7c   :  { %8380 = vmatprep.subr.mxu1 %v306_v9  ;;  %8389 = vmatprep.mubr.msk.f32.mxu0 %vm9303_vm1, %v9300_v17  ;;  %v7923_v59 = vadd.f32 -1.0, %v194_v56  ;;  %v7922_v60 = vadd.f32 -1.0, %v193_v55  ;;  %v196_v63 = vld [vmem:[%s11019_s4 + $0x30] sm:$0xff]  ;;  %v7924_v8 = vadd.f32 -1.0, %v195_v62 }
  0x7d   :  { %8381 = vmatpush3.msra.mxu1 %v306_v9  ;;  %v9614_v43 = vmul.f32 1e+10, %v7920_v38  ;;  %v9616_v46 = vmul.f32 1e+10, %v7919_v39  ;;  %v9643_v0 = vmul.f32 1e+10, %v7921_v57 }
  0x7e   :  { %8382 = vmatprep.subr.mxu1 %v305_v10  ;;  %v9645_v5 = vmul.f32 1e+10, %v7923_v59  ;;  %v9647_v6 = vmul.f32 1e+10, %v7922_v60  ;;  %v7925_v7 = vadd.f32 -1.0, %v196_v63 }
  0x7f   :  { %8383 = vmatpush3.msra.mxu1 %v305_v10 }
  0x80   :  { %8392 = vmatprep.subr.mxu1 %v9300_v17 }
 0x13a   :  { %v8375_v11 = vpop.f32.mrf.mxu0 }
 0x13b   :  { %v9504_v15 = vadd.f32 %v8375_v11, %v7897_v12 }
 0x13c   :  { %v294_v13 = vpop.f32.mrf.mxu0 }
 0x13d   :  { %v9502_v14 = vadd.f32 %v7897_v12, %v294_v13  ;;  %v197_v12 = vld [vmem:[%s11019_s4 + $0x38] sm:$0xff] }
 0x13f   :  { %8384 = vmatprep.mubr.msk.f32.mxu1 %vm221_vm0, %v9502_v14 }
 0x140   :  { %8385 = vmatmul.mubr.msk.f32.vlgmr.msra.gmra.mxu1 %vm221_vm0, %v9504_v15 }
 0x141   :  { %8394 = vmatprep.mubr.msk.f32.mxu1 %vm9303_vm1, %v9300_v17 }
 0x200   :  { %v8386_v16 = vpop.f32.mrf.mxu1 }
 0x201   :  { %v9522_v21 = vadd.f32 %v8386_v16, %v7900_v18 }
 0x202   :  { %v388_v19 = vpop.f32.mrf.mxu1 }
 0x203   :  { %v9512_v20 = vadd.f32 %v7900_v18, %v388_v19 }
 0x205   :  { %403 = vrot.lane.b32.xlu1 %v9512_v20, %s11000_s12  ;;  %399 = vrot.lane.b32.xlu0 %v9512_v20, %s9302_s25 }
 0x209   :  { %405 = vrot.lane.b32.xlu1 %v9522_v21, %s11000_s12  ;;  %401 = vrot.lane.b32.xlu0 %v9522_v21, %s9302_s25 }
 0x20d   :  { %409 = vrot.lane.b32.xlu1 %v9522_v21, %s9304_s3  ;;  %407 = vrot.lane.b32.xlu0 %v9512_v20, %s9304_s3 }
 0x211   :  { %492 = vrot.lane.b32.xlu1 %v9522_v21, %s9305_s7  ;;  %415 = vrot.lane.b32.xlu0 %v9512_v20, %s9305_s7 }
 0x277   :  { %v9536_v22 = vpop.permute.xlu1 %403  ;;  %v9538_v23 = vpop.permute.xlu0 %399 }
 0x278   :  { %568 = vrot.lane.b32.xlu0 %v9538_v23, %s9305_s7 }
 0x27b   :  { %v9542_v24 = vpop.permute.xlu1 %405  ;;  %v9544_v25 = vpop.permute.xlu0 %401 }
 0x27c   :  { %720 = vrot.lane.b32.xlu0 %v9536_v22, %s9305_s7  ;;  %644 = vrot.lane.b32.xlu1 %v9544_v25, %s9305_s7 }
 0x27f   :  { %v9550_v26 = vpop.permute.xlu1 %409  ;;  %v9552_v27 = vpop.permute.xlu0 %407 }
 0x280   :  { %796 = vrot.lane.b32.xlu1 %v9542_v24, %s9305_s7  ;;  %872 = vrot.lane.b32.xlu0 %v9552_v27, %s9305_s7 }
 0x283   :  { %v493_v28 = vpop.permute.xlu1 %492  ;;  %v416_v29 = vpop.permute.xlu0 %415 }
 0x284   :  { %8393 = vmatpush3.xpose.msk.msra.mxu1 %vm417_vm2, %v493_v28  ;;  %948 = vrot.lane.b32.xlu1 %v9550_v26, %s9305_s7 }
 0x285   :  { %8388 = vmatpush3.xpose.msk.msra.mxu0 %vm417_vm2, %v416_v29  ;;  %8402 = vmatprep.subr.mxu1 %v9300_v17 }
 0x286   :  { %8397 = vmatprep.subr.mxu0 %v9300_v17 }
 0x287   :  { %8395 = vmatmul.mubr.msk.f32.vlgmr.msra.gmra.mxu1 %vm417_vm2, %v9522_v21 }
 0x288   :  { %8390 = vmatmul.mubr.msk.f32.vlgmr.msra.gmra.mxu0 %vm417_vm2, %v9512_v20  ;;  %8404 = vmatprep.mubr.msk.f32.mxu1 %vm9303_vm1, %v9300_v17 }
 0x289   :  { %8399 = vmatprep.mubr.msk.f32.mxu0 %vm9303_vm1, %v9300_v17 }
 0x2ea   :  { %v569_v30 = vpop.permute.xlu0 %568 }
 0x2eb   :  { %8398 = vmatpush3.xpose.msk.msra.mxu0 %vm417_vm2, %v569_v30 }
 0x2ec   :  { %8407 = vmatprep.subr.mxu0 %v9300_v17 }
 0x2ee   :  { %v645_v31 = vpop.permute.xlu1 %644  ;;  %8400 = vmatmul.mubr.msk.f32.vlgmr.msra.gmra.mxu0 %vm417_vm2, %v9538_v23  ;;  %v721_v32 = vpop.permute.xlu0 %720 }
 0x2ef   :  { %8403 = vmatpush3.xpose.msk.msra.mxu1 %vm417_vm2, %v645_v31  ;;  %8408 = vmatpush3.xpose.msk.msra.mxu0 %vm417_vm2, %v721_v32  ;;  %v9654_v31 = vmul.f32 1e+10, %v7925_v7  ;;  %v9656_v32 = vmul.f32 1e+10, %v7924_v8 }
 0x2f0   :  { %8409 = vmatprep.mubr.msk.f32.mxu0 %vm9303_vm1, %v9300_v17  ;;  %8412 = vmatprep.subr.mxu1 %v9300_v17 }
 0x2f1   :  { %8417 = vmatprep.subr.mxu0 %v9300_v17 }
 0x2f2   :  { %8405 = vmatmul.mubr.msk.f32.vlgmr.msra.gmra.mxu1 %vm417_vm2, %v9544_v25  ;;  %v797_v33 = vpop.permute.xlu1 %796  ;;  %8410 = vmatmul.mubr.msk.f32.vlgmr.msra.gmra.mxu0 %vm417_vm2, %v9536_v22  ;;  %v873_v34 = vpop.permute.xlu0 %872 }
 0x2f3   :  { %8413 = vmatpush3.xpose.msk.msra.mxu1 %vm417_vm2, %v797_v33  ;;  %8418 = vmatpush3.xpose.msk.msra.mxu0 %vm417_vm2, %v873_v34  ;;  %v7926_v33 = vadd.f32 -1.0, %v197_v12 }
 0x2f4   :  { %8414 = vmatprep.mubr.msk.f32.mxu1 %vm9303_vm1, %v9300_v17  ;;  %8419 = vmatprep.mubr.msk.f32.mxu0 %vm9303_vm1, %v9300_v17 }
 0x2f5   :  { %8422 = vmatprep.subr.mxu1 %v9300_v17  ;;  %8427 = vmatprep.subr.mxu0 %v9300_v17 }
 0x2f6   :  { %8415 = vmatmul.mubr.msk.f32.vlgmr.msra.gmra.mxu1 %vm417_vm2, %v9542_v24  ;;  %v949_v35 = vpop.permute.xlu1 %948  ;;  %8420 = vmatmul.mubr.msk.f32.vlgmr.msra.gmra.mxu0 %vm417_vm2, %v9552_v27 }
 0x2f7   :  { %8423 = vmatpush3.xpose.msk.msra.mxu1 %vm417_vm2, %v949_v35  ;;  %8424 = vmatprep.mubr.msk.f32.mxu1 %vm9303_vm1, %v9300_v17 }
 0x2f8   :  { %8432 = vmatprep.subr.mxu1 %v9300_v17  ;;  %8429 = vmatprep.mubr.msk.f32.mxu0 %vm9303_vm1, %v9300_v17 }
 0x2fa   :  { %8425 = vmatmul.mubr.msk.f32.vlgmr.msra.gmra.mxu1 %vm417_vm2, %v9550_v26 }
 0x2fb   :  { %8434 = vmatprep.mubr.msk.f32.mxu1 %vm9303_vm1, %v9300_v17 }
 0x347   :  { %v564_v40 = vpop.f32.mrf.mxu1 }
 0x348   :  { %v488_v41 = vpop.f32.mrf.mxu0  ;;  %v1025_v42 = vmul.f32 0.35355338, %v564_v40 }
 0x349   :  { %v1024_v44 = vmul.f32 0.35355338, %v488_v41  ;;  %v8396_v45 = vpop.f32.mrf.mxu1 }
 0x34a   :  { %v1033_v47 = vmul.f32 %v1025_v42, %v191_v36  ;;  %v8391_v48 = vpop.f32.mrf.mxu0 }
 0x34b   :  { %v1032_v49 = vmul.f32 %v1024_v44, %v190_v37 }
 0x34c   :  { %v9619_v50 = vadd.f32 %v9614_v43, %v1033_v47 }
 0x34d   :  { %v9622_v51 = vadd.f32 %v9616_v46, %v1032_v49 }
 0x34e   :  { %v1067_v52 = vsel %vm417_vm2, %v9619_v50, -inf }
 0x34f   :  { %1068 = vmax.xlane.f32.xlu1 %v1067_v52  ;;  %v1064_v53 = vsel %vm417_vm2, %v9622_v51, -inf  ;;  %v9664_v52 = vmul.f32 1e+10, %v7926_v33 }
 0x350   :  { %1065 = vmax.xlane.f32.xlu0 %v1064_v53 }
 0x3ae   :  { %v640_v58 = vpop.f32.mrf.mxu0 }
 0x3af   :  { %v1026_v61 = vmul.f32 0.35355338, %v640_v58 }
 0x3b0   :  { %v8401_v1 = vpop.f32.mrf.mxu0 }
 0x3b1   :  { %v1034_v2 = vmul.f32 %v1026_v61, %v192_v54 }
 0x3b2   :  { %v716_v3 = vpop.f32.mrf.mxu1  ;;  %v792_v4 = vpop.f32.mrf.mxu0 }
 0x3b3   :  { %v1027_v9 = vmul.f32 0.35355338, %v716_v3  ;;  %v1028_v10 = vmul.f32 0.35355338, %v792_v4  ;;  %v1058_v11 = vadd.f32 %v9643_v0, %v1034_v2 }
 0x3b4   :  { %v8406_v13 = vpop.f32.mrf.mxu1  ;;  %v8411_v16 = vpop.f32.mrf.mxu0 }
 0x3b5   :  { %v1035_v18 = vmul.f32 %v1027_v9, %v193_v55  ;;  %v1036_v19 = vmul.f32 %v1028_v10, %v194_v56  ;;  %v1070_v28 = vsel %vm417_vm2, %v1058_v11, -inf }
 0x3b6   :  { %v868_v29 = vpop.f32.mrf.mxu1  ;;  %v944_v30 = vpop.f32.mrf.mxu0  ;;  %1071 = vmax.xlane.f32.xlu0 %v1070_v28 }
 0x3b7   :  { %v1029_v34 = vmul.f32 0.35355338, %v868_v29  ;;  %v1030_v35 = vmul.f32 0.35355338, %v944_v30  ;;  %v1060_v36 = vadd.f32 %v9645_v5, %v1036_v19  ;;  %v1059_v37 = vadd.f32 %v9647_v6, %v1035_v18 }
 0x3b8   :  { %v8416_v38 = vpop.f32.mrf.mxu1  ;;  %v8421_v39 = vpop.f32.mrf.mxu0 }
 0x3b9   :  { %v1037_v40 = vmul.f32 %v1029_v34, %v195_v62  ;;  %v1038_v41 = vmul.f32 %v1030_v35, %v196_v63  ;;  %v1076_v42 = vsel %vm417_vm2, %v1060_v36, -inf  ;;  %v1073_v44 = vsel %vm417_vm2, %v1059_v37, -inf }
 0x3ba   :  { %v1020_v45 = vpop.f32.mrf.mxu1  ;;  %1077 = vmax.xlane.f32.xlu1 %v1076_v42  ;;  %1074 = vmax.xlane.f32.xlu0 %v1073_v44 }
 0x3bb   :  { %v1031_v47 = vmul.f32 0.35355338, %v1020_v45  ;;  %v1062_v48 = vadd.f32 %v9654_v31, %v1038_v41  ;;  %v1061_v49 = vadd.f32 %v9656_v32, %v1037_v40 }
 0x3bc   :  { %v8426_v53 = vpop.f32.mrf.mxu1 }
 0x3bd   :  { %v1039_v54 = vmul.f32 %v1031_v47, %v197_v12  ;;  %v1082_v55 = vsel %vm417_vm2, %v1062_v48, -inf  ;;  %v1079_v56 = vsel %vm417_vm2, %v1061_v49, -inf }
 0x3be   :  { %1083 = vmax.xlane.f32.xlu1 %v1082_v55  ;;  %1080 = vmax.xlane.f32.xlu0 %v1079_v56 }
 0x3bf   :  { %v1063_v57 = vadd.f32 %v9664_v52, %v1039_v54 }
 0x3c1   :  { %v1085_v58 = vsel %vm417_vm2, %v1063_v57, -inf }
 0x3c2   :  { %1086 = vmax.xlane.f32.xlu0 %v1085_v58 }
 0x3cf   :  { %1152 = vrot.lane.b32.xlu1 %v9512_v20, %s10998_s5 }
 0x3d3   :  { %1304 = vrot.lane.b32.xlu1 %v9538_v23, %s10998_s5 }
 0x3d7   :  { %1380 = vrot.lane.b32.xlu1 %v9544_v25, %s10998_s5 }
 0x3d8   :  { %1228 = vrot.lane.b32.xlu0 %v9522_v21, %s10998_s5  ;;  %v1069_v59 = vpop.xlane.xlu1 %1068 }
 0x3d9   :  { %v1089_v60 = vsub.f32 %v9619_v50, %v1069_v59  ;;  %v1066_v61 = vpop.xlane.xlu0 %1065 }
 0x3da   :  { %v1088_v62 = vsub.f32 %v9622_v51, %v1066_v61 }
 0x3db   :  { %1532 = vrot.lane.b32.xlu1 %v9542_v24, %s10998_s5  ;;  %v1098_v20 = vmul.f32 1.442695, %v1089_v60 }
 0x3dc   :  { %1456 = vrot.lane.b32.xlu0 %v9536_v22, %s10998_s5  ;;  %v1096_v23 = vmul.f32 1.442695, %v1088_v62 }
 0x3dd   :  { %8923 = vpow2.f32 %v1098_v20 }
 0x3de   :  { %8925 = vpow2.f32 %v1096_v23 }
 0x3ea   :  { %v9684_v25 = vpop.eup %8923 }
 0x3eb   :  { %v1115_v21 = vsel %vm417_vm2, %v9684_v25, 0.0  ;;  %v9688_v63 = vpop.eup %8925 }
 0x3ec   :  { %v1112_v22 = vsel %vm417_vm2, %v9688_v63, 0.0 }
 0x3fb   :  { %1116 = vadd.xlane.f32.xlu0 %v1115_v21 }
 0x3ff   :  { %1113 = vadd.xlane.f32.xlu1 %v1112_v22 }
 0x43f   :  { %v1072_v24 = vpop.xlane.xlu0 %1071 }
 0x440   :  { %v1090_v50 = vsub.f32 %v1058_v11, %v1072_v24 }
 0x442   :  { %v1100_v1 = vmul.f32 1.442695, %v1090_v50 }
 0x443   :  { %v1078_v2 = vpop.xlane.xlu1 %1077  ;;  %v1075_v51 = vpop.xlane.xlu0 %1074 }
 0x444   :  { %8927 = vpow2.f32 %v1100_v1  ;;  %v1092_v3 = vsub.f32 %v1060_v36, %v1078_v2  ;;  %v1091_v4 = vsub.f32 %v1059_v37, %v1075_v51 }
 0x446   :  { %v1104_v7 = vmul.f32 1.442695, %v1092_v3  ;;  %v1102_v8 = vmul.f32 1.442695, %v1091_v4 }
 0x447   :  { %v1084_v9 = vpop.xlane.xlu1 %1083  ;;  %v1081_v10 = vpop.xlane.xlu0 %1080 }
 0x448   :  { %8929 = vpow2.f32 %v1104_v7  ;;  %v1094_v12 = vsub.f32 %v1062_v48, %v1084_v9  ;;  %v1093_v13 = vsub.f32 %v1061_v49, %v1081_v10 }
 0x449   :  { %8931 = vpow2.f32 %v1102_v8 }
 0x44a   :  { %v1108_v16 = vmul.f32 1.442695, %v1094_v12  ;;  %v1106_v18 = vmul.f32 1.442695, %v1093_v13 }
 0x44b   :  { %v1153_v19 = vpop.permute.xlu1 %1152  ;;  %v1087_v28 = vpop.xlane.xlu0 %1086 }
 0x44c   :  { %8933 = vpow2.f32 %v1108_v16  ;;  %v1095_v11 = vsub.f32 %v1063_v57, %v1087_v28  ;;  %8428 = vmatpush3.msra.mxu0 %v1153_v19  ;;  %v414_v16 = vld [vmem:[%s11020_s1 + $0x18] sm:$0xff]  ;;  %v412_v19 = vld [vmem:[%s11020_s1 + $0x8] sm:$0xff] }
 0x44d   :  { %8935 = vpow2.f32 %v1106_v18  ;;  %8437 = vmatprep.subr.mxu0 %v9300_v17  ;;  %v413_v18 = vld [vmem:[%s11020_s1 + $0x10] sm:$0xff] }
 0x44e   :  { %v1110_v29 = vmul.f32 1.442695, %v1095_v11  ;;  %v411_v11 = vld [vmem:[%s11020_s1] sm:$0xff] }
 0x44f   :  { %v1229_v30 = vpop.permute.xlu0 %1228  ;;  %v1305_v47 = vpop.permute.xlu1 %1304 }
 0x450   :  { %8937 = vpow2.f32 %v1110_v29  ;;  %8433 = vmatpush3.msra.mxu1 %v1229_v30 }
 0x451   :  { %v8928_v33 = vpop.eup %8927  ;;  %8442 = vmatprep.subr.mxu1 %v9300_v17 }
 0x452   :  { %v1118_v34 = vsel %vm417_vm2, %v8928_v33, 0.0 }
 0x453   :  { %1119 = vadd.xlane.f32.xlu1 %v1118_v34  ;;  %v1381_v48 = vpop.permute.xlu1 %1380  ;;  %v1457_v49 = vpop.permute.xlu0 %1456 }
 0x455   :  { %v8930_v35 = vpop.eup %8929 }
 0x456   :  { %v8932_v36 = vpop.eup %8931  ;;  %v1124_v37 = vsel %vm417_vm2, %v8930_v35, 0.0 }
 0x457   :  { %1125 = vadd.xlane.f32.xlu1 %v1124_v37  ;;  %v1121_v38 = vsel %vm417_vm2, %v8932_v36, 0.0  ;;  %v1533_v53 = vpop.permute.xlu1 %1532 }
 0x458   :  { %1122 = vadd.xlane.f32.xlu0 %v1121_v38 }
 0x459   :  { %v8934_v39 = vpop.eup %8933 }
 0x45a   :  { %v9697_v40 = vpop.eup %8935  ;;  %v1130_v41 = vsel %vm417_vm2, %v8934_v39, 0.0 }
 0x45b   :  { %1131 = vadd.xlane.f32.xlu1 %v1130_v41  ;;  %v1127_v42 = vsel %vm417_vm2, %v9697_v40, 0.0 }
 0x45c   :  { %1128 = vadd.xlane.f32.xlu0 %v1127_v42 }
 0x45d   :  { %v9702_v44 = vpop.eup %8937 }
 0x45e   :  { %v1133_v45 = vsel %vm417_vm2, %v9702_v44, 0.0 }
 0x460   :  { %1134 = vadd.xlane.f32.xlu0 %v1133_v45 }
 0x46c   :  { %1684 = vrot.lane.b32.xlu1 %v9550_v26, %s10998_s5 }
 0x476   :  { %1608 = vrot.lane.b32.xlu0 %v9552_v27, %s10998_s5 }
 0x484   :  { %v1117_v54 = vpop.xlane.xlu0 %1116 }
 0x485   :  { %8939 = vrcp.f32 %v1117_v54 }
 0x488   :  { %v1114_v55 = vpop.xlane.xlu1 %1113 }
 0x489   :  { %8941 = vrcp.f32 %v1114_v55 }
 0x492   :  { %v8940_v56 = vpop.eup %8939 }
 0x493   :  { %v1145_v57 = vmul.f32 %v8940_v56, %v9684_v25 }
 0x495   :  { %8435 = vmatmul.mubr.msk.f32.vlgmr.msra.gmra.mxu1 %vm417_vm2, %v1145_v57 }
 0x496   :  { %v8942_v58 = vpop.eup %8941  ;;  %8443 = vmatpush3.msra.mxu1 %v1381_v48  ;;  %8444 = vmatprep.mubr.msk.f32.mxu1 %vm9303_vm1, %v9300_v17 }
 0x497   :  { %v1144_v26 = vmul.f32 %v8942_v58, %v9688_v63  ;;  %8452 = vmatprep.subr.mxu1 %v9300_v17 }
 0x499   :  { %8430 = vmatmul.mubr.msk.f32.vlgmr.msra.gmra.mxu0 %vm417_vm2, %v1144_v26  ;;  %v1792_v26 = vlaneseq }
 0x49a   :  { %8438 = vmatpush3.msra.mxu0 %v1305_v47  ;;  %8439 = vmatprep.mubr.msk.f32.mxu0 %vm9303_vm1, %v9300_v17 }
 0x49b   :  { %8447 = vmatprep.subr.mxu0 %v9300_v17 }
 0x4dc   :  { %v1120_v27 = vpop.xlane.xlu1 %1119 }
 0x4dd   :  { %8943 = vrcp.f32 %v1120_v27  ;;  %v9764_v27 = vshrl.u32 %v1792_v26, 7 }
 0x4e0   :  { %v1126_v59 = vpop.xlane.xlu1 %1125 }
 0x4e1   :  { %8945 = vrcp.f32 %v1126_v59  ;;  %v1123_v60 = vpop.xlane.xlu0 %1122  ;;  %v9767_v59 = vsub.s32 0, %v9764_v27 }
 0x4e2   :  { %8947 = vrcp.f32 %v1123_v60  ;;  %v9772_v60 = vld [vmem:[%s10983_s17] sm:$0xff] }
 0x4e4   :  { %v1132_v61 = vpop.xlane.xlu1 %1131 }
 0x4e5   :  { %8949 = vrcp.f32 %v1132_v61  ;;  %v1129_v20 = vpop.xlane.xlu0 %1128  ;;  %v1795_v61 = vrot.slane %v9772_v60, %v9767_v59 }
 0x4e6   :  { %8951 = vrcp.f32 %v1129_v20 }
 0x4e8   :  { %v1685_v4 = vpop.permute.xlu1 %1684 }
 0x4e9   :  { %v1135_v62 = vpop.xlane.xlu0 %1134 }
 0x4ea   :  { %v8944_v23 = vpop.eup %8943  ;;  %8953 = vrcp.f32 %v1135_v62 }
 0x4eb   :  { %v1146_v25 = vmul.f32 %v8944_v23, %v8928_v33 }
 0x4ed   :  { %8440 = vmatmul.mubr.msk.f32.vlgmr.msra.gmra.mxu0 %vm417_vm2, %v1146_v25  ;;  %v1609_v50 = vpop.permute.xlu0 %1608 }
 0x4ee   :  { %v8946_v21 = vpop.eup %8945  ;;  %8448 = vmatpush3.msra.mxu0 %v1457_v49  ;;  %8449 = vmatprep.mubr.msk.f32.mxu0 %vm9303_vm1, %v9300_v17 }
 0x4ef   :  { %v8948_v63 = vpop.eup %8947  ;;  %8457 = vmatprep.subr.mxu0 %v9300_v17  ;;  %v1148_v22 = vmul.f32 %v8946_v21, %v8930_v35 }
 0x4f0   :  { %v1147_v24 = vmul.f32 %v8948_v63, %v8932_v36 }
 0x4f1   :  { %8450 = vmatmul.mubr.msk.f32.vlgmr.msra.gmra.mxu0 %vm417_vm2, %v1148_v22 }
 0x4f2   :  { %v8950_v1 = vpop.eup %8949  ;;  %8445 = vmatmul.mubr.msk.f32.vlgmr.msra.gmra.mxu1 %vm417_vm2, %v1147_v24  ;;  %8458 = vmatpush3.msra.mxu0 %v1609_v50 }
 0x4f3   :  { %v8952_v2 = vpop.eup %8951  ;;  %8453 = vmatpush3.msra.mxu1 %v1533_v53  ;;  %8454 = vmatprep.mubr.msk.f32.mxu1 %vm9303_vm1, %v9300_v17  ;;  %v1150_v51 = vmul.f32 %v8950_v1, %v8934_v39 }
 0x4f4   :  { %8459 = vmatprep.mubr.msk.f32.mxu0 %vm9303_vm1, %v9300_v17  ;;  %8462 = vmatprep.subr.mxu1 %v9300_v17  ;;  %v1149_v3 = vmul.f32 %v8952_v2, %v9697_v40 }
 0x4f5   :  { %8460 = vmatmul.mubr.msk.f32.vlgmr.msra.gmra.mxu0 %vm417_vm2, %v1150_v51  ;;  %8467 = vmatprep.subr.mxu0 %v414_v16 }
 0x4f6   :  { %8455 = vmatmul.mubr.msk.f32.vlgmr.msra.gmra.mxu1 %vm417_vm2, %v1149_v3  ;;  %8468 = vmatpush3.msra.mxu0 %v414_v16  ;;  %v206_v16 = vld [vmem:[#allocation5] sm:$0xff] }
 0x4f7   :  { %v8954_v7 = vpop.eup %8953  ;;  %8463 = vmatpush3.msra.mxu1 %v1685_v4  ;;  %8464 = vmatprep.mubr.msk.f32.mxu1 %vm9303_vm1, %v9300_v17 }
 0x4f8   :  { %v1151_v8 = vmul.f32 %v8954_v7, %v9702_v44  ;;  %8469 = vmatprep.subr.mxu0 %v413_v18 }
 0x4f9   :  { %8470 = vmatpush3.msra.mxu0 %v413_v18  ;;  %v207_v18 = vld [vmem:[#allocation5 + $0x8] sm:$0xff] }
 0x4fa   :  { %8465 = vmatmul.mubr.msk.f32.vlgmr.msra.gmra.mxu1 %vm417_vm2, %v1151_v8  ;;  %8471 = vmatprep.subr.mxu0 %v412_v19 }
 0x4fb   :  { %8472 = vmatpush3.msra.mxu0 %v412_v19  ;;  %v1935_v19 = vld [vmem:[%s11021_s9 + $0x18] sm:$0xff] }
 0x4fc   :  { %8473 = vmatprep.subr.mxu0 %v411_v11  ;;  %8478 = vmatprep.subr.mxu1 %v1935_v19 }
 0x4fd   :  { %8474 = vmatpush3.msra.mxu0 %v411_v11  ;;  %8479 = vmatpush3.msra.mxu1 %v1935_v19  ;;  %v1933_v11 = vld [vmem:[%s11021_s9 + $0x8] sm:$0xff] }
 0x555   :  { %v1300_v9 = vpop.f32.mrf.mxu1 }
 0x557   :  { %v8436_v10 = vpop.f32.mrf.mxu1 }
 0x558   :  { %v2023_v10 = vld [vmem:[%s10977_s11 + $0x10] sm:$0xff] }
 0x559   :  { %v1224_v12 = vpop.f32.mrf.mxu0 }
 0x55b   :  { %v8431_v13 = vpop.f32.mrf.mxu0 }
 0x55c   :  { %v2021_v13 = vld [vmem:[%s10977_s11] sm:$0xff] }
 0x5ad   :  { %v1376_v28 = vpop.f32.mrf.mxu0 }
 0x5ae   :  { %1762 = vrot.lane.b32.xlu0 %v1376_v28, %s9291_s0  ;;  %v1934_v28 = vld [vmem:[%s11021_s9 + $0x10] sm:$0xff] }
 0x5af   :  { %v8441_v29 = vpop.f32.mrf.mxu0  ;;  %8480 = vmatprep.subr.mxu1 %v1934_v28 }
 0x5b0   :  { %8481 = vmatpush3.msra.mxu1 %v1934_v28  ;;  %v1932_v29 = vld [vmem:[%s11021_s9] sm:$0xff] }
 0x5b1   :  { %v1528_v30 = vpop.f32.mrf.mxu0  ;;  %8482 = vmatprep.subr.mxu1 %v1933_v11 }
 0x5b2   :  { %v1452_v33 = vpop.f32.mrf.mxu1  ;;  %1770 = vrot.lane.b32.xlu0 %v1528_v30, %s9294_s28  ;;  %8483 = vmatpush3.msra.mxu1 %v1933_v11 }
 0x5b3   :  { %1764 = vrot.lane.b32.xlu1 %v1452_v33, %s9291_s0  ;;  %v8451_v34 = vpop.f32.mrf.mxu0  ;;  %8484 = vmatprep.subr.mxu1 %v1932_v29 }
 0x5b4   :  { %v8446_v35 = vpop.f32.mrf.mxu1  ;;  %8485 = vmatpush3.msra.mxu1 %v1932_v29  ;;  %v198_v29 = vld [vmem:[%s11022_s8] sm:$0xff] }
 0x5b5   :  { %v1680_v36 = vpop.f32.mrf.mxu0  ;;  %8500 = vmatprep.subr.mxu1 %v9300_v17 }
 0x5b6   :  { %v1604_v37 = vpop.f32.mrf.mxu1  ;;  %1778 = vrot.lane.b32.xlu0 %v1680_v36, %s9307_s23 }
 0x5b7   :  { %1772 = vrot.lane.b32.xlu1 %v1604_v37, %s9294_s28  ;;  %v8461_v38 = vpop.f32.mrf.mxu0 }
 0x5b8   :  { %v8456_v39 = vpop.f32.mrf.mxu1 }
 0x5ba   :  { %v1756_v40 = vpop.f32.mrf.mxu1 }
 0x5bb   :  { %1780 = vrot.lane.b32.xlu1 %v1756_v40, %s9307_s23 }
 0x5bc   :  { %v8466_v41 = vpop.f32.mrf.mxu1 }
 0x620   :  { %v1763_v42 = vpop.permute.xlu0 %1762 }
 0x621   :  { %v1784_v47 = vsel %vm417_vm2, %v1224_v12, %v1763_v42  ;;  %v2022_v12 = vld [vmem:[%s10977_s11 + $0x8] sm:$0xff] }
 0x624   :  { %v1771_v44 = vpop.permute.xlu0 %1770 }
 0x625   :  { %v1765_v45 = vpop.permute.xlu1 %1764  ;;  %v1787_v48 = vsel %vm1786_vm3, %v1784_v47, %v1771_v44 }
 0x626   :  { %v1785_v55 = vsel %vm417_vm2, %v1300_v9, %v1765_v45  ;;  %v2024_v9 = vld [vmem:[%s10977_s11 + $0x18] sm:$0xff] }
 0x627   :  { %8489 = vmatprep.subr.mxu0 %v2024_v9 }
 0x628   :  { %v1779_v49 = vpop.permute.xlu0 %1778 }
 0x629   :  { %v1773_v53 = vpop.permute.xlu1 %1772  ;;  %v1790_v54 = vsel %vm1789_vm4, %v1787_v48, %v1779_v49 }
 0x62a   :  { %8475 = vmatprep.mubr.msk.f32.mxu0 %vm221_vm0, %v1790_v54  ;;  %v1788_v56 = vsel %vm1786_vm3, %v1785_v55, %v1773_v53  ;;  %v1922_v53 = vsub.s32 4, %v9764_v27  ;;  %v1928_v54 = vsub.s32 5, %v9764_v27 }
 0x62c   :  { %v1923_v55 = vrot.slane %v9772_v60, %v1922_v53 }
 0x62d   :  { %v1781_v57 = vpop.permute.xlu1 %1780 }
 0x62e   :  { %v1791_v58 = vsel %vm1789_vm4, %v1788_v56, %v1781_v57 }
 0x62f   :  { %8476 = vmatmul.mubr.msk.f32.vlgmr.msra.gmra.mxu0 %vm221_vm0, %v1791_v58  ;;  %v1929_v58 = vrot.slane %v9772_v60, %v1928_v54 }
 0x630   :  { %8490 = vmatpush3.msra.mxu0 %v2024_v9  ;;  %8497 = vmatprep.mubr.msk.f32.mxu0 %vm221_vm0, %v206_v16 }
 0x631   :  { %8491 = vmatprep.subr.mxu0 %v2023_v10 }
 0x632   :  { %8492 = vmatpush3.msra.mxu0 %v2023_v10 }
 0x633   :  { %8493 = vmatprep.subr.mxu0 %v2022_v12 }
 0x634   :  { %8494 = vmatpush3.msra.mxu0 %v2022_v12 }
 0x635   :  { %8495 = vmatprep.subr.mxu0 %v2021_v13 }
 0x636   :  { %8496 = vmatpush3.msra.mxu0 %v2021_v13 }
 0x637   :  { %8498 = vmatmul.mubr.msk.f32.vlgmr.msra.gmra.mxu0 %vm221_vm0, %v207_v18  ;;  %8510 = vmatprep.subr.mxu0 %v9300_v17 }
 0x638   :  { %8512 = vmatprep.mubr.msk.f32.mxu0 %vm9303_vm1, %v9300_v17 }
 0x6ef   :  { %v8477_v20 = vpop.f32.mrf.mxu0 }
 0x6f0   :  { %v1874_v62 = vadd.f32 %v8477_v20, %v1795_v61 }
 0x6f1   :  { %v1868_v23 = vpop.f32.mrf.mxu0 }
 0x6f2   :  { %v1869_v25 = vadd.f32 %v1868_v23, %v1795_v61  ;;  %v1878_v21 = vadd.f32 %v1874_v62, %v9504_v15 }
 0x6f4   :  { %v1882_v63 = vsel %vm221_vm0, %v1878_v21, 0.0  ;;  %v1877_v22 = vadd.f32 %v1869_v25, %v9502_v14 }
 0x6f5   :  { %1883 = vadd.xlane.f32.xlu1 %v1882_v63 }
 0x6f6   :  { %v1879_v24 = vsel %vm221_vm0, %v1877_v22, 0.0 }
 0x6f7   :  { %1880 = vadd.xlane.f32.xlu0 %v1879_v24  ;;  %v8499_v63 = vpop.f32.mrf.mxu0 }
 0x6f9   :  { %v2104_v24 = vpop.f32.mrf.mxu0 }
 0x77e   :  { %v1884_v50 = vpop.xlane.xlu1 %1883 }
 0x77f   :  { %v1887_v1 = vmul.f32 0.03125, %v1884_v50 }
 0x780   :  { %v1881_v2 = vpop.xlane.xlu0 %1880 }
 0x781   :  { %v1886_v51 = vmul.f32 0.03125, %v1881_v2  ;;  %v9780_v3 = vsub.f32 %v1878_v21, %v1887_v1  ;;  %v7939_v21 = vld [vmem:[#allocation11] ss:$0 sm:$0xff]  ;;  %v9863_v2 = vsub.s32 1, %v9764_v27 }
 0x782   :  { %v9844_v50 = vadd.f32 %v7939_v21, %v2104_v24 }
 0x783   :  { %v9782_v4 = vsub.f32 %v1877_v22, %v1886_v51  ;;  %v1891_v14 = vmul.f32 %v9780_v3, %v9780_v3  ;;  %v9840_v22 = vadd.f32 %v8499_v63, %v7939_v21  ;;  %v1939_v51 = vrot.slane %v9772_v60, %v9863_v2  ;;  %v203_v21 = vld [vmem:[%s11022_s8 + $0x28] sm:$0xff] }
 0x784   :  { %2129 = vrot.lane.b32.xlu1 %v9844_v50, %s9302_s25 }
 0x785   :  { %v1890_v7 = vmul.f32 %v9782_v4, %v9782_v4  ;;  %v1895_v8 = vsel %vm221_vm0, %v1891_v14, 0.0 }
 0x787   :  { %v1892_v15 = vsel %vm221_vm0, %v1890_v7, 0.0 }
 0x788   :  { %1893 = vadd.xlane.f32.xlu0 %v1892_v15  ;;  %2135 = vrot.lane.b32.xlu1 %v9840_v22, %s11000_s12 }
 0x78c   :  { %1896 = vadd.xlane.f32.xlu0 %v1895_v8 }
 0x7a2   :  { %2131 = vrot.lane.b32.xlu0 %v9840_v22, %s9302_s25 }
 0x7a6   :  { %2133 = vrot.lane.b32.xlu0 %v9844_v50, %s11000_s12 }
 0x7aa   :  { %2137 = vrot.lane.b32.xlu0 %v9844_v50, %s9304_s3 }
 0x7f6   :  { %v9857_v1 = vpop.permute.xlu1 %2129 }
 0x7f7   :  { %8511 = vmatpush3.xpose.msk.msra.mxu0 %vm417_vm2, %v9857_v1 }
 0x7f8   :  { %8520 = vmatprep.subr.mxu0 %v9300_v17 }
 0x7fa   :  { %v9891_v9 = vpop.permute.xlu1 %2135 }
 0x811   :  { %v1894_v30 = vpop.xlane.xlu0 %1893 }
 0x812   :  { %v1898_v33 = vmul.f32 0.032258064, %v1894_v30  ;;  %v7958_v30 = vadd.f32 -1.0, %v198_v29 }
 0x814   :  { %8955 = vrsqrt.f32 %v1898_v33  ;;  %vm1902_vm5 = vcmp.eq.f32.partialorder %v1898_v33, inf  ;;  %v1905_v38 = vand.u32 2147483648, %v1898_v33  ;;  %vm1904_vm6 = vcmp.eq.f32.partialorder %v1898_v33, 0.0 }
 0x815   :  { %v1897_v34 = vpop.xlane.xlu0 %1896 }
 0x816   :  { %v1899_v35 = vmul.f32 0.032258064, %v1897_v34 }
 0x818   :  { %8957 = vrsqrt.f32 %v1899_v35  ;;  %vm1909_vm7 = vcmp.eq.f32.partialorder %v1899_v35, inf  ;;  %v1912_v45 = vand.u32 2147483648, %v1899_v35  ;;  %vm1911_vm8 = vcmp.eq.f32.partialorder %v1899_v35, 0.0 }
 0x819   :  { %v9878_v14 = vpop.permute.xlu0 %2131 }
 0x81d   :  { %v9889_v8 = vpop.permute.xlu0 %2133 }
 0x821   :  { %v8956_v36 = vpop.eup %8955  ;;  %v9894_v12 = vpop.permute.xlu0 %2137 }
 0x822   :  { %v1901_v37 = vmul.f32 %v8956_v36, %v1898_v33  ;;  %v9933_v36 = vmul.f32 1e+10, %v7958_v30 }
 0x824   :  { %v1903_v39 = vsel %vm1902_vm5, %v1898_v33, %v1901_v37  ;;  %v199_v33 = vld [vmem:[%s11022_s8 + $0x8] sm:$0xff] }
 0x825   :  { %v8958_v40 = vpop.eup %8957  ;;  %v1906_v41 = vsel %vm1904_vm6, %v1905_v38, %v1903_v39  ;;  %v7959_v37 = vadd.f32 -1.0, %v199_v33 }
 0x826   :  { %v1914_v42 = vadd.f32 1e-12, %v1906_v41  ;;  %v1908_v44 = vmul.f32 %v8958_v40, %v1899_v35 }
 0x828   :  { %8959 = vrcp.f32 %v1914_v42  ;;  %v1910_v47 = vsel %vm1909_vm7, %v1899_v35, %v1908_v44  ;;  %v9938_v44 = vmul.f32 1e+10, %v7959_v37 }
 0x829   :  { %v1913_v48 = vsel %vm1911_vm8, %v1912_v45, %v1910_v47 }
 0x82a   :  { %v1915_v49 = vadd.f32 1e-12, %v1913_v48 }
 0x82c   :  { %8961 = vrcp.f32 %v1915_v49 }
 0x835   :  { %v8960_v56 = vpop.eup %8959 }
 0x836   :  { %v1918_v57 = vmul.f32 %v8960_v56, %v9782_v4  ;;  %v200_v56 = vld [vmem:[%s11022_s8 + $0x10] sm:$0xff] }
 0x838   :  { %v1924_v26 = vmul.f32 %v1923_v55, %v1918_v57  ;;  %v201_v57 = vld [vmem:[%s11022_s8 + $0x18] sm:$0xff] }
 0x839   :  { %v8962_v61 = vpop.eup %8961  ;;  %v7961_v63 = vadd.f32 -1.0, %v201_v57 }
 0x83a   :  { %v1919_v20 = vmul.f32 %v8962_v61, %v9780_v3  ;;  %v9830_v62 = vadd.f32 %v1929_v58, %v1924_v26  ;;  %v202_v26 = vld [vmem:[%s11022_s8 + $0x20] sm:$0xff]  ;;  %v7960_v61 = vadd.f32 -1.0, %v200_v56 }
 0x83c   :  { %v1925_v23 = vmul.f32 %v1923_v55, %v1919_v20  ;;  %8486 = vmatprep.mubr.msk.f32.mxu1 %vm221_vm0, %v9830_v62 }
 0x83e   :  { %v9834_v25 = vadd.f32 %v1929_v58, %v1925_v23 }
 0x840   :  { %8487 = vmatmul.mubr.msk.f32.vlgmr.msra.gmra.mxu1 %vm221_vm0, %v9834_v25 }
 0x841   :  { %8502 = vmatprep.mubr.msk.f32.mxu1 %vm9303_vm1, %v9300_v17  ;;  %8501 = vmatpush3.xpose.msk.msra.mxu1 %vm417_vm2, %v9844_v50 }
 0x842   :  { %8505 = vmatprep.subr.mxu1 %v9300_v17 }
 0x900   :  { %v8488_v3 = vpop.f32.mrf.mxu1 }
 0x901   :  { %v2018_v4 = vadd.f32 %v8488_v3, %v1939_v51 }
 0x902   :  { %v2012_v7 = vpop.f32.mrf.mxu1 }
 0x903   :  { %v2013_v15 = vadd.f32 %v2012_v7, %v1939_v51  ;;  %2117 = vrot.lane.b32.xlu1 %v2018_v4, %s9302_s25  ;;  %v7962_v51 = vadd.f32 -1.0, %v202_v26 }
 0x905   :  { %2119 = vrot.lane.b32.xlu0 %v2013_v15, %s11000_s12  ;;  %8503 = vmatmul.mubr.msk.f32.vlgmr.msra.gmra.mxu1 %vm417_vm2, %v2013_v15 }
 0x906   :  { %8506 = vmatpush3.xpose.msk.msra.mxu1 %vm417_vm2, %v9840_v22  ;;  %8507 = vmatprep.mubr.msk.f32.mxu1 %vm9303_vm1, %v9300_v17 }
 0x907   :  { %2115 = vrot.lane.b32.xlu1 %v2013_v15, %s9302_s25  ;;  %8515 = vmatprep.subr.mxu1 %v9300_v17 }
 0x909   :  { %2123 = vrot.lane.b32.xlu0 %v2013_v15, %s9304_s3  ;;  %8508 = vmatmul.mubr.msk.f32.vlgmr.msra.gmra.mxu1 %vm417_vm2, %v2018_v4  ;;  %v204_v15 = vld [vmem:[%s11022_s8 + $0x30] sm:$0xff] }
 0x90a   :  { %8516 = vmatpush3.xpose.msk.msra.mxu1 %vm417_vm2, %v9878_v14  ;;  %8517 = vmatprep.mubr.msk.f32.mxu1 %vm9303_vm1, %v9300_v17 }
 0x90b   :  { %2121 = vrot.lane.b32.xlu1 %v2018_v4, %s11000_s12  ;;  %8525 = vmatprep.subr.mxu1 %v9300_v17 }
 0x90f   :  { %2139 = vrot.lane.b32.xlu1 %v9840_v22, %s9304_s3 }
 0x913   :  { %2125 = vrot.lane.b32.xlu1 %v2018_v4, %s9304_s3  ;;  %v9959_v4 = vmul.f32 1e+10, %v7960_v61 }
 0x975   :  { %v2118_v10 = vpop.permute.xlu1 %2117 }
 0x976   :  { %8518 = vmatmul.mubr.msk.f32.vlgmr.msra.gmra.mxu1 %vm417_vm2, %v2118_v10  ;;  %v7963_v10 = vadd.f32 -1.0, %v203_v21 }
 0x977   :  { %8526 = vmatpush3.xpose.msk.msra.mxu1 %vm417_vm2, %v9891_v9  ;;  %8527 = vmatprep.mubr.msk.f32.mxu1 %vm9303_vm1, %v9300_v17  ;;  %v2120_v16 = vpop.permute.xlu0 %2119 }
 0x978   :  { %8535 = vmatprep.subr.mxu1 %v9300_v17 }
 0x979   :  { %v2116_v13 = vpop.permute.xlu1 %2115 }
 0x97a   :  { %8513 = vmatmul.mubr.msk.f32.vlgmr.msra.gmra.mxu0 %vm417_vm2, %v2116_v13 }
 0x97b   :  { %8521 = vmatpush3.xpose.msk.msra.mxu0 %vm417_vm2, %v9889_v8  ;;  %8522 = vmatprep.mubr.msk.f32.mxu0 %vm9303_vm1, %v9300_v17  ;;  %v2124_v19 = vpop.permute.xlu0 %2123 }
 0x97c   :  { %8530 = vmatprep.subr.mxu0 %v9300_v17 }
 0x97d   :  { %v2122_v18 = vpop.permute.xlu1 %2121 }
 0x97e   :  { %8523 = vmatmul.mubr.msk.f32.vlgmr.msra.gmra.mxu0 %vm417_vm2, %v2120_v16  ;;  %8528 = vmatmul.mubr.msk.f32.vlgmr.msra.gmra.mxu1 %vm417_vm2, %v2122_v18  ;;  %v9964_v18 = vmul.f32 1e+10, %v7961_v63 }
 0x97f   :  { %8531 = vmatpush3.xpose.msk.msra.mxu0 %vm417_vm2, %v9894_v12  ;;  %8532 = vmatprep.mubr.msk.f32.mxu0 %vm9303_vm1, %v9300_v17 }
 0x980   :  { %8537 = vmatprep.mubr.msk.f32.mxu1 %vm9303_vm1, %v9300_v17  ;;  %8540 = vmatprep.subr.mxu0 %v9300_v17 }
 0x981   :  { %v9916_v28 = vpop.permute.xlu1 %2139 }
 0x982   :  { %8533 = vmatmul.mubr.msk.f32.vlgmr.msra.gmra.mxu0 %vm417_vm2, %v2124_v19  ;;  %8536 = vmatpush3.xpose.msk.msra.mxu1 %vm417_vm2, %v9916_v28 }
 0x983   :  { %8545 = vmatprep.subr.mxu1 %v9300_v17  ;;  %8542 = vmatprep.mubr.msk.f32.mxu0 %vm9303_vm1, %v9300_v17 }
 0x985   :  { %v2126_v11 = vpop.permute.xlu1 %2125 }
 0x986   :  { %8538 = vmatmul.mubr.msk.f32.vlgmr.msra.gmra.mxu1 %vm417_vm2, %v2126_v11 }
 0x987   :  { %8547 = vmatprep.mubr.msk.f32.mxu1 %vm9303_vm1, %v9300_v17 }
 0x9c5   :  { %v2215_v34 = vpop.f32.mrf.mxu1 }
 0x9c6   :  { %v2737_v35 = vmul.f32 0.35355338, %v2215_v34 }
 0x9c7   :  { %v8504_v38 = vpop.f32.mrf.mxu1 }
 0x9c8   :  { %v2745_v39 = vmul.f32 %v2737_v35, %v198_v29  ;;  %v9966_v29 = vmul.f32 1e+10, %v7962_v51  ;;  %v7964_v35 = vadd.f32 -1.0, %v204_v15 }
 0x9c9   :  { %v2289_v40 = vpop.f32.mrf.mxu1 }
 0x9ca   :  { %v2738_v41 = vmul.f32 0.35355338, %v2289_v40  ;;  %v9936_v42 = vadd.f32 %v9933_v36, %v2745_v39  ;;  %v205_v39 = vld [vmem:[%s11022_s8 + $0x38] sm:$0xff]  ;;  %v9972_v40 = vmul.f32 1e+10, %v7963_v10 }
 0x9cb   :  { %v8509_v45 = vpop.f32.mrf.mxu1  ;;  %v7965_v61 = vadd.f32 -1.0, %v205_v39 }
 0x9cc   :  { %v2746_v47 = vmul.f32 %v2738_v41, %v199_v33  ;;  %v2777_v48 = vsel %vm417_vm2, %v9936_v42, -inf }
 0x9cd   :  { %2778 = vmax.xlane.f32.xlu0 %v2777_v48 }
 0x9ce   :  { %v9943_v49 = vadd.f32 %v9938_v44, %v2746_v47 }
 0x9d0   :  { %v2780_v55 = vsel %vm417_vm2, %v9943_v49, -inf }
 0x9d1   :  { %2781 = vmax.xlane.f32.xlu1 %v2780_v55 }
 0xa36   :  { %v2437_v58 = vpop.f32.mrf.mxu1 }
 0xa37   :  { %v2740_v23 = vmul.f32 0.35355338, %v2437_v58  ;;  %v9977_v58 = vmul.f32 1e+10, %v7964_v35 }
 0xa38   :  { %v8519_v20 = vpop.f32.mrf.mxu1 }
 0xa39   :  { %v2748_v13 = vmul.f32 %v2740_v23, %v201_v57 }
 0xa3a   :  { %v2363_v24 = vpop.f32.mrf.mxu0 }
 0xa3b   :  { %v2739_v3 = vmul.f32 0.35355338, %v2363_v24  ;;  %v2772_v48 = vadd.f32 %v9964_v18, %v2748_v13 }
 0xa3c   :  { %v8514_v7 = vpop.f32.mrf.mxu0 }
 0xa3d   :  { %v2747_v16 = vmul.f32 %v2739_v3, %v200_v56  ;;  %v2786_v63 = vsel %vm417_vm2, %v2772_v48, -inf  ;;  %v9983_v7 = vmul.f32 1e+10, %v7965_v61 }
 0xa3e   :  { %v2511_v19 = vpop.f32.mrf.mxu0  ;;  %v2585_v11 = vpop.f32.mrf.mxu1 }
 0xa3f   :  { %v2741_v30 = vmul.f32 0.35355338, %v2511_v19  ;;  %v2742_v33 = vmul.f32 0.35355338, %v2585_v11  ;;  %v2771_v34 = vadd.f32 %v9959_v4, %v2747_v16 }
 0xa40   :  { %v8524_v37 = vpop.f32.mrf.mxu0  ;;  %v8529_v38 = vpop.f32.mrf.mxu1 }
 0xa41   :  { %v2749_v41 = vmul.f32 %v2741_v30, %v202_v26  ;;  %v2750_v45 = vmul.f32 %v2742_v33, %v203_v21  ;;  %v2783_v47 = vsel %vm417_vm2, %v2771_v34, -inf }
 0xa42   :  { %2784 = vmax.xlane.f32.xlu0 %v2783_v47  ;;  %v2659_v55 = vpop.f32.mrf.mxu0 }
 0xa43   :  { %v2743_v56 = vmul.f32 0.35355338, %v2659_v55  ;;  %v2773_v57 = vadd.f32 %v9966_v29, %v2749_v41  ;;  %v2774_v26 = vadd.f32 %v9972_v40, %v2750_v45 }
 0xa44   :  { %v8534_v20 = vpop.f32.mrf.mxu0 }
 0xa45   :  { %v2751_v23 = vmul.f32 %v2743_v56, %v204_v15  ;;  %v2789_v24 = vsel %vm417_vm2, %v2773_v57, -inf  ;;  %v2792_v16 = vsel %vm417_vm2, %v2774_v26, -inf }
 0xa46   :  { %2787 = vmax.xlane.f32.xlu0 %v2786_v63  ;;  %v2733_v21 = vpop.f32.mrf.mxu1  ;;  %2790 = vmax.xlane.f32.xlu1 %v2789_v24 }
 0xa47   :  { %v2744_v51 = vmul.f32 0.35355338, %v2733_v21  ;;  %v2775_v3 = vadd.f32 %v9977_v58, %v2751_v23 }
 0xa48   :  { %v8539_v10 = vpop.f32.mrf.mxu1 }
 0xa49   :  { %v2752_v13 = vmul.f32 %v2744_v51, %v205_v39  ;;  %v2795_v15 = vsel %vm417_vm2, %v2775_v3, -inf }
 0xa4a   :  { %2793 = vmax.xlane.f32.xlu0 %v2792_v16  ;;  %2796 = vmax.xlane.f32.xlu1 %v2795_v15 }
 0xa4b   :  { %v2776_v19 = vadd.f32 %v9983_v7, %v2752_v13 }
 0xa4d   :  { %v2798_v11 = vsel %vm417_vm2, %v2776_v19, -inf }
 0xa4e   :  { %2799 = vmax.xlane.f32.xlu0 %v2798_v11 }
 0xa56   :  { %v2779_v35 = vpop.xlane.xlu0 %2778 }
 0xa5a   :  { %v2782_v30 = vpop.xlane.xlu1 %2781 }
 0xa5b   :  { %2865 = vrot.lane.b32.xlu1 %v9844_v50, %s9305_s7  ;;  %v2802_v33 = vsub.f32 %v9943_v49, %v2782_v30  ;;  %v2801_v50 = vsub.f32 %v9936_v42, %v2779_v35 }
 0xa5d   :  { %v2811_v37 = vmul.f32 1.442695, %v2802_v33 }
 0xa5f   :  { %3017 = vrot.lane.b32.xlu1 %v9857_v1, %s9305_s7  ;;  %v2809_v1 = vmul.f32 1.442695, %v2801_v50  ;;  %8963 = vpow2.f32 %v2811_v37 }
 0xa61   :  { %8965 = vpow2.f32 %v2809_v1 }
 0xa63   :  { %3093 = vrot.lane.b32.xlu1 %v9878_v14, %s9305_s7 }
 0xa64   :  { %2941 = vrot.lane.b32.xlu0 %v9840_v22, %s9305_s7 }
 0xa67   :  { %3245 = vrot.lane.b32.xlu1 %v9891_v9, %s9305_s7 }
 0xa68   :  { %3169 = vrot.lane.b32.xlu0 %v9889_v8, %s9305_s7 }
 0xa6c   :  { %v10003_v14 = vpop.eup %8963 }
 0xa6d   :  { %v2828_v22 = vsel %vm417_vm2, %v10003_v14, 0.0 }
 0xa6e   :  { %v10007_v38 = vpop.eup %8965 }
 0xa6f   :  { %v2825_v8 = vsel %vm417_vm2, %v10007_v38, 0.0 }
 0xa87   :  { %2829 = vadd.xlane.f32.xlu0 %v2828_v22 }
 0xa8b   :  { %2826 = vadd.xlane.f32.xlu1 %v2825_v8 }
 0xacb   :  { %v2785_v9 = vpop.xlane.xlu0 %2784 }
 0xacc   :  { %v2803_v49 = vsub.f32 %v2771_v34, %v2785_v9 }
 0xace   :  { %v2813_v39 = vmul.f32 1.442695, %v2803_v49 }
 0xacf   :  { %v2791_v42 = vpop.xlane.xlu1 %2790  ;;  %v2788_v41 = vpop.xlane.xlu0 %2787 }
 0xad0   :  { %8967 = vpow2.f32 %v2813_v39  ;;  %v2805_v45 = vsub.f32 %v2773_v57, %v2791_v42  ;;  %v2804_v47 = vsub.f32 %v2772_v48, %v2788_v41 }
 0xad2   :  { %v2817_v55 = vmul.f32 1.442695, %v2805_v45  ;;  %v2815_v56 = vmul.f32 1.442695, %v2804_v47 }
 0xad3   :  { %v2797_v61 = vpop.xlane.xlu1 %2796  ;;  %v2794_v20 = vpop.xlane.xlu0 %2793 }
 0xad4   :  { %8969 = vpow2.f32 %v2817_v55  ;;  %v2807_v23 = vsub.f32 %v2775_v3, %v2797_v61  ;;  %v2806_v63 = vsub.f32 %v2774_v26, %v2794_v20 }
 0xad5   :  { %8971 = vpow2.f32 %v2815_v56 }
 0xad6   :  { %v2821_v24 = vmul.f32 1.442695, %v2807_v23  ;;  %v2819_v21 = vmul.f32 1.442695, %v2806_v63 }
 0xad7   :  { %v2866_v51 = vpop.permute.xlu1 %2865  ;;  %v2800_v10 = vpop.xlane.xlu0 %2799 }
 0xad8   :  { %8973 = vpow2.f32 %v2821_v24  ;;  %v2808_v34 = vsub.f32 %v2776_v19, %v2800_v10  ;;  %8541 = vmatpush3.msra.mxu0 %v2866_v51 }
 0xad9   :  { %8975 = vpow2.f32 %v2819_v21  ;;  %8550 = vmatprep.subr.mxu0 %v9300_v17 }
 0xada   :  { %v2823_v57 = vmul.f32 1.442695, %v2808_v34 }
 0xadb   :  { %v2942_v48 = vpop.permute.xlu0 %2941  ;;  %v3018_v1 = vpop.permute.xlu1 %3017 }
 0xadc   :  { %8977 = vpow2.f32 %v2823_v57  ;;  %8546 = vmatpush3.msra.mxu1 %v2942_v48 }
 0xadd   :  { %v8968_v13 = vpop.eup %8967  ;;  %8555 = vmatprep.subr.mxu1 %v9300_v17 }
 0xade   :  { %v2831_v26 = vsel %vm417_vm2, %v8968_v13, 0.0 }
 0xadf   :  { %2832 = vadd.xlane.f32.xlu1 %v2831_v26  ;;  %v3094_v22 = vpop.permute.xlu1 %3093  ;;  %v3170_v8 = vpop.permute.xlu0 %3169 }
 0xae1   :  { %v8970_v3 = vpop.eup %8969 }
 0xae2   :  { %v8972_v16 = vpop.eup %8971  ;;  %v2837_v15 = vsel %vm417_vm2, %v8970_v3, 0.0 }
 0xae3   :  { %2838 = vadd.xlane.f32.xlu1 %v2837_v15  ;;  %v2834_v19 = vsel %vm417_vm2, %v8972_v16, 0.0  ;;  %v3246_v9 = vpop.permute.xlu1 %3245 }
 0xae4   :  { %2835 = vadd.xlane.f32.xlu0 %v2834_v19 }
 0xae5   :  { %v8974_v11 = vpop.eup %8973 }
 0xae6   :  { %v10016_v30 = vpop.eup %8975  ;;  %v2843_v33 = vsel %vm417_vm2, %v8974_v11, 0.0 }
 0xae7   :  { %2844 = vadd.xlane.f32.xlu1 %v2843_v33  ;;  %v2840_v35 = vsel %vm417_vm2, %v10016_v30, 0.0  ;;  %v2143_v33 = vld [vmem:[%s10979_s13 + $0x10] sm:$0xff] }
 0xae8   :  { %2841 = vadd.xlane.f32.xlu0 %v2840_v35  ;;  %v2142_v35 = vld [vmem:[%s10979_s13 + $0x8] sm:$0xff] }
 0xae9   :  { %v10021_v50 = vpop.eup %8977 }
 0xaea   :  { %v2846_v37 = vsel %vm417_vm2, %v10021_v50, 0.0 }
 0xaec   :  { %2847 = vadd.xlane.f32.xlu0 %v2846_v37  ;;  %v2141_v37 = vld [vmem:[%s10979_s13] sm:$0xff] }
 0xaf8   :  { %3397 = vrot.lane.b32.xlu1 %v9916_v28, %s9305_s7 }
 0xb02   :  { %3321 = vrot.lane.b32.xlu0 %v9894_v12, %s9305_s7 }
 0xb10   :  { %v2830_v49 = vpop.xlane.xlu0 %2829 }
 0xb11   :  { %8979 = vrcp.f32 %v2830_v49 }
 0xb14   :  { %v2827_v39 = vpop.xlane.xlu1 %2826 }
 0xb15   :  { %8981 = vrcp.f32 %v2827_v39 }
 0xb1e   :  { %v8980_v42 = vpop.eup %8979 }
 0xb1f   :  { %v2858_v41 = vmul.f32 %v8980_v42, %v10003_v14 }
 0xb21   :  { %8548 = vmatmul.mubr.msk.f32.vlgmr.msra.gmra.mxu1 %vm417_vm2, %v2858_v41 }
 0xb22   :  { %v8982_v45 = vpop.eup %8981  ;;  %8556 = vmatpush3.msra.mxu1 %v3094_v22  ;;  %8557 = vmatprep.mubr.msk.f32.mxu1 %vm9303_vm1, %v9300_v17 }
 0xb23   :  { %v2857_v12 = vmul.f32 %v8982_v45, %v10007_v38  ;;  %8565 = vmatprep.subr.mxu1 %v9300_v17 }
 0xb25   :  { %8543 = vmatmul.mubr.msk.f32.vlgmr.msra.gmra.mxu0 %vm417_vm2, %v2857_v12 }
 0xb26   :  { %8551 = vmatpush3.msra.mxu0 %v3018_v1  ;;  %8552 = vmatprep.mubr.msk.f32.mxu0 %vm9303_vm1, %v9300_v17 }
 0xb27   :  { %8560 = vmatprep.subr.mxu0 %v9300_v17 }
 0xb68   :  { %v2833_v28 = vpop.xlane.xlu1 %2832 }
 0xb69   :  { %8983 = vrcp.f32 %v2833_v28 }
 0xb6c   :  { %v2839_v14 = vpop.xlane.xlu1 %2838 }
 0xb6d   :  { %8985 = vrcp.f32 %v2839_v14  ;;  %v2836_v47 = vpop.xlane.xlu0 %2835 }
 0xb6e   :  { %8987 = vrcp.f32 %v2836_v47 }
 0xb70   :  { %v2845_v55 = vpop.xlane.xlu1 %2844 }
 0xb71   :  { %8989 = vrcp.f32 %v2845_v55  ;;  %v2842_v56 = vpop.xlane.xlu0 %2841 }
 0xb72   :  { %8991 = vrcp.f32 %v2842_v56 }
 0xb75   :  { %v2848_v38 = vpop.xlane.xlu0 %2847 }
 0xb76   :  { %v8984_v61 = vpop.eup %8983  ;;  %8993 = vrcp.f32 %v2848_v38 }
 0xb77   :  { %v2859_v20 = vmul.f32 %v8984_v61, %v8968_v13  ;;  %v3398_v13 = vpop.permute.xlu1 %3397 }
 0xb79   :  { %8553 = vmatmul.mubr.msk.f32.vlgmr.msra.gmra.mxu0 %vm417_vm2, %v2859_v20  ;;  %v3322_v51 = vpop.permute.xlu0 %3321 }
 0xb7a   :  { %v8986_v23 = vpop.eup %8985  ;;  %8561 = vmatpush3.msra.mxu0 %v3170_v8  ;;  %8562 = vmatprep.mubr.msk.f32.mxu0 %vm9303_vm1, %v9300_v17 }
 0xb7b   :  { %v8988_v63 = vpop.eup %8987  ;;  %8570 = vmatprep.subr.mxu0 %v9300_v17  ;;  %v2861_v24 = vmul.f32 %v8986_v23, %v8970_v3 }
 0xb7c   :  { %v2860_v21 = vmul.f32 %v8988_v63, %v8972_v16 }
 0xb7d   :  { %8563 = vmatmul.mubr.msk.f32.vlgmr.msra.gmra.mxu0 %vm417_vm2, %v2861_v24 }
 0xb7e   :  { %v8990_v10 = vpop.eup %8989  ;;  %8558 = vmatmul.mubr.msk.f32.vlgmr.msra.gmra.mxu1 %vm417_vm2, %v2860_v21  ;;  %8571 = vmatpush3.msra.mxu0 %v3322_v51 }
 0xb7f   :  { %v8992_v34 = vpop.eup %8991  ;;  %8566 = vmatpush3.msra.mxu1 %v3246_v9  ;;  %8567 = vmatprep.mubr.msk.f32.mxu1 %vm9303_vm1, %v9300_v17  ;;  %v2863_v57 = vmul.f32 %v8990_v10, %v8974_v11  ;;  %v3505_v10 = vsub.s32 2, %v9764_v27 }
 0xb80   :  { %8572 = vmatprep.mubr.msk.f32.mxu0 %vm9303_vm1, %v9300_v17  ;;  %8575 = vmatprep.subr.mxu1 %v9300_v17  ;;  %v2862_v48 = vmul.f32 %v8992_v34, %v10016_v30  ;;  %v2144_v30 = vld [vmem:[%s10979_s13 + $0x18] sm:$0xff] }
 0xb81   :  { %8573 = vmatmul.mubr.msk.f32.vlgmr.msra.gmra.mxu0 %vm417_vm2, %v2863_v57  ;;  %8580 = vmatprep.subr.mxu0 %v2144_v30  ;;  %v3506_v34 = vrot.slane %v9772_v60, %v3505_v10 }
 0xb82   :  { %8568 = vmatmul.mubr.msk.f32.vlgmr.msra.gmra.mxu1 %vm417_vm2, %v2862_v48  ;;  %8581 = vmatpush3.msra.mxu0 %v2144_v30 }
 0xb83   :  { %v8994_v26 = vpop.eup %8993  ;;  %8576 = vmatpush3.msra.mxu1 %v3398_v13  ;;  %8577 = vmatprep.mubr.msk.f32.mxu1 %vm9303_vm1, %v9300_v17 }
 0xb84   :  { %v2864_v3 = vmul.f32 %v8994_v26, %v10021_v50  ;;  %8582 = vmatprep.subr.mxu0 %v2143_v33 }
 0xb85   :  { %8583 = vmatpush3.msra.mxu0 %v2143_v33 }
 0xb86   :  { %8578 = vmatmul.mubr.msk.f32.vlgmr.msra.gmra.mxu1 %vm417_vm2, %v2864_v3  ;;  %8584 = vmatprep.subr.mxu0 %v2142_v35 }
 0xb87   :  { %8585 = vmatpush3.msra.mxu0 %v2142_v35 }
 0xb88   :  { %8586 = vmatprep.subr.mxu0 %v2141_v37 }
 0xb89   :  { %8587 = vmatpush3.msra.mxu0 %v2141_v37 }
 0xbe1   :  { %v3013_v16 = vpop.f32.mrf.mxu1 }
 0xbe3   :  { %v8549_v15 = vpop.f32.mrf.mxu1 }
 0xbe5   :  { %v2937_v19 = vpop.f32.mrf.mxu0 }
 0xbe7   :  { %v8544_v11 = vpop.f32.mrf.mxu0 }
 0xc39   :  { %v3089_v50 = vpop.f32.mrf.mxu0 }
 0xc3a   :  { %3475 = vrot.lane.b32.xlu0 %v3089_v50, %s9291_s0 }
 0xc3b   :  { %v8554_v1 = vpop.f32.mrf.mxu0 }
 0xc3d   :  { %v3241_v22 = vpop.f32.mrf.mxu0 }
 0xc3e   :  { %v3165_v8 = vpop.f32.mrf.mxu1  ;;  %3483 = vrot.lane.b32.xlu0 %v3241_v22, %s9294_s28 }
 0xc3f   :  { %3477 = vrot.lane.b32.xlu1 %v3165_v8, %s9291_s0  ;;  %v8564_v9 = vpop.f32.mrf.mxu0  ;;  %v3645_v8 = vld [vmem:[%s10980_s14 + $0x18] sm:$0xff] }
 0xc40   :  { %v8559_v49 = vpop.f32.mrf.mxu1  ;;  %v3644_v9 = vld [vmem:[%s10980_s14 + $0x10] sm:$0xff]  ;;  %8591 = vmatprep.subr.mxu1 %v3645_v8 }
 0xc41   :  { %v3393_v39 = vpop.f32.mrf.mxu0  ;;  %8592 = vmatpush3.msra.mxu1 %v3645_v8  ;;  %v3643_v49 = vld [vmem:[%s10980_s14 + $0x8] sm:$0xff] }
 0xc42   :  { %v3317_v42 = vpop.f32.mrf.mxu1  ;;  %3491 = vrot.lane.b32.xlu0 %v3393_v39, %s9307_s23  ;;  %8593 = vmatprep.subr.mxu1 %v3644_v9  ;;  %v3642_v39 = vld [vmem:[%s10980_s14] sm:$0xff] }
 0xc43   :  { %3485 = vrot.lane.b32.xlu1 %v3317_v42, %s9294_s28  ;;  %v8574_v41 = vpop.f32.mrf.mxu0  ;;  %8594 = vmatpush3.msra.mxu1 %v3644_v9  ;;  %v3743_v42 = vld [vmem:[%s10982_s16 + $0x38] sm:$0xff] }
 0xc44   :  { %v8569_v45 = vpop.f32.mrf.mxu1  ;;  %8595 = vmatprep.subr.mxu1 %v3643_v49  ;;  %v3742_v41 = vld [vmem:[%s10982_s16 + $0x30] sm:$0xff]  ;;  %8602 = vmatprep.subr.mxu0 %v3743_v42 }
 0xc45   :  { %8596 = vmatpush3.msra.mxu1 %v3643_v49  ;;  %v3741_v45 = vld [vmem:[%s10982_s16 + $0x28] sm:$0xff] }
 0xc46   :  { %v3469_v12 = vpop.f32.mrf.mxu1  ;;  %8597 = vmatprep.subr.mxu1 %v3642_v39 }
 0xc47   :  { %3493 = vrot.lane.b32.xlu1 %v3469_v12, %s9307_s23  ;;  %8598 = vmatpush3.msra.mxu1 %v3642_v39  ;;  %v3740_v12 = vld [vmem:[%s10982_s16 + $0x20] sm:$0xff] }
 0xc48   :  { %v8579_v28 = vpop.f32.mrf.mxu1 }
 0xcac   :  { %v3476_v14 = vpop.permute.xlu0 %3475 }
 0xcad   :  { %v3497_v56 = vsel %vm417_vm2, %v2937_v19, %v3476_v14 }
 0xcb0   :  { %v3484_v47 = vpop.permute.xlu0 %3483 }
 0xcb1   :  { %v3478_v55 = vpop.permute.xlu1 %3477  ;;  %v3499_v38 = vsel %vm1786_vm3, %v3497_v56, %v3484_v47 }
 0xcb2   :  { %v3498_v63 = vsel %vm417_vm2, %v3013_v16, %v3478_v55 }
 0xcb4   :  { %v3492_v61 = vpop.permute.xlu0 %3491 }
 0xcb5   :  { %v3486_v20 = vpop.permute.xlu1 %3485  ;;  %v3501_v23 = vsel %vm1789_vm4, %v3499_v38, %v3492_v61 }
 0xcb6   :  { %8588 = vmatprep.mubr.msk.f32.mxu0 %vm221_vm0, %v3501_v23  ;;  %v3500_v24 = vsel %vm1786_vm3, %v3498_v63, %v3486_v20 }
 0xcb9   :  { %v3494_v21 = vpop.permute.xlu1 %3493 }
 0xcba   :  { %v3502_v51 = vsel %vm1789_vm4, %v3500_v24, %v3494_v21 }
 0xcbb   :  { %8589 = vmatmul.mubr.msk.f32.vlgmr.msra.gmra.mxu0 %vm221_vm0, %v3502_v51 }
 0xcbc   :  { %8603 = vmatpush3.msra.mxu0 %v3743_v42 }
 0xcbd   :  { %8604 = vmatprep.subr.mxu0 %v3742_v41 }
 0xcbe   :  { %8605 = vmatpush3.msra.mxu0 %v3742_v41 }
 0xcbf   :  { %8606 = vmatprep.subr.mxu0 %v3741_v45 }
 0xcc0   :  { %8607 = vmatpush3.msra.mxu0 %v3741_v45  ;;  %v3746_v45 = vsub.s32 3, %v9764_v27 }
 0xcc1   :  { %8608 = vmatprep.subr.mxu0 %v3740_v12 }
 0xcc2   :  { %8609 = vmatpush3.msra.mxu0 %v3740_v12  ;;  %v9099_v12 = vld [vmem:[%s10983_s17] sm:$0xff] }
 0xd7b   :  { %v8590_v57 = vpop.f32.mrf.mxu0 }
 0xd7c   :  { %v3585_v48 = vadd.f32 %v8590_v57, %v3506_v34 }
 0xd7d   :  { %v3579_v13 = vpop.f32.mrf.mxu0 }
 0xd7e   :  { %v3580_v26 = vadd.f32 %v3579_v13, %v3506_v34  ;;  %v3589_v3 = vadd.f32 %v3585_v48, %v9834_v25  ;;  %v3632_v13 = vsub.s32 6, %v9764_v27 }
 0xd80   :  { %v3593_v16 = vsel %vm221_vm0, %v3589_v3, 0.0  ;;  %v3588_v15 = vadd.f32 %v3580_v26, %v9830_v62  ;;  %v3638_v26 = vsub.s32 7, %v9764_v27 }
 0xd81   :  { %3594 = vadd.xlane.f32.xlu1 %v3593_v16 }
 0xd82   :  { %v3590_v19 = vsel %vm221_vm0, %v3588_v15, 0.0 }
 0xd83   :  { %3591 = vadd.xlane.f32.xlu0 %v3590_v19  ;;  %v3639_v19 = vrot.slane %v9772_v60, %v3638_v26 }
 0xe0a   :  { %v3595_v11 = vpop.xlane.xlu1 %3594 }
 0xe0b   :  { %v3597_v30 = vmul.f32 0.03125, %v3595_v11 }
 0xe0c   :  { %v3592_v33 = vpop.xlane.xlu0 %3591 }
 0xe0d   :  { %v3596_v35 = vmul.f32 0.03125, %v3592_v33  ;;  %v10091_v50 = vsub.f32 %v3589_v3, %v3597_v30  ;;  %v3633_v3 = vrot.slane %v9772_v60, %v3632_v13  ;;  %v3738_v60 = vld [vmem:[%s10982_s16 + $0x10] sm:$0xff] }
 0xe0f   :  { %v3598_v37 = vsub.f32 %v3588_v15, %v3596_v35  ;;  %v3601_v25 = vmul.f32 %v10091_v50, %v10091_v50 }
 0xe11   :  { %v3600_v1 = vmul.f32 %v3598_v37, %v3598_v37  ;;  %v3605_v62 = vsel %vm221_vm0, %v3601_v25, 0.0  ;;  %v3739_v25 = vld [vmem:[%s10982_s16 + $0x18] sm:$0xff] }
 0xe12   :  { %8610 = vmatprep.subr.mxu0 %v3739_v25 }
 0xe13   :  { %v3602_v22 = vsel %vm221_vm0, %v3600_v1, 0.0  ;;  %8611 = vmatpush3.msra.mxu0 %v3739_v25 }
 0xe14   :  { %3603 = vadd.xlane.f32.xlu0 %v3602_v22  ;;  %8612 = vmatprep.subr.mxu0 %v3738_v60 }
 0xe15   :  { %8613 = vmatpush3.msra.mxu0 %v3738_v60 }
 0xe18   :  { %3606 = vadd.xlane.f32.xlu0 %v3605_v62  ;;  %v7976_v62 = vld [vmem:[#allocation13] ss:$0 sm:$0xff] }
 0xe9d   :  { %v3604_v28 = vpop.xlane.xlu0 %3603 }
 0xe9e   :  { %v3608_v14 = vmul.f32 0.032258064, %v3604_v28  ;;  %v3747_v28 = vrot.slane %v9099_v12, %v3746_v45 }
 0xea0   :  { %8995 = vrsqrt.f32 %v3608_v14  ;;  %vm3612_vm9 = vcmp.eq.f32.partialorder %v3608_v14, inf  ;;  %v3615_v61 = vand.u32 2147483648, %v3608_v14  ;;  %vm3614_vm10 = vcmp.eq.f32.partialorder %v3608_v14, 0.0 }
 0xea1   :  { %v3607_v47 = vpop.xlane.xlu0 %3606 }
 0xea2   :  { %v3609_v55 = vmul.f32 0.032258064, %v3607_v47 }
 0xea4   :  { %8997 = vrsqrt.f32 %v3609_v55  ;;  %vm3619_vm11 = vcmp.eq.f32.partialorder %v3609_v55, inf  ;;  %v3622_v51 = vand.u32 2147483648, %v3609_v55  ;;  %vm3621_vm12 = vcmp.eq.f32.partialorder %v3609_v55, 0.0 }
 0xead   :  { %v8996_v56 = vpop.eup %8995 }
 0xeae   :  { %v3611_v38 = vmul.f32 %v8996_v56, %v3608_v14 }
 0xeb0   :  { %v3613_v20 = vsel %vm3612_vm9, %v3608_v14, %v3611_v38 }
 0xeb1   :  { %v8998_v23 = vpop.eup %8997  ;;  %v3616_v63 = vsel %vm3614_vm10, %v3615_v61, %v3613_v20 }
 0xeb2   :  { %v3624_v24 = vadd.f32 1e-12, %v3616_v63  ;;  %v3618_v21 = vmul.f32 %v8998_v23, %v3609_v55 }
 0xeb4   :  { %8999 = vrcp.f32 %v3624_v24  ;;  %v3620_v34 = vsel %vm3619_vm11, %v3609_v55, %v3618_v21 }
 0xeb5   :  { %v3623_v57 = vsel %vm3621_vm12, %v3622_v51, %v3620_v34 }
 0xeb6   :  { %v3625_v48 = vadd.f32 1e-12, %v3623_v57 }
 0xeb8   :  { %9001 = vrcp.f32 %v3625_v48 }
 0xec1   :  { %v9000_v16 = vpop.eup %8999 }
 0xec2   :  { %v3628_v15 = vmul.f32 %v9000_v16, %v3598_v37  ;;  %v3736_v37 = vld [vmem:[%s10982_s16] sm:$0xff] }
 0xec4   :  { %v3634_v11 = vmul.f32 %v3633_v3, %v3628_v15 }
 0xec5   :  { %v9002_v30 = vpop.eup %9001 }
 0xec6   :  { %v3629_v33 = vmul.f32 %v9002_v30, %v10091_v50  ;;  %v3640_v35 = vadd.f32 %v3639_v19, %v3634_v11  ;;  %v3737_v50 = vld [vmem:[%s10982_s16 + $0x8] sm:$0xff]  ;;  %v7985_v11 = vld [vmem:[%s11018_s30 + $0x30] sm:$0xff] }
 0xec7   :  { %8614 = vmatprep.subr.mxu0 %v3737_v50  ;;  %v7984_v30 = vld [vmem:[%s11018_s30 + $0x28] sm:$0xff] }
 0xec8   :  { %v3635_v1 = vmul.f32 %v3633_v3, %v3629_v33  ;;  %8599 = vmatprep.mubr.msk.f32.mxu1 %vm221_vm0, %v3640_v35  ;;  %8615 = vmatpush3.msra.mxu0 %v3737_v50  ;;  %v7983_v33 = vld [vmem:[%s11018_s30 + $0x20] sm:$0xff] }
 0xec9   :  { %8616 = vmatprep.subr.mxu0 %v3736_v37 }
 0xeca   :  { %v3641_v22 = vadd.f32 %v3639_v19, %v3635_v1  ;;  %8617 = vmatpush3.msra.mxu0 %v3736_v37  ;;  %v7986_v19 = vld [vmem:[%s11018_s30 + $0x38] sm:$0xff] }
 0xecb   :  { %8642 = vmatprep.subr.mxu0 %v9300_v17  ;;  %8621 = vmatprep.subr.mxu1 %v7986_v19 }
 0xecc   :  { %8600 = vmatmul.mubr.msk.f32.vlgmr.msra.gmra.mxu1 %vm221_vm0, %v3641_v22 }
 0xecd   :  { %8622 = vmatpush3.msra.mxu1 %v7986_v19 }
 0xece   :  { %8623 = vmatprep.subr.mxu1 %v7985_v11 }
 0xecf   :  { %8624 = vmatpush3.msra.mxu1 %v7985_v11 }
 0xed0   :  { %8625 = vmatprep.subr.mxu1 %v7984_v30 }
 0xed1   :  { %8626 = vmatpush3.msra.mxu1 %v7984_v30 }
 0xed2   :  { %8627 = vmatprep.subr.mxu1 %v7983_v33 }
 0xed3   :  { %8628 = vmatpush3.msra.mxu1 %v7983_v33 }
 0xed4   :  { %8632 = vmatprep.subr.mxu1 %v9300_v17 }
 0xf8c   :  { %v8601_v8 = vpop.f32.mrf.mxu1 }
 0xf8d   :  { %v3731_v9 = vadd.f32 %v8601_v8, %v7976_v62 }
 0xf8e   :  { %v3725_v49 = vpop.f32.mrf.mxu1 }
 0xf8f   :  { %v3726_v39 = vadd.f32 %v7976_v62, %v3725_v49  ;;  %v3735_v41 = vmax.f32 %v3731_v9, 0.0 }
 0xf91   :  { %v3734_v42 = vmax.f32 %v3726_v39, 0.0 }
 0xf93   :  { %8618 = vmatprep.mubr.msk.f32.mxu0 %vm3748_vm13, %v3734_v42 }
 0xf94   :  { %8619 = vmatmul.mubr.msk.f32.vlgmr.msra.gmra.mxu0 %vm3748_vm13, %v3735_v41 }
 0xf95   :  { %8644 = vmatprep.mubr.msk.f32.mxu0 %vm9303_vm1, %v9300_v17 }
0x1054   :  { %v8620_v14 = vpop.f32.mrf.mxu0 }
0x1055   :  { %v3827_v47 = vadd.f32 %v8620_v14, %v3747_v28  ;;  %v304_v14 = vld [vmem:[%s10983_s17 + $0x8] sm:$0x3] }
0x1056   :  { %v3821_v55 = vpop.f32.mrf.mxu0 }
0x1057   :  { %v3822_v56 = vadd.f32 %v3821_v55, %v3747_v28  ;;  %v3831_v38 = vadd.f32 %v3827_v47, %v3641_v22 }
0x1059   :  { %v3835_v61 = vsel %vm221_vm0, %v3831_v38, 0.0  ;;  %v3830_v20 = vadd.f32 %v3822_v56, %v3640_v35  ;;  %v3875_v56 = vrot.slane %v304_v14, %v9767_v59 }
0x105a   :  { %3836 = vadd.xlane.f32.xlu0 %v3835_v61 }
0x105b   :  { %v3832_v23 = vsel %vm221_vm0, %v3830_v20, 0.0 }
0x105c   :  { %3833 = vadd.xlane.f32.xlu1 %v3832_v23  ;;  %v3881_v23 = vrot.slane %v304_v14, %v9863_v2 }
0x10e3   :  { %v3837_v63 = vpop.xlane.xlu0 %3836 }
0x10e4   :  { %v3839_v24 = vmul.f32 0.03125, %v3837_v63 }
0x10e5   :  { %v3834_v21 = vpop.xlane.xlu1 %3833 }
0x10e6   :  { %v3841_v51 = vsub.f32 %v3831_v38, %v3839_v24  ;;  %v3838_v34 = vmul.f32 0.03125, %v3834_v21 }
0x10e8   :  { %v3840_v57 = vsub.f32 %v3830_v20, %v3838_v34  ;;  %v3843_v48 = vmul.f32 %v3841_v51, %v3841_v51 }
0x10ea   :  { %v3847_v3 = vsel %vm221_vm0, %v3843_v48, 0.0  ;;  %v3842_v16 = vmul.f32 %v3840_v57, %v3840_v57 }
0x10eb   :  { %3848 = vadd.xlane.f32.xlu0 %v3847_v3 }
0x10ec   :  { %v3844_v15 = vsel %vm221_vm0, %v3842_v16, 0.0 }
0x10ed   :  { %3845 = vadd.xlane.f32.xlu1 %v3844_v15 }
0x1174   :  { %v3849_v35 = vpop.xlane.xlu0 %3848 }
0x1175   :  { %v3851_v1 = vmul.f32 0.032258064, %v3849_v35 }
0x1176   :  { %v3846_v22 = vpop.xlane.xlu1 %3845 }
0x1177   :  { %9003 = vrsqrt.f32 %v3851_v1  ;;  %v3850_v25 = vmul.f32 0.032258064, %v3846_v22  ;;  %vm3861_vm14 = vcmp.eq.f32.partialorder %v3851_v1, inf  ;;  %v3864_v37 = vand.u32 2147483648, %v3851_v1 }
0x1178   :  { %vm3863_vm15 = vcmp.eq.f32.partialorder %v3851_v1, 0.0 }
0x1179   :  { %9005 = vrsqrt.f32 %v3850_v25  ;;  %vm3854_vm5 = vcmp.eq.f32.partialorder %v3850_v25, inf  ;;  %v3857_v42 = vand.u32 2147483648, %v3850_v25  ;;  %vm3856_vm6 = vcmp.eq.f32.partialorder %v3850_v25, 0.0 }
0x1184   :  { %v9004_v60 = vpop.eup %9003 }
0x1185   :  { %v3860_v50 = vmul.f32 %v9004_v60, %v3851_v1 }
0x1186   :  { %v9006_v62 = vpop.eup %9005 }
0x1187   :  { %v3862_v8 = vsel %vm3861_vm14, %v3851_v1, %v3860_v50  ;;  %v3853_v49 = vmul.f32 %v9006_v62, %v3850_v25 }
0x1188   :  { %v3865_v9 = vsel %vm3863_vm15, %v3864_v37, %v3862_v8 }
0x1189   :  { %v3867_v39 = vadd.f32 1e-12, %v3865_v9  ;;  %v3855_v41 = vsel %vm3854_vm5, %v3850_v25, %v3853_v49 }
0x118a   :  { %v3858_v12 = vsel %vm3856_vm6, %v3857_v42, %v3855_v41 }
0x118b   :  { %9007 = vrcp.f32 %v3867_v39  ;;  %v3866_v28 = vadd.f32 1e-12, %v3858_v12  ;;  %v9100_v39 = vld [vmem:[%s11019_s4] sm:$0xff] }
0x118d   :  { %9009 = vrcp.f32 %v3866_v28 }
0x1198   :  { %v9008_v47 = vpop.eup %9007 }
0x1199   :  { %v3871_v55 = vmul.f32 %v9008_v47, %v3841_v51  ;;  %v7987_v51 = vld [vmem:[#allocation10 + $0x1] ss:$0 sm:$0xff] }
0x119a   :  { %v9010_v38 = vpop.eup %9009 }
0x119b   :  { %v3870_v61 = vmul.f32 %v9010_v38, %v3840_v57  ;;  %v3877_v20 = vmul.f32 %v3875_v56, %v3871_v55  ;;  %v9101_v55 = vld [vmem:[%s11019_s4 + $0x8] sm:$0xff] }
0x119d   :  { %v3876_v63 = vmul.f32 %v3875_v56, %v3870_v61  ;;  %v10179_v21 = vadd.f32 %v3881_v23, %v3877_v20 }
0x119f   :  { %v10177_v24 = vadd.f32 %v3881_v23, %v3876_v63 }
0x11a1   :  { %8629 = vmatprep.mubr.msk.f32.mxu1 %vm221_vm0, %v10177_v24 }
0x11a2   :  { %8630 = vmatmul.mubr.msk.f32.vlgmr.msra.gmra.mxu1 %vm221_vm0, %v10179_v21 }
0x11a3   :  { %8634 = vmatprep.mubr.msk.f32.mxu1 %vm9303_vm1, %v9300_v17 }
0x1262   :  { %v8631_v34 = vpop.f32.mrf.mxu1 }
0x1263   :  { %v10187_v57 = vadd.f32 %v8631_v34, %v7987_v51 }
0x1264   :  { %v3972_v48 = vpop.f32.mrf.mxu1 }
0x1265   :  { %v10189_v3 = vadd.f32 %v7987_v51, %v3972_v48  ;;  %3985 = vrot.lane.b32.xlu0 %v10187_v57, %s9302_s25  ;;  %v9102_v48 = vld [vmem:[%s11019_s4 + $0x18] sm:$0xff] }
0x1267   :  { %3983 = vrot.lane.b32.xlu1 %v10189_v3, %s9302_s25 }
0x1269   :  { %3991 = vrot.lane.b32.xlu0 %v10189_v3, %s9304_s3 }
0x126b   :  { %3987 = vrot.lane.b32.xlu1 %v10189_v3, %s11023_s29 }
0x126d   :  { %4000 = vrot.lane.b32.xlu0 %v10189_v3, %s9305_s7 }
0x126f   :  { %3989 = vrot.lane.b32.xlu1 %v10187_v57, %s11023_s29 }
0x1273   :  { %3993 = vrot.lane.b32.xlu1 %v10187_v57, %s9304_s3 }
0x1277   :  { %4076 = vrot.lane.b32.xlu1 %v10187_v57, %s9305_s7 }
0x12d7   :  { %v10207_v16 = vpop.permute.xlu0 %3985 }
0x12d8   :  { %4228 = vrot.lane.b32.xlu1 %v10207_v16, %s9305_s7 }
0x12d9   :  { %v10211_v15 = vpop.permute.xlu1 %3983 }
0x12da   :  { %4152 = vrot.lane.b32.xlu0 %v10211_v15, %s9305_s7 }
0x12db   :  { %v10215_v19 = vpop.permute.xlu0 %3991 }
0x12dd   :  { %v10217_v11 = vpop.permute.xlu1 %3987 }
0x12de   :  { %4304 = vrot.lane.b32.xlu0 %v10217_v11, %s9305_s7 }
0x12df   :  { %v4001_v30 = vpop.permute.xlu0 %4000 }
0x12e0   :  { %8633 = vmatpush3.xpose.msk.msra.mxu1 %vm417_vm2, %v4001_v30 }
0x12e1   :  { %v10222_v33 = vpop.permute.xlu1 %3989  ;;  %8637 = vmatprep.subr.mxu1 %v9300_v17 }
0x12e2   :  { %4456 = vrot.lane.b32.xlu0 %v10215_v19, %s9305_s7  ;;  %4380 = vrot.lane.b32.xlu1 %v10222_v33, %s9305_s7 }
0x12e3   :  { %8635 = vmatmul.mubr.msk.f32.vlgmr.msra.gmra.mxu1 %vm417_vm2, %v10189_v3 }
0x12e4   :  { %8639 = vmatprep.mubr.msk.f32.mxu1 %vm9303_vm1, %v9300_v17 }
0x12e5   :  { %v10233_v35 = vpop.permute.xlu1 %3993 }
0x12e6   :  { %4532 = vrot.lane.b32.xlu1 %v10233_v35, %s9305_s7 }
0x12e9   :  { %v4077_v1 = vpop.permute.xlu1 %4076 }
0x12ea   :  { %8638 = vmatpush3.xpose.msk.msra.mxu1 %vm417_vm2, %v4077_v1  ;;  %v9103_v1 = vld [vmem:[%s11019_s4 + $0x10] sm:$0xff] }
0x12eb   :  { %8647 = vmatprep.subr.mxu1 %v9300_v17 }
0x12ed   :  { %8640 = vmatmul.mubr.msk.f32.vlgmr.msra.gmra.mxu1 %vm417_vm2, %v10187_v57 }
0x12ee   :  { %8649 = vmatprep.mubr.msk.f32.mxu1 %vm9303_vm1, %v9300_v17 }
0x134a   :  { %v4229_v22 = vpop.permute.xlu1 %4228 }
0x134b   :  { %8648 = vmatpush3.xpose.msk.msra.mxu1 %vm417_vm2, %v4229_v22 }
0x134c   :  { %v4153_v25 = vpop.permute.xlu0 %4152  ;;  %8657 = vmatprep.subr.mxu1 %v9300_v17 }
0x134d   :  { %8643 = vmatpush3.xpose.msk.msra.mxu0 %vm417_vm2, %v4153_v25 }
0x134e   :  { %8650 = vmatmul.mubr.msk.f32.vlgmr.msra.gmra.mxu1 %vm417_vm2, %v10207_v16  ;;  %8652 = vmatprep.subr.mxu0 %v9300_v17 }
0x134f   :  { %8659 = vmatprep.mubr.msk.f32.mxu1 %vm9303_vm1, %v9300_v17 }
0x1350   :  { %8645 = vmatmul.mubr.msk.f32.vlgmr.msra.gmra.mxu0 %vm417_vm2, %v10211_v15  ;;  %v4305_v60 = vpop.permute.xlu0 %4304 }
0x1351   :  { %8653 = vmatpush3.xpose.msk.msra.mxu0 %vm417_vm2, %v4305_v60  ;;  %8654 = vmatprep.mubr.msk.f32.mxu0 %vm9303_vm1, %v9300_v17 }
0x1352   :  { %8662 = vmatprep.subr.mxu0 %v9300_v17 }
0x1354   :  { %8655 = vmatmul.mubr.msk.f32.vlgmr.msra.gmra.mxu0 %vm417_vm2, %v10217_v11  ;;  %v4457_v50 = vpop.permute.xlu0 %4456  ;;  %v4381_v37 = vpop.permute.xlu1 %4380 }
0x1355   :  { %8658 = vmatpush3.xpose.msk.msra.mxu1 %vm417_vm2, %v4381_v37  ;;  %8663 = vmatpush3.xpose.msk.msra.mxu0 %vm417_vm2, %v4457_v50  ;;  %v9104_v37 = vld [vmem:[%s11019_s4 + $0x20] sm:$0xff] }
0x1356   :  { %8664 = vmatprep.mubr.msk.f32.mxu0 %vm9303_vm1, %v9300_v17  ;;  %8667 = vmatprep.subr.mxu1 %v9300_v17 }
0x1357   :  { %8672 = vmatprep.subr.mxu0 %v9300_v17 }
0x1358   :  { %8660 = vmatmul.mubr.msk.f32.vlgmr.msra.gmra.mxu1 %vm417_vm2, %v10222_v33  ;;  %8665 = vmatmul.mubr.msk.f32.vlgmr.msra.gmra.mxu0 %vm417_vm2, %v10215_v19  ;;  %v4533_v62 = vpop.permute.xlu1 %4532 }
0x1359   :  { %8668 = vmatpush3.xpose.msk.msra.mxu1 %vm417_vm2, %v4533_v62  ;;  %8669 = vmatprep.mubr.msk.f32.mxu1 %vm9303_vm1, %v9300_v17 }
0x135a   :  { %8677 = vmatprep.subr.mxu1 %v9300_v17  ;;  %8674 = vmatprep.mubr.msk.f32.mxu0 %vm9303_vm1, %v9300_v17 }
0x135c   :  { %8670 = vmatmul.mubr.msk.f32.vlgmr.msra.gmra.mxu1 %vm417_vm2, %v10233_v35 }
0x135d   :  { %8679 = vmatprep.mubr.msk.f32.mxu1 %vm9303_vm1, %v9300_v17 }
0x13a3   :  { %v4072_v8 = vpop.f32.mrf.mxu1 }
0x13a4   :  { %v4608_v9 = vmul.f32 0.35355338, %v4072_v8 }
0x13a5   :  { %v8636_v49 = vpop.f32.mrf.mxu1 }
0x13a6   :  { %v4616_v42 = vmul.f32 %v9100_v39, %v4608_v9 }
0x13a8   :  { %v10283_v41 = vadd.f32 %v4616_v42, %v9616_v46 }
0x13aa   :  { %v4632_v12 = vsel %vm417_vm2, %v10283_v41, -inf }
0x13ab   :  { %4633 = vmax.xlane.f32.xlu0 %v4632_v12 }
0x13ad   :  { %v4148_v28 = vpop.f32.mrf.mxu1 }
0x13ae   :  { %v4609_v14 = vmul.f32 0.35355338, %v4148_v28 }
0x13af   :  { %v8641_v47 = vpop.f32.mrf.mxu1 }
0x13b0   :  { %v4617_v56 = vmul.f32 %v9101_v55, %v4609_v14 }
0x13b2   :  { %v4625_v38 = vadd.f32 %v4617_v56, %v9614_v43  ;;  %v9106_v56 = vld [vmem:[%s11019_s4 + $0x30] sm:$0xff] }
0x13b4   :  { %v4635_v61 = vsel %vm417_vm2, %v4625_v38, -inf }
0x13b5   :  { %4636 = vmax.xlane.f32.xlu1 %v4635_v61 }
0x140e   :  { %v4300_v20 = vpop.f32.mrf.mxu1 }
0x140f   :  { %v4611_v46 = vmul.f32 0.35355338, %v4300_v20 }
0x1410   :  { %v4224_v23 = vpop.f32.mrf.mxu0  ;;  %v8651_v63 = vpop.f32.mrf.mxu1 }
0x1411   :  { %v4610_v51 = vmul.f32 0.35355338, %v4224_v23  ;;  %v4619_v30 = vmul.f32 %v9102_v48, %v4611_v46 }
0x1412   :  { %v8646_v34 = vpop.f32.mrf.mxu0 }
0x1413   :  { %v4618_v22 = vmul.f32 %v9103_v1, %v4610_v51  ;;  %v4627_v9 = vadd.f32 %v4619_v30, %v9647_v6  ;;  %v9107_v34 = vld [vmem:[%s11019_s4 + $0x38] sm:$0xff] }
0x1414   :  { %v4376_v43 = vpop.f32.mrf.mxu0 }
0x1415   :  { %v4612_v25 = vmul.f32 0.35355338, %v4376_v43  ;;  %v4626_v60 = vadd.f32 %v4618_v22, %v9643_v0  ;;  %v9105_v0 = vld [vmem:[%s11019_s4 + $0x28] sm:$0xff]  ;;  %v4641_v20 = vsel %vm417_vm2, %v4627_v9, -inf }
0x1416   :  { %v8656_v50 = vpop.f32.mrf.mxu0 }
0x1417   :  { %v4620_v62 = vmul.f32 %v9104_v37, %v4612_v25  ;;  %v4638_v8 = vsel %vm417_vm2, %v4626_v60, -inf }
0x1418   :  { %4639 = vmax.xlane.f32.xlu0 %v4638_v8  ;;  %v4452_v49 = vpop.f32.mrf.mxu1  ;;  %v4528_v39 = vpop.f32.mrf.mxu0 }
0x1419   :  { %v4613_v42 = vmul.f32 0.35355338, %v4452_v49  ;;  %v4614_v12 = vmul.f32 0.35355338, %v4528_v39  ;;  %v4628_v28 = vadd.f32 %v4620_v62, %v9645_v5 }
0x141a   :  { %v8661_v14 = vpop.f32.mrf.mxu1  ;;  %v8666_v47 = vpop.f32.mrf.mxu0 }
0x141b   :  { %v4621_v55 = vmul.f32 %v9105_v0, %v4613_v42  ;;  %v4622_v61 = vmul.f32 %v9106_v56, %v4614_v12  ;;  %v4644_v6 = vsel %vm417_vm2, %v4628_v28, -inf }
0x141c   :  { %4645 = vmax.xlane.f32.xlu1 %v4644_v6  ;;  %4642 = vmax.xlane.f32.xlu0 %v4641_v20  ;;  %v4604_v46 = vpop.f32.mrf.mxu1 }
0x141d   :  { %v4615_v5 = vmul.f32 0.35355338, %v4604_v46  ;;  %v4630_v23 = vadd.f32 %v4622_v61, %v9654_v31  ;;  %v4629_v63 = vadd.f32 %v4621_v55, %v9656_v32 }
0x141e   :  { %v8671_v51 = vpop.f32.mrf.mxu1 }
0x141f   :  { %v4623_v48 = vmul.f32 %v9107_v34, %v4615_v5  ;;  %v4650_v30 = vsel %vm417_vm2, %v4630_v23, -inf  ;;  %v4647_v1 = vsel %vm417_vm2, %v4629_v63, -inf }
0x1420   :  { %4651 = vmax.xlane.f32.xlu1 %v4650_v30  ;;  %4648 = vmax.xlane.f32.xlu0 %v4647_v1 }
0x1421   :  { %v4631_v22 = vadd.f32 %v4623_v48, %v9664_v52 }
0x1423   :  { %v4653_v43 = vsel %vm417_vm2, %v4631_v22, -inf }
0x1424   :  { %4654 = vmax.xlane.f32.xlu0 %v4653_v43 }
0x1431   :  { %4720 = vrot.lane.b32.xlu1 %v10189_v3, %s11024_s15 }
0x1434   :  { %v4634_v52 = vpop.xlane.xlu0 %4633 }
0x1435   :  { %4872 = vrot.lane.b32.xlu1 %v10211_v15, %s11024_s15  ;;  %v4656_v3 = vsub.f32 %v10283_v41, %v4634_v52 }
0x1437   :  { %v4664_v50 = vmul.f32 1.442695, %v4656_v3 }
0x1439   :  { %4948 = vrot.lane.b32.xlu1 %v10207_v16, %s11024_s15 }
0x143a   :  { %4796 = vrot.lane.b32.xlu0 %v10187_v57, %s11024_s15 }
0x143d   :  { %5100 = vrot.lane.b32.xlu1 %v10222_v33, %s11024_s15 }
0x143e   :  { %5024 = vrot.lane.b32.xlu0 %v10217_v11, %s11024_s15  ;;  %v4637_v31 = vpop.xlane.xlu1 %4636 }
0x143f   :  { %v4657_v32 = vsub.f32 %v4625_v38, %v4637_v31 }
0x1441   :  { %v4666_v25 = vmul.f32 1.442695, %v4657_v32 }
0x1443   :  { %9011 = vpow2.f32 %v4666_v25 }
0x1444   :  { %9013 = vpow2.f32 %v4664_v50 }
0x1450   :  { %v10335_v15 = vpop.eup %9011 }
0x1451   :  { %v4683_v57 = vsel %vm417_vm2, %v10335_v15, 0.0  ;;  %v10339_v16 = vpop.eup %9013 }
0x1452   :  { %v4680_v11 = vsel %vm417_vm2, %v10339_v16, 0.0 }
0x145d   :  { %4684 = vadd.xlane.f32.xlu0 %v4683_v57 }
0x1461   :  { %4681 = vadd.xlane.f32.xlu1 %v4680_v11 }
0x14a1   :  { %v4640_v33 = vpop.xlane.xlu0 %4639 }
0x14a2   :  { %v4658_v38 = vsub.f32 %v4626_v60, %v4640_v33 }
0x14a4   :  { %v4668_v37 = vmul.f32 1.442695, %v4658_v38 }
0x14a5   :  { %v4643_v41 = vpop.xlane.xlu0 %4642  ;;  %v4646_v62 = vpop.xlane.xlu1 %4645 }
0x14a6   :  { %9015 = vpow2.f32 %v4668_v37  ;;  %v4659_v8 = vsub.f32 %v4627_v9, %v4643_v41  ;;  %v4660_v49 = vsub.f32 %v4628_v28, %v4646_v62 }
0x14a8   :  { %v4670_v39 = vmul.f32 1.442695, %v4659_v8  ;;  %v4672_v42 = vmul.f32 1.442695, %v4660_v49 }
0x14a9   :  { %v4649_v12 = vpop.xlane.xlu0 %4648  ;;  %v4652_v14 = vpop.xlane.xlu1 %4651 }
0x14aa   :  { %9017 = vpow2.f32 %v4670_v39  ;;  %v4661_v47 = vsub.f32 %v4629_v63, %v4649_v12  ;;  %v4662_v0 = vsub.f32 %v4630_v23, %v4652_v14 }
0x14ab   :  { %9019 = vpow2.f32 %v4672_v42 }
0x14ac   :  { %v4674_v55 = vmul.f32 1.442695, %v4661_v47  ;;  %v4676_v56 = vmul.f32 1.442695, %v4662_v0 }
0x14ad   :  { %v4655_v61 = vpop.xlane.xlu0 %4654  ;;  %v4721_v6 = vpop.permute.xlu1 %4720 }
0x14ae   :  { %9021 = vpow2.f32 %v4674_v55  ;;  %v4663_v60 = vsub.f32 %v4631_v22, %v4655_v61  ;;  %8673 = vmatpush3.msra.mxu0 %v4721_v6 }
0x14af   :  { %9023 = vpow2.f32 %v4676_v56  ;;  %8682 = vmatprep.subr.mxu0 %v9300_v17 }
0x14b0   :  { %v4678_v9 = vmul.f32 1.442695, %v4663_v60 }
0x14b1   :  { %v4797_v28 = vpop.permute.xlu0 %4796  ;;  %v4873_v31 = vpop.permute.xlu1 %4872 }
0x14b2   :  { %9025 = vpow2.f32 %v4678_v9  ;;  %8678 = vmatpush3.msra.mxu1 %v4797_v28 }
0x14b3   :  { %v9016_v20 = vpop.eup %9015  ;;  %8687 = vmatprep.subr.mxu1 %v9300_v17 }
0x14b4   :  { %v4686_v46 = vsel %vm417_vm2, %v9016_v20, 0.0 }
0x14b5   :  { %4687 = vadd.xlane.f32.xlu1 %v4686_v46  ;;  %v4949_v32 = vpop.permute.xlu1 %4948  ;;  %v5025_v52 = vpop.permute.xlu0 %5024 }
0x14b7   :  { %v9018_v5 = vpop.eup %9017 }
0x14b8   :  { %v9020_v23 = vpop.eup %9019  ;;  %v4689_v63 = vsel %vm417_vm2, %v9018_v5, 0.0 }
0x14b9   :  { %4690 = vadd.xlane.f32.xlu0 %v4689_v63  ;;  %v4692_v51 = vsel %vm417_vm2, %v9020_v23, 0.0  ;;  %v5101_v3 = vpop.permute.xlu1 %5100  ;;  %v7991_v63 = vld [vmem:[%s11020_s1 + $0x28] sm:$0xff] }
0x14ba   :  { %4693 = vadd.xlane.f32.xlu1 %v4692_v51  ;;  %v7990_v51 = vld [vmem:[%s11020_s1 + $0x20] sm:$0xff] }
0x14bb   :  { %v9022_v34 = vpop.eup %9021 }
0x14bc   :  { %v10348_v48 = vpop.eup %9023  ;;  %v4695_v30 = vsel %vm417_vm2, %v9022_v34, 0.0 }
0x14bd   :  { %4696 = vadd.xlane.f32.xlu0 %v4695_v30  ;;  %v4698_v1 = vsel %vm417_vm2, %v10348_v48, 0.0 }
0x14be   :  { %4699 = vadd.xlane.f32.xlu1 %v4698_v1 }
0x14bf   :  { %v10353_v22 = vpop.eup %9025 }
0x14c0   :  { %v4701_v43 = vsel %vm417_vm2, %v10353_v22, 0.0 }
0x14c1   :  { %4702 = vadd.xlane.f32.xlu0 %v4701_v43 }
0x14cf   :  { %5252 = vrot.lane.b32.xlu1 %v10233_v35, %s11024_s15 }
0x14d7   :  { %5176 = vrot.lane.b32.xlu0 %v10215_v19, %s11024_s15  ;;  %s11025_s15 = sld [smem:[#allocation25_spill]] }
0x14e6   :  { %v4685_v25 = vpop.xlane.xlu0 %4684 }
0x14e7   :  { %9027 = vrcp.f32 %v4685_v25 }
0x14ea   :  { %v4682_v50 = vpop.xlane.xlu1 %4681 }
0x14eb   :  { %9029 = vrcp.f32 %v4682_v50 }
0x14f4   :  { %v9028_v57 = vpop.eup %9027 }
0x14f5   :  { %v4713_v11 = vmul.f32 %v9028_v57, %v10335_v15 }
0x14f7   :  { %8680 = vmatmul.mubr.msk.f32.vlgmr.msra.gmra.mxu1 %vm417_vm2, %v4713_v11 }
0x14f8   :  { %v9030_v33 = vpop.eup %9029  ;;  %8688 = vmatpush3.msra.mxu1 %v4949_v32  ;;  %8689 = vmatprep.mubr.msk.f32.mxu1 %vm9303_vm1, %v9300_v17 }
0x14f9   :  { %v4712_v19 = vmul.f32 %v9030_v33, %v10339_v16  ;;  %8697 = vmatprep.subr.mxu1 %v9300_v17 }
0x14fb   :  { %8675 = vmatmul.mubr.msk.f32.vlgmr.msra.gmra.mxu0 %vm417_vm2, %v4712_v19 }
0x14fc   :  { %8683 = vmatpush3.msra.mxu0 %v4873_v31  ;;  %8684 = vmatprep.mubr.msk.f32.mxu0 %vm9303_vm1, %v9300_v17 }
0x14fd   :  { %8692 = vmatprep.subr.mxu0 %v9300_v17 }
0x153e   :  { %v4688_v35 = vpop.xlane.xlu1 %4687 }
0x153f   :  { %9031 = vrcp.f32 %v4688_v35 }
0x1542   :  { %v4691_v15 = vpop.xlane.xlu0 %4690 }
0x1543   :  { %9033 = vrcp.f32 %v4691_v15  ;;  %v4694_v38 = vpop.xlane.xlu1 %4693 }
0x1544   :  { %9035 = vrcp.f32 %v4694_v38 }
0x1546   :  { %v4697_v37 = vpop.xlane.xlu0 %4696 }
0x1547   :  { %9037 = vrcp.f32 %v4697_v37  ;;  %v4700_v41 = vpop.xlane.xlu1 %4699 }
0x1548   :  { %9039 = vrcp.f32 %v4700_v41 }
0x154a   :  { %v4703_v16 = vpop.xlane.xlu0 %4702 }
0x154b   :  { %9041 = vrcp.f32 %v4703_v16  ;;  %v5253_v61 = vpop.permute.xlu1 %5252 }
0x154c   :  { %v9032_v62 = vpop.eup %9031 }
0x154d   :  { %v4714_v8 = vmul.f32 %v9032_v62, %v9016_v20 }
0x154e   :  { %v5177_v47 = vpop.permute.xlu0 %5176 }
0x154f   :  { %8685 = vmatmul.mubr.msk.f32.vlgmr.msra.gmra.mxu0 %vm417_vm2, %v4714_v8 }
0x1550   :  { %v9034_v49 = vpop.eup %9033  ;;  %8693 = vmatpush3.msra.mxu0 %v5025_v52  ;;  %8694 = vmatprep.mubr.msk.f32.mxu0 %vm9303_vm1, %v9300_v17 }
0x1551   :  { %v9036_v39 = vpop.eup %9035  ;;  %8702 = vmatprep.subr.mxu0 %v9300_v17  ;;  %v4715_v42 = vmul.f32 %v9034_v49, %v9018_v5  ;;  %v7993_v5 = vld [vmem:[%s11020_s1 + $0x38] sm:$0xff] }
0x1552   :  { %v4716_v12 = vmul.f32 %v9036_v39, %v9020_v23  ;;  %v7992_v23 = vld [vmem:[%s11020_s1 + $0x30] sm:$0xff] }
0x1553   :  { %8690 = vmatmul.mubr.msk.f32.vlgmr.msra.gmra.mxu1 %vm417_vm2, %v4715_v42  ;;  %v9108_v49 = vld [vmem:[#allocation5] sm:$0xff] }
0x1554   :  { %v9038_v14 = vpop.eup %9037  ;;  %8695 = vmatmul.mubr.msk.f32.vlgmr.msra.gmra.mxu0 %vm417_vm2, %v4716_v12  ;;  %8698 = vmatpush3.msra.mxu1 %v5101_v3  ;;  %v10419_v39 = vld [vmem:[%s10983_s17 + $0x10] sm:$0xff] }
0x1555   :  { %v9040_v0 = vpop.eup %9039  ;;  %8703 = vmatpush3.msra.mxu0 %v5177_v47  ;;  %8699 = vmatprep.mubr.msk.f32.mxu1 %vm9303_vm1, %v9300_v17  ;;  %v4717_v55 = vmul.f32 %v9038_v14, %v9022_v34  ;;  %v5361_v42 = vrot.slane %v10419_v39, %v9767_v59 }
0x1556   :  { %8704 = vmatprep.mubr.msk.f32.mxu0 %vm9303_vm1, %v9300_v17  ;;  %8707 = vmatprep.subr.mxu1 %v9300_v17  ;;  %v4718_v56 = vmul.f32 %v9040_v0, %v10348_v48 }
0x1557   :  { %8700 = vmatmul.mubr.msk.f32.vlgmr.msra.gmra.mxu1 %vm417_vm2, %v4717_v55  ;;  %8712 = vmatprep.subr.mxu0 %v7993_v5 }
0x1558   :  { %v9042_v6 = vpop.eup %9041  ;;  %8705 = vmatmul.mubr.msk.f32.vlgmr.msra.gmra.mxu0 %vm417_vm2, %v4718_v56  ;;  %8708 = vmatpush3.msra.mxu1 %v5253_v61 }
0x1559   :  { %8709 = vmatprep.mubr.msk.f32.mxu1 %vm9303_vm1, %v9300_v17  ;;  %v4719_v60 = vmul.f32 %v9042_v6, %v10353_v22  ;;  %8713 = vmatpush3.msra.mxu0 %v7993_v5 }
0x155a   :  { %8714 = vmatprep.subr.mxu0 %v7992_v23 }
0x155b   :  { %8710 = vmatmul.mubr.msk.f32.vlgmr.msra.gmra.mxu1 %vm417_vm2, %v4719_v60  ;;  %8715 = vmatpush3.msra.mxu0 %v7992_v23 }
0x155c   :  { %8716 = vmatprep.subr.mxu0 %v7991_v63 }
0x155d   :  { %8717 = vmatpush3.msra.mxu0 %v7991_v63 }
0x155e   :  { %8718 = vmatprep.subr.mxu0 %v7990_v51 }
0x155f   :  { %8719 = vmatpush3.msra.mxu0 %v7990_v51  ;;  %v8029_v51 = vld [vmem:[%s10977_s11 + $0x38] sm:$0xff] }
0x1560   :  { %8734 = vmatprep.subr.mxu0 %v8029_v51 }
0x15b7   :  { %v4868_v9 = vpop.f32.mrf.mxu1 }
0x15b9   :  { %v8681_v28 = vpop.f32.mrf.mxu1 }
0x15bb   :  { %v4792_v20 = vpop.f32.mrf.mxu0 }
0x15bd   :  { %v8676_v46 = vpop.f32.mrf.mxu0 }
0x160f   :  { %v4944_v34 = vpop.f32.mrf.mxu0 }
0x1610   :  { %5330 = vrot.lane.b32.xlu0 %v4944_v34, %s9291_s0  ;;  %v8028_v34 = vld [vmem:[%s10977_s11 + $0x30] sm:$0xff] }
0x1611   :  { %v8686_v48 = vpop.f32.mrf.mxu0 }
0x1612   :  { %v8027_v48 = vld [vmem:[%s10977_s11 + $0x28] sm:$0xff] }
0x1613   :  { %v5020_v30 = vpop.f32.mrf.mxu1 }
0x1614   :  { %v5096_v1 = vpop.f32.mrf.mxu0  ;;  %5332 = vrot.lane.b32.xlu1 %v5020_v30, %s9291_s0  ;;  %v8026_v30 = vld [vmem:[%s10977_s11 + $0x20] sm:$0xff] }
0x1615   :  { %5338 = vrot.lane.b32.xlu0 %v5096_v1, %s9294_s28  ;;  %v8691_v22 = vpop.f32.mrf.mxu1  ;;  %v8023_v1 = vld [vmem:[%s11021_s9 + $0x38] sm:$0xff] }
0x1616   :  { %v8696_v43 = vpop.f32.mrf.mxu0  ;;  %v8022_v22 = vld [vmem:[%s11021_s9 + $0x30] sm:$0xff]  ;;  %8723 = vmatprep.subr.mxu1 %v8023_v1 }
0x1617   :  { %v5172_v31 = vpop.f32.mrf.mxu1  ;;  %8724 = vmatpush3.msra.mxu1 %v8023_v1  ;;  %v8021_v43 = vld [vmem:[%s11021_s9 + $0x28] sm:$0xff] }
0x1618   :  { %v5248_v32 = vpop.f32.mrf.mxu0  ;;  %5340 = vrot.lane.b32.xlu1 %v5172_v31, %s9294_s28  ;;  %8725 = vmatprep.subr.mxu1 %v8022_v22  ;;  %v9109_v31 = vld [vmem:[#allocation5 + $0x8] sm:$0xff] }
0x1619   :  { %5346 = vrot.lane.b32.xlu0 %v5248_v32, %s9307_s23  ;;  %v8701_v52 = vpop.f32.mrf.mxu1  ;;  %8726 = vmatpush3.msra.mxu1 %v8022_v22  ;;  %v8020_v32 = vld [vmem:[%s11021_s9 + $0x20] sm:$0xff] }
0x161a   :  { %v8706_v3 = vpop.f32.mrf.mxu0  ;;  %8727 = vmatprep.subr.mxu1 %v8021_v43 }
0x161b   :  { %v5324_v25 = vpop.f32.mrf.mxu1  ;;  %8728 = vmatpush3.msra.mxu1 %v8021_v43 }
0x161c   :  { %5348 = vrot.lane.b32.xlu1 %v5324_v25, %s9307_s23  ;;  %8729 = vmatprep.subr.mxu1 %v8020_v32 }
0x161d   :  { %v8711_v50 = vpop.f32.mrf.mxu1  ;;  %8730 = vmatpush3.msra.mxu1 %v8020_v32 }
0x161e   :  { %8745 = vmatprep.subr.mxu1 %v9300_v17 }
0x1682   :  { %v5331_v57 = vpop.permute.xlu0 %5330 }
0x1683   :  { %v5352_v19 = vsel %vm417_vm2, %v4792_v20, %v5331_v57 }
0x1686   :  { %v5333_v11 = vpop.permute.xlu1 %5332 }
0x1687   :  { %v5339_v33 = vpop.permute.xlu0 %5338  ;;  %v5353_v41 = vsel %vm417_vm2, %v4868_v9, %v5333_v11 }
0x1688   :  { %v5354_v15 = vsel %vm1786_vm3, %v5352_v19, %v5339_v33 }
0x168a   :  { %v5341_v35 = vpop.permute.xlu1 %5340 }
0x168b   :  { %v5347_v38 = vpop.permute.xlu0 %5346  ;;  %v5355_v16 = vsel %vm1786_vm3, %v5353_v41, %v5341_v35 }
0x168c   :  { %v5356_v37 = vsel %vm1789_vm4, %v5354_v15, %v5347_v38 }
0x168d   :  { %8720 = vmatprep.mubr.msk.f32.mxu0 %vm221_vm0, %v5356_v37 }
0x168e   :  { %v5349_v62 = vpop.permute.xlu1 %5348 }
0x168f   :  { %v5357_v8 = vsel %vm1789_vm4, %v5355_v16, %v5349_v62 }
0x1690   :  { %8721 = vmatmul.mubr.msk.f32.vlgmr.msra.gmra.mxu0 %vm221_vm0, %v5357_v8 }
0x1691   :  { %8742 = vmatprep.mubr.msk.f32.mxu0 %vm221_vm0, %v9108_v49  ;;  %8735 = vmatpush3.msra.mxu0 %v8029_v51  ;;  %v5488_v49 = vrot.slane %v10419_v39, %v1922_v53  ;;  %v8030_v53 = vld [vmem:[#allocation11 + $0x1] ss:$0 sm:$0xff] }
0x1692   :  { %8736 = vmatprep.subr.mxu0 %v8028_v34 }
0x1693   :  { %8737 = vmatpush3.msra.mxu0 %v8028_v34 }
0x1694   :  { %8738 = vmatprep.subr.mxu0 %v8027_v48 }
0x1695   :  { %8739 = vmatpush3.msra.mxu0 %v8027_v48 }
0x1696   :  { %8740 = vmatprep.subr.mxu0 %v8026_v30 }
0x1697   :  { %8741 = vmatpush3.msra.mxu0 %v8026_v30 }
0x1698   :  { %8743 = vmatmul.mubr.msk.f32.vlgmr.msra.gmra.mxu0 %vm221_vm0, %v9109_v31  ;;  %8755 = vmatprep.subr.mxu0 %v9300_v17 }
0x1699   :  { %8757 = vmatprep.mubr.msk.f32.mxu0 %vm9303_vm1, %v9300_v17 }
0x1750   :  { %v8722_v12 = vpop.f32.mrf.mxu0 }
0x1751   :  { %v5440_v14 = vadd.f32 %v8722_v12, %v5361_v42 }
0x1752   :  { %v5434_v47 = vpop.f32.mrf.mxu0 }
0x1753   :  { %v5444_v0 = vadd.f32 %v5440_v14, %v10179_v21  ;;  %v5435_v55 = vadd.f32 %v5434_v47, %v5361_v42  ;;  %v5494_v14 = vrot.slane %v10419_v39, %v1928_v54 }
0x1755   :  { %v5443_v56 = vadd.f32 %v5435_v55, %v10177_v24  ;;  %v5448_v61 = vsel %vm221_vm0, %v5444_v0, 0.0 }
0x1756   :  { %5449 = vadd.xlane.f32.xlu1 %v5448_v61 }
0x1757   :  { %v5445_v6 = vsel %vm221_vm0, %v5443_v56, 0.0 }
0x1758   :  { %5446 = vadd.xlane.f32.xlu0 %v5445_v6  ;;  %v8744_v54 = vpop.f32.mrf.mxu0 }
0x17df   :  { %v5450_v60 = vpop.xlane.xlu1 %5449 }
0x17e0   :  { %v5452_v9 = vmul.f32 0.03125, %v5450_v60  ;;  %v10479_v60 = vadd.f32 %v8744_v54, %v8030_v53 }
0x17e1   :  { %v5447_v28 = vpop.xlane.xlu0 %5446 }
0x17e2   :  { %v5451_v20 = vmul.f32 0.03125, %v5447_v28  ;;  %v10427_v46 = vsub.f32 %v5444_v0, %v5452_v9  ;;  %v5666_v9 = vpop.f32.mrf.mxu0 }
0x17e3   :  { %v10483_v28 = vadd.f32 %v8030_v53, %v5666_v9 }
0x17e4   :  { %v5453_v5 = vsub.f32 %v5443_v56, %v5451_v20  ;;  %v5456_v21 = vmul.f32 %v10427_v46, %v10427_v46 }
0x17e5   :  { %5691 = vrot.lane.b32.xlu1 %v10483_v28, %s9302_s25 }
0x17e6   :  { %v5455_v23 = vmul.f32 %v5453_v5, %v5453_v5  ;;  %v5460_v24 = vsel %vm221_vm0, %v5456_v21, 0.0 }
0x17e8   :  { %v5457_v63 = vsel %vm221_vm0, %v5455_v23, 0.0 }
0x17e9   :  { %5458 = vadd.xlane.f32.xlu0 %v5457_v63  ;;  %5697 = vrot.lane.b32.xlu1 %v10479_v60, %s11023_s29 }
0x17ed   :  { %5461 = vadd.xlane.f32.xlu0 %v5460_v24 }
0x1803   :  { %5693 = vrot.lane.b32.xlu0 %v10479_v60, %s9302_s25 }
0x1807   :  { %5695 = vrot.lane.b32.xlu0 %v10483_v28, %s11023_s29 }
0x180b   :  { %5699 = vrot.lane.b32.xlu0 %v10483_v28, %s9304_s3 }
0x1857   :  { %v10496_v20 = vpop.permute.xlu1 %5691 }
0x1858   :  { %8756 = vmatpush3.xpose.msk.msra.mxu0 %vm417_vm2, %v10496_v20 }
0x1859   :  { %8765 = vmatprep.subr.mxu0 %v9300_v17 }
0x185b   :  { %v10527_v34 = vpop.permute.xlu1 %5697 }
0x1872   :  { %v5459_v52 = vpop.xlane.xlu0 %5458 }
0x1873   :  { %v5463_v3 = vmul.f32 0.032258064, %v5459_v52 }
0x1875   :  { %9043 = vrsqrt.f32 %v5463_v3  ;;  %vm5467_vm7 = vcmp.eq.f32.partialorder %v5463_v3, inf  ;;  %v5470_v33 = vand.u32 2147483648, %v5463_v3  ;;  %vm5469_vm8 = vcmp.eq.f32.partialorder %v5463_v3, 0.0 }
0x1876   :  { %v5462_v25 = vpop.xlane.xlu0 %5461 }
0x1877   :  { %v5464_v50 = vmul.f32 0.032258064, %v5462_v25 }
0x1879   :  { %9045 = vrsqrt.f32 %v5464_v50  ;;  %vm5474_vm9 = vcmp.eq.f32.partialorder %v5464_v50, inf  ;;  %v5477_v41 = vand.u32 2147483648, %v5464_v50  ;;  %vm5476_vm10 = vcmp.eq.f32.partialorder %v5464_v50, 0.0 }
0x187a   :  { %v10514_v24 = vpop.permute.xlu0 %5693 }
0x187e   :  { %v10525_v51 = vpop.permute.xlu0 %5695 }
0x1882   :  { %v9044_v57 = vpop.eup %9043  ;;  %v10530_v30 = vpop.permute.xlu0 %5699 }
0x1883   :  { %v5466_v11 = vmul.f32 %v9044_v57, %v5463_v3  ;;  %v9110_v57 = vld [vmem:[%s11022_s8] sm:$0xff] }
0x1885   :  { %v5468_v19 = vsel %vm5467_vm7, %v5463_v3, %v5466_v11 }
0x1886   :  { %v9046_v35 = vpop.eup %9045  ;;  %v5471_v15 = vsel %vm5469_vm8, %v5470_v33, %v5468_v19 }
0x1887   :  { %v5479_v38 = vadd.f32 1e-12, %v5471_v15  ;;  %v5473_v37 = vmul.f32 %v9046_v35, %v5464_v50 }
0x1889   :  { %9047 = vrcp.f32 %v5479_v38  ;;  %v5475_v16 = vsel %vm5474_vm9, %v5464_v50, %v5473_v37  ;;  %v9111_v38 = vld [vmem:[%s11022_s8 + $0x8] sm:$0xff] }
0x188a   :  { %v5478_v62 = vsel %vm5476_vm10, %v5477_v41, %v5475_v16 }
0x188b   :  { %v5480_v8 = vadd.f32 1e-12, %v5478_v62 }
0x188d   :  { %9049 = vrcp.f32 %v5480_v8 }
0x1896   :  { %v9048_v42 = vpop.eup %9047 }
0x1897   :  { %v5483_v12 = vmul.f32 %v9048_v42, %v5453_v5 }
0x1899   :  { %v5489_v47 = vmul.f32 %v5488_v49, %v5483_v12 }
0x189a   :  { %v9050_v0 = vpop.eup %9049 }
0x189b   :  { %v5484_v55 = vmul.f32 %v9050_v0, %v10427_v46  ;;  %v10469_v56 = vadd.f32 %v5494_v14, %v5489_v47  ;;  %v5505_v46 = vrot.slane %v10419_v39, %v9863_v2  ;;  %v9112_v47 = vld [vmem:[%s11022_s8 + $0x18] sm:$0xff] }
0x189d   :  { %v5490_v61 = vmul.f32 %v5488_v49, %v5484_v55  ;;  %8731 = vmatprep.mubr.msk.f32.mxu1 %vm221_vm0, %v10469_v56  ;;  %v9113_v55 = vld [vmem:[%s11022_s8 + $0x10] sm:$0xff] }
0x189f   :  { %v10473_v6 = vadd.f32 %v5494_v14, %v5490_v61 }
0x18a1   :  { %8732 = vmatmul.mubr.msk.f32.vlgmr.msra.gmra.mxu1 %vm221_vm0, %v10473_v6 }
0x18a2   :  { %8747 = vmatprep.mubr.msk.f32.mxu1 %vm9303_vm1, %v9300_v17  ;;  %8746 = vmatpush3.xpose.msk.msra.mxu1 %vm417_vm2, %v10483_v28 }
0x18a3   :  { %8750 = vmatprep.subr.mxu1 %v9300_v17 }
0x1961   :  { %v8733_v5 = vpop.f32.mrf.mxu1 }
0x1962   :  { %v5584_v23 = vadd.f32 %v8733_v5, %v5505_v46 }
0x1963   :  { %v5578_v63 = vpop.f32.mrf.mxu1 }
0x1964   :  { %v5579_v21 = vadd.f32 %v5578_v63, %v5505_v46  ;;  %5679 = vrot.lane.b32.xlu1 %v5584_v23, %s9302_s25  ;;  %v9114_v63 = vld [vmem:[%s11022_s8 + $0x20] sm:$0xff] }
0x1966   :  { %5681 = vrot.lane.b32.xlu0 %v5579_v21, %s11023_s29  ;;  %8748 = vmatmul.mubr.msk.f32.vlgmr.msra.gmra.mxu1 %vm417_vm2, %v5579_v21 }
0x1967   :  { %8751 = vmatpush3.xpose.msk.msra.mxu1 %vm417_vm2, %v10479_v60  ;;  %8752 = vmatprep.mubr.msk.f32.mxu1 %vm9303_vm1, %v9300_v17 }
0x1968   :  { %5677 = vrot.lane.b32.xlu1 %v5579_v21, %s9302_s25  ;;  %8760 = vmatprep.subr.mxu1 %v9300_v17 }
0x196a   :  { %5685 = vrot.lane.b32.xlu0 %v5579_v21, %s9304_s3  ;;  %8753 = vmatmul.mubr.msk.f32.vlgmr.msra.gmra.mxu1 %vm417_vm2, %v5584_v23 }
0x196b   :  { %8761 = vmatpush3.xpose.msk.msra.mxu1 %vm417_vm2, %v10514_v24  ;;  %8762 = vmatprep.mubr.msk.f32.mxu1 %vm9303_vm1, %v9300_v17 }
0x196c   :  { %5683 = vrot.lane.b32.xlu1 %v5584_v23, %s11023_s29  ;;  %8770 = vmatprep.subr.mxu1 %v9300_v17 }
0x1970   :  { %5701 = vrot.lane.b32.xlu1 %v10479_v60, %s9304_s3 }
0x1974   :  { %5687 = vrot.lane.b32.xlu1 %v5584_v23, %s9304_s3 }
0x19d6   :  { %v5680_v48 = vpop.permute.xlu1 %5679 }
0x19d7   :  { %8763 = vmatmul.mubr.msk.f32.vlgmr.msra.gmra.mxu1 %vm417_vm2, %v5680_v48  ;;  %v9115_v48 = vld [vmem:[%s11022_s8 + $0x28] sm:$0xff] }
0x19d8   :  { %8771 = vmatpush3.xpose.msk.msra.mxu1 %vm417_vm2, %v10527_v34  ;;  %8772 = vmatprep.mubr.msk.f32.mxu1 %vm9303_vm1, %v9300_v17  ;;  %v5682_v22 = vpop.permute.xlu0 %5681 }
0x19d9   :  { %8780 = vmatprep.subr.mxu1 %v9300_v17 }
0x19da   :  { %v5678_v1 = vpop.permute.xlu1 %5677 }
0x19db   :  { %8758 = vmatmul.mubr.msk.f32.vlgmr.msra.gmra.mxu0 %vm417_vm2, %v5678_v1 }
0x19dc   :  { %8766 = vmatpush3.xpose.msk.msra.mxu0 %vm417_vm2, %v10525_v51  ;;  %8767 = vmatprep.mubr.msk.f32.mxu0 %vm9303_vm1, %v9300_v17  ;;  %v5686_v31 = vpop.permute.xlu0 %5685 }
0x19dd   :  { %8775 = vmatprep.subr.mxu0 %v9300_v17 }
0x19de   :  { %v5684_v43 = vpop.permute.xlu1 %5683 }
0x19df   :  { %8768 = vmatmul.mubr.msk.f32.vlgmr.msra.gmra.mxu0 %vm417_vm2, %v5682_v22  ;;  %8773 = vmatmul.mubr.msk.f32.vlgmr.msra.gmra.mxu1 %vm417_vm2, %v5684_v43 }
0x19e0   :  { %8776 = vmatpush3.xpose.msk.msra.mxu0 %vm417_vm2, %v10530_v30  ;;  %8777 = vmatprep.mubr.msk.f32.mxu0 %vm9303_vm1, %v9300_v17 }
0x19e1   :  { %8782 = vmatprep.mubr.msk.f32.mxu1 %vm9303_vm1, %v9300_v17  ;;  %8785 = vmatprep.subr.mxu0 %v9300_v17 }
0x19e2   :  { %v10552_v32 = vpop.permute.xlu1 %5701 }
0x19e3   :  { %8778 = vmatmul.mubr.msk.f32.vlgmr.msra.gmra.mxu0 %vm417_vm2, %v5686_v31  ;;  %8781 = vmatpush3.xpose.msk.msra.mxu1 %vm417_vm2, %v10552_v32 }
0x19e4   :  { %8790 = vmatprep.subr.mxu1 %v9300_v17  ;;  %8787 = vmatprep.mubr.msk.f32.mxu0 %vm9303_vm1, %v9300_v17 }
0x19e6   :  { %v5688_v52 = vpop.permute.xlu1 %5687 }
0x19e7   :  { %8783 = vmatmul.mubr.msk.f32.vlgmr.msra.gmra.mxu1 %vm417_vm2, %v5688_v52 }
0x19e8   :  { %8792 = vmatprep.mubr.msk.f32.mxu1 %vm9303_vm1, %v9300_v17 }
0x1a26   :  { %v5778_v3 = vpop.f32.mrf.mxu1 }
0x1a27   :  { %v6300_v25 = vmul.f32 0.35355338, %v5778_v3 }
0x1a28   :  { %v8749_v50 = vpop.f32.mrf.mxu1 }
0x1a29   :  { %v6308_v11 = vmul.f32 %v9110_v57, %v6300_v25  ;;  %v9116_v25 = vld [vmem:[%s11022_s8 + $0x30] sm:$0xff] }
0x1a2a   :  { %v5852_v33 = vpop.f32.mrf.mxu1 }
0x1a2b   :  { %v6301_v19 = vmul.f32 0.35355338, %v5852_v33  ;;  %v10567_v35 = vadd.f32 %v6308_v11, %v9933_v36 }
0x1a2c   :  { %v8754_v15 = vpop.f32.mrf.mxu1 }
0x1a2d   :  { %v6309_v37 = vmul.f32 %v9111_v38, %v6301_v19  ;;  %v6324_v41 = vsel %vm417_vm2, %v10567_v35, -inf }
0x1a2e   :  { %6325 = vmax.xlane.f32.xlu0 %v6324_v41 }
0x1a2f   :  { %v6317_v16 = vadd.f32 %v6309_v37, %v9938_v44 }
0x1a31   :  { %v6327_v62 = vsel %vm417_vm2, %v6317_v16, -inf }
0x1a32   :  { %6328 = vmax.xlane.f32.xlu1 %v6327_v62 }
0x1a97   :  { %v6000_v8 = vpop.f32.mrf.mxu1 }
0x1a98   :  { %v6303_v42 = vmul.f32 0.35355338, %v6000_v8 }
0x1a99   :  { %v8764_v49 = vpop.f32.mrf.mxu1 }
0x1a9a   :  { %v6311_v0 = vmul.f32 %v9112_v47, %v6303_v42 }
0x1a9b   :  { %v5926_v36 = vpop.f32.mrf.mxu0 }
0x1a9c   :  { %v6302_v12 = vmul.f32 0.35355338, %v5926_v36  ;;  %v6319_v43 = vadd.f32 %v6311_v0, %v9964_v18 }
0x1a9d   :  { %v8759_v14 = vpop.f32.mrf.mxu0 }
0x1a9e   :  { %v6310_v61 = vmul.f32 %v9113_v55, %v6302_v12  ;;  %v6333_v57 = vsel %vm417_vm2, %v6319_v43, -inf }
0x1a9f   :  { %v6074_v44 = vpop.f32.mrf.mxu0  ;;  %v6148_v53 = vpop.f32.mrf.mxu1 }
0x1aa0   :  { %v6304_v54 = vmul.f32 0.35355338, %v6074_v44  ;;  %v6305_v9 = vmul.f32 0.35355338, %v6148_v53  ;;  %v6318_v46 = vadd.f32 %v6310_v61, %v9959_v4 }
0x1aa1   :  { %v8769_v5 = vpop.f32.mrf.mxu0  ;;  %v8774_v23 = vpop.f32.mrf.mxu1 }
0x1aa2   :  { %v6312_v21 = vmul.f32 %v9114_v63, %v6304_v54  ;;  %v6313_v1 = vmul.f32 %v9115_v48, %v6305_v9  ;;  %v6330_v22 = vsel %vm417_vm2, %v6318_v46, -inf }
0x1aa3   :  { %6331 = vmax.xlane.f32.xlu0 %v6330_v22  ;;  %v6222_v31 = vpop.f32.mrf.mxu0 }
0x1aa4   :  { %v6306_v52 = vmul.f32 0.35355338, %v6222_v31  ;;  %v6320_v4 = vadd.f32 %v6312_v21, %v9966_v29  ;;  %v6321_v33 = vadd.f32 %v6313_v1, %v9972_v40  ;;  %v9117_v29 = vld [vmem:[%s11022_s8 + $0x38] sm:$0xff] }
0x1aa5   :  { %v8779_v3 = vpop.f32.mrf.mxu0 }
0x1aa6   :  { %v6314_v50 = vmul.f32 %v9116_v25, %v6306_v52  ;;  %v6336_v11 = vsel %vm417_vm2, %v6320_v4, -inf  ;;  %v6339_v41 = vsel %vm417_vm2, %v6321_v33, -inf }
0x1aa7   :  { %6334 = vmax.xlane.f32.xlu0 %v6333_v57  ;;  %v6296_v19 = vpop.f32.mrf.mxu1  ;;  %6337 = vmax.xlane.f32.xlu1 %v6336_v11 }
0x1aa8   :  { %v6307_v18 = vmul.f32 0.35355338, %v6296_v19  ;;  %v6322_v15 = vadd.f32 %v6314_v50, %v9977_v58 }
0x1aa9   :  { %v8784_v38 = vpop.f32.mrf.mxu1 }
0x1aaa   :  { %v6315_v37 = vmul.f32 %v9117_v29, %v6307_v18  ;;  %v6342_v62 = vsel %vm417_vm2, %v6322_v15, -inf }
0x1aab   :  { %6340 = vmax.xlane.f32.xlu0 %v6339_v41  ;;  %6343 = vmax.xlane.f32.xlu1 %v6342_v62 }
0x1aac   :  { %v6323_v40 = vadd.f32 %v6315_v37, %v9983_v7 }
0x1aae   :  { %v6345_v8 = vsel %vm417_vm2, %v6323_v40, -inf }
0x1aaf   :  { %6346 = vmax.xlane.f32.xlu0 %v6345_v8 }
0x1ab7   :  { %v6326_v49 = vpop.xlane.xlu0 %6325 }
0x1abb   :  { %v6329_v58 = vpop.xlane.xlu1 %6328 }
0x1abc   :  { %6412 = vrot.lane.b32.xlu1 %v10483_v28, %s9305_s7  ;;  %v6349_v7 = vsub.f32 %v6317_v16, %v6329_v58  ;;  %v6348_v28 = vsub.f32 %v10567_v35, %v6326_v49 }
0x1abe   :  { %v6358_v42 = vmul.f32 1.442695, %v6349_v7  ;;  %v6356_v36 = vmul.f32 1.442695, %v6348_v28 }
0x1ac0   :  { %6564 = vrot.lane.b32.xlu1 %v10496_v20, %s9305_s7  ;;  %9051 = vpow2.f32 %v6358_v42 }
0x1ac1   :  { %9053 = vpow2.f32 %v6356_v36 }
0x1ac4   :  { %6640 = vrot.lane.b32.xlu1 %v10514_v24, %s9305_s7 }
0x1ac5   :  { %6488 = vrot.lane.b32.xlu0 %v10479_v60, %s9305_s7 }
0x1ac8   :  { %6792 = vrot.lane.b32.xlu1 %v10527_v34, %s9305_s7 }
0x1ac9   :  { %6716 = vrot.lane.b32.xlu0 %v10525_v51, %s9305_s7 }
0x1acd   :  { %v10619_v20 = vpop.eup %9051 }
0x1ace   :  { %v6375_v60 = vsel %vm417_vm2, %v10619_v20, 0.0  ;;  %v10623_v24 = vpop.eup %9053 }
0x1acf   :  { %v6372_v51 = vsel %vm417_vm2, %v10623_v24, 0.0 }
0x1ae8   :  { %6376 = vadd.xlane.f32.xlu0 %v6375_v60 }
0x1aec   :  { %6373 = vadd.xlane.f32.xlu1 %v6372_v51 }
0x1b2c   :  { %v6332_v34 = vpop.xlane.xlu0 %6331 }
0x1b2d   :  { %v6350_v16 = vsub.f32 %v6318_v46, %v6332_v34 }
0x1b2f   :  { %v6360_v12 = vmul.f32 1.442695, %v6350_v16 }
0x1b30   :  { %v6338_v35 = vpop.xlane.xlu1 %6337  ;;  %v6335_v14 = vpop.xlane.xlu0 %6334 }
0x1b31   :  { %9055 = vpow2.f32 %v6360_v12  ;;  %v6352_v47 = vsub.f32 %v6320_v4, %v6338_v35  ;;  %v6351_v0 = vsub.f32 %v6319_v43, %v6335_v14 }
0x1b33   :  { %v6364_v55 = vmul.f32 1.442695, %v6352_v47  ;;  %v6362_v61 = vmul.f32 1.442695, %v6351_v0 }
0x1b34   :  { %v6344_v44 = vpop.xlane.xlu1 %6343  ;;  %v6341_v53 = vpop.xlane.xlu0 %6340 }
0x1b35   :  { %9057 = vpow2.f32 %v6364_v55  ;;  %v6354_v54 = vsub.f32 %v6322_v15, %v6344_v44  ;;  %v6353_v9 = vsub.f32 %v6321_v33, %v6341_v53 }
0x1b36   :  { %9059 = vpow2.f32 %v6362_v61 }
0x1b37   :  { %v6368_v5 = vmul.f32 1.442695, %v6354_v54  ;;  %v6366_v23 = vmul.f32 1.442695, %v6353_v9 }
0x1b38   :  { %v6413_v63 = vpop.permute.xlu1 %6412  ;;  %v6347_v21 = vpop.xlane.xlu0 %6346 }
0x1b39   :  { %9061 = vpow2.f32 %v6368_v5  ;;  %v6355_v46 = vsub.f32 %v6323_v40, %v6347_v21  ;;  %8786 = vmatpush3.msra.mxu0 %v6413_v63  ;;  %v8036_v5 = vld [vmem:[%s10979_s13 + $0x38] sm:$0xff]  ;;  %v8034_v63 = vld [vmem:[%s10979_s13 + $0x28] sm:$0xff] }
0x1b3a   :  { %9063 = vpow2.f32 %v6366_v23  ;;  %8795 = vmatprep.subr.mxu0 %v9300_v17  ;;  %v8035_v23 = vld [vmem:[%s10979_s13 + $0x30] sm:$0xff] }
0x1b3b   :  { %v6370_v48 = vmul.f32 1.442695, %v6355_v46  ;;  %v8033_v46 = vld [vmem:[%s10979_s13 + $0x20] sm:$0xff] }
0x1b3c   :  { %v6489_v1 = vpop.permute.xlu0 %6488  ;;  %v6565_v18 = vpop.permute.xlu1 %6564 }
0x1b3d   :  { %9065 = vpow2.f32 %v6370_v48  ;;  %8791 = vmatpush3.msra.mxu1 %v6489_v1 }
0x1b3e   :  { %v9056_v22 = vpop.eup %9055  ;;  %8800 = vmatprep.subr.mxu1 %v9300_v17 }
0x1b3f   :  { %v6378_v43 = vsel %vm417_vm2, %v9056_v22, 0.0 }
0x1b40   :  { %6379 = vadd.xlane.f32.xlu1 %v6378_v43  ;;  %v6641_v15 = vpop.permute.xlu1 %6640  ;;  %v6717_v38 = vpop.permute.xlu0 %6716 }
0x1b42   :  { %v9058_v31 = vpop.eup %9057 }
0x1b43   :  { %v9060_v52 = vpop.eup %9059  ;;  %v6384_v4 = vsel %vm417_vm2, %v9058_v31, 0.0 }
0x1b44   :  { %6385 = vadd.xlane.f32.xlu1 %v6384_v4  ;;  %v6381_v3 = vsel %vm417_vm2, %v9060_v52, 0.0  ;;  %v6793_v29 = vpop.permute.xlu1 %6792 }
0x1b45   :  { %6382 = vadd.xlane.f32.xlu0 %v6381_v3 }
0x1b46   :  { %v9062_v25 = vpop.eup %9061 }
0x1b47   :  { %v10632_v50 = vpop.eup %9063  ;;  %v6390_v57 = vsel %vm417_vm2, %v9062_v25, 0.0 }
0x1b48   :  { %6391 = vadd.xlane.f32.xlu1 %v6390_v57  ;;  %v6387_v11 = vsel %vm417_vm2, %v10632_v50, 0.0 }
0x1b49   :  { %6388 = vadd.xlane.f32.xlu0 %v6387_v11 }
0x1b4a   :  { %v10637_v33 = vpop.eup %9065 }
0x1b4b   :  { %v6393_v19 = vsel %vm417_vm2, %v10637_v33, 0.0 }
0x1b4d   :  { %6394 = vadd.xlane.f32.xlu0 %v6393_v19 }
0x1b59   :  { %6944 = vrot.lane.b32.xlu1 %v10552_v32, %s9305_s7 }
0x1b63   :  { %6868 = vrot.lane.b32.xlu0 %v10530_v30, %s9305_s7 }
0x1b71   :  { %v6377_v37 = vpop.xlane.xlu0 %6376 }
0x1b72   :  { %9067 = vrcp.f32 %v6377_v37 }
0x1b75   :  { %v6374_v41 = vpop.xlane.xlu1 %6373 }
0x1b76   :  { %9069 = vrcp.f32 %v6374_v41 }
0x1b7f   :  { %v9068_v62 = vpop.eup %9067 }
0x1b80   :  { %v6405_v40 = vmul.f32 %v9068_v62, %v10619_v20 }
0x1b82   :  { %8793 = vmatmul.mubr.msk.f32.vlgmr.msra.gmra.mxu1 %vm417_vm2, %v6405_v40 }
0x1b83   :  { %v9070_v8 = vpop.eup %9069  ;;  %8801 = vmatpush3.msra.mxu1 %v6641_v15  ;;  %8802 = vmatprep.mubr.msk.f32.mxu1 %vm9303_vm1, %v9300_v17 }
0x1b84   :  { %v6404_v30 = vmul.f32 %v9070_v8, %v10623_v24  ;;  %8810 = vmatprep.subr.mxu1 %v9300_v17 }
0x1b86   :  { %8788 = vmatmul.mubr.msk.f32.vlgmr.msra.gmra.mxu0 %vm417_vm2, %v6404_v30  ;;  %v7053_v30 = vrot.slane %v10419_v39, %v3505_v10 }
0x1b87   :  { %8796 = vmatpush3.msra.mxu0 %v6565_v18  ;;  %8797 = vmatprep.mubr.msk.f32.mxu0 %vm9303_vm1, %v9300_v17 }
0x1b88   :  { %8805 = vmatprep.subr.mxu0 %v9300_v17 }
0x1bc9   :  { %v6380_v32 = vpop.xlane.xlu1 %6379 }
0x1bca   :  { %9071 = vrcp.f32 %v6380_v32 }
0x1bcd   :  { %v6386_v58 = vpop.xlane.xlu1 %6385 }
0x1bce   :  { %9073 = vrcp.f32 %v6386_v58  ;;  %v6383_v7 = vpop.xlane.xlu0 %6382 }
0x1bcf   :  { %9075 = vrcp.f32 %v6383_v7 }
0x1bd1   :  { %v6392_v49 = vpop.xlane.xlu1 %6391 }
0x1bd2   :  { %9077 = vrcp.f32 %v6392_v49  ;;  %v6389_v28 = vpop.xlane.xlu0 %6388 }
0x1bd3   :  { %9079 = vrcp.f32 %v6389_v28 }
0x1bd5   :  { %v6945_v0 = vpop.permute.xlu1 %6944 }
0x1bd6   :  { %v6395_v42 = vpop.xlane.xlu0 %6394 }
0x1bd7   :  { %v9072_v36 = vpop.eup %9071  ;;  %9081 = vrcp.f32 %v6395_v42 }
0x1bd8   :  { %v6406_v20 = vmul.f32 %v9072_v36, %v9056_v22 }
0x1bda   :  { %8798 = vmatmul.mubr.msk.f32.vlgmr.msra.gmra.mxu0 %vm417_vm2, %v6406_v20  ;;  %v6869_v16 = vpop.permute.xlu0 %6868 }
0x1bdb   :  { %v9074_v60 = vpop.eup %9073  ;;  %8806 = vmatpush3.msra.mxu0 %v6717_v38  ;;  %8807 = vmatprep.mubr.msk.f32.mxu0 %vm9303_vm1, %v9300_v17 }
0x1bdc   :  { %v9076_v24 = vpop.eup %9075  ;;  %8815 = vmatprep.subr.mxu0 %v9300_v17  ;;  %v6408_v51 = vmul.f32 %v9074_v60, %v9058_v31 }
0x1bdd   :  { %v6407_v34 = vmul.f32 %v9076_v24, %v9060_v52 }
0x1bde   :  { %8808 = vmatmul.mubr.msk.f32.vlgmr.msra.gmra.mxu0 %vm417_vm2, %v6408_v51 }
0x1bdf   :  { %v9078_v12 = vpop.eup %9077  ;;  %8803 = vmatmul.mubr.msk.f32.vlgmr.msra.gmra.mxu1 %vm417_vm2, %v6407_v34  ;;  %8816 = vmatpush3.msra.mxu0 %v6869_v16 }
0x1be0   :  { %v9080_v35 = vpop.eup %9079  ;;  %8811 = vmatpush3.msra.mxu1 %v6793_v29  ;;  %8812 = vmatprep.mubr.msk.f32.mxu1 %vm9303_vm1, %v9300_v17  ;;  %v6410_v14 = vmul.f32 %v9078_v12, %v9062_v25 }
0x1be1   :  { %8817 = vmatprep.mubr.msk.f32.mxu0 %vm9303_vm1, %v9300_v17  ;;  %8820 = vmatprep.subr.mxu1 %v9300_v17  ;;  %v6409_v47 = vmul.f32 %v9080_v35, %v10632_v50 }
0x1be2   :  { %8818 = vmatmul.mubr.msk.f32.vlgmr.msra.gmra.mxu0 %vm417_vm2, %v6410_v14  ;;  %8825 = vmatprep.subr.mxu0 %v8036_v5  ;;  %v8066_v14 = vld [vmem:[%s10980_s14 + $0x38] sm:$0xff] }
0x1be3   :  { %8813 = vmatmul.mubr.msk.f32.vlgmr.msra.gmra.mxu1 %vm417_vm2, %v6409_v47  ;;  %8826 = vmatpush3.msra.mxu0 %v8036_v5  ;;  %v8065_v47 = vld [vmem:[%s10980_s14 + $0x30] sm:$0xff] }
0x1be4   :  { %v9082_v55 = vpop.eup %9081  ;;  %8821 = vmatpush3.msra.mxu1 %v6945_v0  ;;  %8822 = vmatprep.mubr.msk.f32.mxu1 %vm9303_vm1, %v9300_v17  ;;  %v8064_v0 = vld [vmem:[%s10980_s14 + $0x28] sm:$0xff] }
0x1be5   :  { %v6411_v61 = vmul.f32 %v9082_v55, %v10637_v33  ;;  %8827 = vmatprep.subr.mxu0 %v8035_v23  ;;  %8836 = vmatprep.subr.mxu1 %v8066_v14  ;;  %v8063_v55 = vld [vmem:[%s10980_s14 + $0x20] sm:$0xff] }
0x1be6   :  { %8828 = vmatpush3.msra.mxu0 %v8035_v23 }
0x1be7   :  { %8823 = vmatmul.mubr.msk.f32.vlgmr.msra.gmra.mxu1 %vm417_vm2, %v6411_v61  ;;  %8829 = vmatprep.subr.mxu0 %v8034_v63  ;;  %v8077_v61 = vld [vmem:[%s10982_s16 + $0x78] sm:$0xff] }
0x1be8   :  { %8830 = vmatpush3.msra.mxu0 %v8034_v63  ;;  %8837 = vmatpush3.msra.mxu1 %v8066_v14 }
0x1be9   :  { %8831 = vmatprep.subr.mxu0 %v8033_v46  ;;  %8838 = vmatprep.subr.mxu1 %v8065_v47 }
0x1bea   :  { %8832 = vmatpush3.msra.mxu0 %v8033_v46  ;;  %8839 = vmatpush3.msra.mxu1 %v8065_v47 }
0x1beb   :  { %8840 = vmatprep.subr.mxu1 %v8064_v0  ;;  %8847 = vmatprep.subr.mxu0 %v8077_v61 }
0x1bec   :  { %8841 = vmatpush3.msra.mxu1 %v8064_v0 }
0x1bed   :  { %8842 = vmatprep.subr.mxu1 %v8063_v55 }
0x1bee   :  { %8843 = vmatpush3.msra.mxu1 %v8063_v55 }
0x1bef   :  { %8866 = vmatprep.subr.mxu1 %v9300_v17 }
0x1c42   :  { %v6560_v44 = vpop.f32.mrf.mxu1 }
0x1c44   :  { %v8794_v53 = vpop.f32.mrf.mxu1 }
0x1c45   :  { %v8075_v53 = vld [vmem:[%s10982_s16 + $0x68] sm:$0xff] }
0x1c46   :  { %v6484_v54 = vpop.f32.mrf.mxu0 }
0x1c48   :  { %v8789_v9 = vpop.f32.mrf.mxu0 }
0x1c9a   :  { %v6636_v21 = vpop.f32.mrf.mxu0 }
0x1c9b   :  { %7022 = vrot.lane.b32.xlu0 %v6636_v21, %s9291_s0 }
0x1c9c   :  { %v8799_v48 = vpop.f32.mrf.mxu0 }
0x1c9e   :  { %v6788_v1 = vpop.f32.mrf.mxu0 }
0x1c9f   :  { %v6712_v22 = vpop.f32.mrf.mxu1  ;;  %7030 = vrot.lane.b32.xlu0 %v6788_v1, %s9294_s28 }
0x1ca0   :  { %7024 = vrot.lane.b32.xlu1 %v6712_v22, %s9291_s0  ;;  %v8809_v43 = vpop.f32.mrf.mxu0 }
0x1ca1   :  { %v8804_v31 = vpop.f32.mrf.mxu1 }
0x1ca2   :  { %v6940_v52 = vpop.f32.mrf.mxu0 }
0x1ca3   :  { %v6864_v4 = vpop.f32.mrf.mxu1  ;;  %7038 = vrot.lane.b32.xlu0 %v6940_v52, %s9307_s23 }
0x1ca4   :  { %7032 = vrot.lane.b32.xlu1 %v6864_v4, %s9294_s28  ;;  %v8819_v3 = vpop.f32.mrf.mxu0 }
0x1ca5   :  { %v8814_v25 = vpop.f32.mrf.mxu1 }
0x1ca7   :  { %v7016_v50 = vpop.f32.mrf.mxu1 }
0x1ca8   :  { %7040 = vrot.lane.b32.xlu1 %v7016_v50, %s9307_s23 }
0x1ca9   :  { %v8824_v57 = vpop.f32.mrf.mxu1 }
0x1caa   :  { %v7180_v57 = vrot.slane %v10419_v39, %v3632_v13  ;;  %v8073_v13 = vld [vmem:[%s10982_s16 + $0x58] sm:$0xff] }
0x1d0d   :  { %v7023_v11 = vpop.permute.xlu0 %7022 }
0x1d0e   :  { %v7044_v18 = vsel %vm417_vm2, %v6484_v54, %v7023_v11  ;;  %v8074_v54 = vld [vmem:[%s10982_s16 + $0x60] sm:$0xff] }
0x1d11   :  { %v7031_v33 = vpop.permute.xlu0 %7030 }
0x1d12   :  { %v7025_v19 = vpop.permute.xlu1 %7024  ;;  %v7046_v15 = vsel %vm1786_vm3, %v7044_v18, %v7031_v33 }
0x1d13   :  { %v7045_v41 = vsel %vm417_vm2, %v6560_v44, %v7025_v19  ;;  %v8076_v44 = vld [vmem:[%s10982_s16 + $0x70] sm:$0xff]  ;;  %v7186_v19 = vrot.slane %v10419_v39, %v3638_v26 }
0x1d14   :  { %v8072_v26 = vld [vmem:[%s10982_s16 + $0x50] sm:$0xff] }
0x1d15   :  { %v7039_v38 = vpop.permute.xlu0 %7038 }
0x1d16   :  { %v7033_v29 = vpop.permute.xlu1 %7032  ;;  %v7048_v37 = vsel %vm1789_vm4, %v7046_v15, %v7039_v38 }
0x1d17   :  { %8833 = vmatprep.mubr.msk.f32.mxu0 %vm221_vm0, %v7048_v37  ;;  %v7047_v62 = vsel %vm1786_vm3, %v7045_v41, %v7033_v29 }
0x1d1a   :  { %v7041_v40 = vpop.permute.xlu1 %7040 }
0x1d1b   :  { %v7049_v8 = vsel %vm1789_vm4, %v7047_v62, %v7041_v40  ;;  %v8071_v62 = vld [vmem:[%s10982_s16 + $0x48] sm:$0xff]  ;;  %v8070_v40 = vld [vmem:[%s10982_s16 + $0x40] sm:$0xff] }
0x1d1c   :  { %8834 = vmatmul.mubr.msk.f32.vlgmr.msra.gmra.mxu0 %vm221_vm0, %v7049_v8  ;;  %v8067_v8 = vld [vmem:[#allocation13 + $0x1] ss:$0 sm:$0xff] }
0x1d1d   :  { %8848 = vmatpush3.msra.mxu0 %v8077_v61 }
0x1d1e   :  { %8849 = vmatprep.subr.mxu0 %v8076_v44 }
0x1d1f   :  { %8850 = vmatpush3.msra.mxu0 %v8076_v44 }
0x1d20   :  { %8851 = vmatprep.subr.mxu0 %v8075_v53 }
0x1d21   :  { %8852 = vmatpush3.msra.mxu0 %v8075_v53 }
0x1d22   :  { %8853 = vmatprep.subr.mxu0 %v8074_v54 }
0x1d23   :  { %8854 = vmatpush3.msra.mxu0 %v8074_v54 }
0x1d24   :  { %8855 = vmatprep.subr.mxu0 %v8073_v13 }
0x1d25   :  { %8856 = vmatpush3.msra.mxu0 %v8073_v13  ;;  %v7511_v13 = vld [vmem:[%s10984_s18 + $0x20] sm:$0xff] }
0x1d26   :  { %8857 = vmatprep.subr.mxu0 %v8072_v26 }
0x1d27   :  { %8858 = vmatpush3.msra.mxu0 %v8072_v26  ;;  %v7510_v26 = vld [vmem:[%s10984_s18 + $0x18] sm:$0xff] }
0x1d28   :  { %8859 = vmatprep.subr.mxu0 %v8071_v62 }
0x1d29   :  { %8860 = vmatpush3.msra.mxu0 %v8071_v62  ;;  %v7509_v62 = vld [vmem:[%s10984_s18 + $0x10] sm:$0xff] }
0x1d2a   :  { %8861 = vmatprep.subr.mxu0 %v8070_v40 }
0x1d2b   :  { %8862 = vmatpush3.msra.mxu0 %v8070_v40  ;;  %v7508_v40 = vld [vmem:[%s10984_s18 + $0x8] sm:$0xff] }
0x1d2c   :  { %8873 = vmatprep.subr.mxu0 %v9300_v17 }
0x1ddc   :  { %v8835_v32 = vpop.f32.mrf.mxu0 }
0x1ddd   :  { %v7132_v58 = vadd.f32 %v8835_v32, %v7053_v30 }
0x1dde   :  { %v7126_v7 = vpop.f32.mrf.mxu0 }
0x1ddf   :  { %v7136_v49 = vadd.f32 %v7132_v58, %v10473_v6  ;;  %v7127_v28 = vadd.f32 %v7126_v7, %v7053_v30 }
0x1de1   :  { %v7135_v42 = vadd.f32 %v7127_v28, %v10469_v56  ;;  %v7140_v36 = vsel %vm221_vm0, %v7136_v49, 0.0 }
0x1de2   :  { %7141 = vadd.xlane.f32.xlu1 %v7140_v36 }
0x1de3   :  { %v7137_v20 = vsel %vm221_vm0, %v7135_v42, 0.0 }
0x1de4   :  { %7138 = vadd.xlane.f32.xlu0 %v7137_v20 }
0x1e6b   :  { %v7142_v60 = vpop.xlane.xlu1 %7141 }
0x1e6c   :  { %v7144_v24 = vmul.f32 0.03125, %v7142_v60 }
0x1e6d   :  { %v7139_v51 = vpop.xlane.xlu0 %7138 }
0x1e6e   :  { %v7143_v34 = vmul.f32 0.03125, %v7139_v51  ;;  %v10706_v16 = vsub.f32 %v7136_v49, %v7144_v24 }
0x1e70   :  { %v7145_v10 = vsub.f32 %v7135_v42, %v7143_v34  ;;  %v7148_v6 = vmul.f32 %v10706_v16, %v10706_v16  ;;  %v7297_v42 = vrot.slane %v10419_v39, %v3746_v45 }
0x1e72   :  { %v7147_v12 = vmul.f32 %v7145_v10, %v7145_v10  ;;  %v7152_v56 = vsel %vm221_vm0, %v7148_v6, 0.0 }
0x1e74   :  { %v7149_v35 = vsel %vm221_vm0, %v7147_v12, 0.0 }
0x1e75   :  { %7150 = vadd.xlane.f32.xlu0 %v7149_v35 }
0x1e79   :  { %7153 = vadd.xlane.f32.xlu0 %v7152_v56 }
0x1efe   :  { %v7151_v9 = vpop.xlane.xlu0 %7150 }
0x1eff   :  { %v7155_v5 = vmul.f32 0.032258064, %v7151_v9 }
0x1f01   :  { %9083 = vrsqrt.f32 %v7155_v5  ;;  %vm7159_vm2 = vcmp.eq.f32.partialorder %v7155_v5, inf  ;;  %v7162_v48 = vand.u32 2147483648, %v7155_v5  ;;  %vm7161_vm4 = vcmp.eq.f32.partialorder %v7155_v5, 0.0 }
0x1f02   :  { %v7154_v23 = vpop.xlane.xlu0 %7153 }
0x1f03   :  { %v7156_v63 = vmul.f32 0.032258064, %v7154_v23 }
0x1f05   :  { %9085 = vrsqrt.f32 %v7156_v63  ;;  %vm7166_vm11 = vcmp.eq.f32.partialorder %v7156_v63, inf  ;;  %v7169_v4 = vand.u32 2147483648, %v7156_v63  ;;  %vm7168_vm12 = vcmp.eq.f32.partialorder %v7156_v63, 0.0 }
0x1f0e   :  { %v9084_v21 = vpop.eup %9083 }
0x1f0f   :  { %v7158_v46 = vmul.f32 %v9084_v21, %v7155_v5 }
0x1f11   :  { %v7160_v1 = vsel %vm7159_vm2, %v7155_v5, %v7158_v46 }
0x1f12   :  { %v9086_v22 = vpop.eup %9085  ;;  %v7163_v43 = vsel %vm7161_vm4, %v7162_v48, %v7160_v1 }
0x1f13   :  { %v7171_v31 = vadd.f32 1e-12, %v7163_v43  ;;  %v7165_v52 = vmul.f32 %v9086_v22, %v7156_v63 }
0x1f15   :  { %9087 = vrcp.f32 %v7171_v31  ;;  %v7167_v3 = vsel %vm7166_vm11, %v7156_v63, %v7165_v52  ;;  %v7982_v52 = vld [vmem:[%s10983_s17 + $0x18] sm:$0x3] }
0x1f16   :  { %v7170_v25 = vsel %vm7168_vm12, %v7169_v4, %v7167_v3  ;;  %v7424_v4 = vrot.slane %v7982_v52, %v9767_v59 }
0x1f17   :  { %v7172_v50 = vadd.f32 1e-12, %v7170_v25 }
0x1f19   :  { %9089 = vrcp.f32 %v7172_v50  ;;  %v7430_v50 = vrot.slane %v7982_v52, %v9863_v2 }
0x1f22   :  { %v9088_v11 = vpop.eup %9087 }
0x1f23   :  { %v7175_v33 = vmul.f32 %v9088_v11, %v7145_v10 }
0x1f25   :  { %v7181_v18 = vmul.f32 %v7180_v57, %v7175_v33 }
0x1f26   :  { %v9090_v15 = vpop.eup %9089 }
0x1f27   :  { %v7176_v38 = vmul.f32 %v9090_v15, %v10706_v16  ;;  %v7187_v29 = vadd.f32 %v7186_v19, %v7181_v18 }
0x1f29   :  { %v7182_v37 = vmul.f32 %v7180_v57, %v7176_v38  ;;  %8844 = vmatprep.mubr.msk.f32.mxu1 %vm221_vm0, %v7187_v29  ;;  %v7433_v38 = vld [vmem:[%s11025_s15] sm:$0x3] }
0x1f2b   :  { %v7188_v41 = vadd.f32 %v7186_v19, %v7182_v37  ;;  %v7513_v37 = vld [vmem:[%s10984_s18 + $0x30] sm:$0xff] }
0x1f2d   :  { %8845 = vmatmul.mubr.msk.f32.vlgmr.msra.gmra.mxu1 %vm221_vm0, %v7188_v41 }
0x1f2e   :  { %8870 = vmatprep.mubr.msk.f32.mxu1 %vm9303_vm1, %v9300_v17 }
0x1fed   :  { %v8846_v30 = vpop.f32.mrf.mxu1 }
0x1fee   :  { %v7280_v32 = vadd.f32 %v8846_v30, %v8067_v8  ;;  %v7634_v30 = vld [vmem:[%s10986_s20 + $0xf8] sm:$0xff] }
0x1fef   :  { %v7274_v58 = vpop.f32.mrf.mxu1 }
0x1ff0   :  { %v7275_v7 = vadd.f32 %v8067_v8, %v7274_v58  ;;  %v7284_v28 = vmax.f32 %v7280_v32, 0.0  ;;  %v7507_v8 = vld [vmem:[%s10984_s18] sm:$0xff]  ;;  %v7618_v32 = vld [vmem:[%s10986_s20 + $0x78] sm:$0xff] }
0x1ff2   :  { %v7283_v49 = vmax.f32 %v7275_v7, 0.0  ;;  %v7633_v7 = vld [vmem:[%s10986_s20 + $0xf0] sm:$0xff] }
0x1ff4   :  { %8863 = vmatprep.mubr.msk.f32.mxu0 %vm3748_vm13, %v7283_v49  ;;  %v7617_v49 = vld [vmem:[%s10986_s20 + $0x70] sm:$0xff] }
0x1ff5   :  { %8864 = vmatmul.mubr.msk.f32.vlgmr.msra.gmra.mxu0 %vm3748_vm13, %v7284_v28 }
0x1ff6   :  { %8889 = vmatprep.mubr.msk.f32.mxu0 %vm9303_vm1, %v9300_v17 }
0x20b5   :  { %v8865_v36 = vpop.f32.mrf.mxu0 }
0x20b6   :  { %v7376_v20 = vadd.f32 %v8865_v36, %v7297_v42  ;;  %v7616_v36 = vld [vmem:[%s10986_s20 + $0x68] sm:$0xff] }
0x20b7   :  { %v7370_v60 = vpop.f32.mrf.mxu0 }
0x20b8   :  { %v7380_v24 = vadd.f32 %v7376_v20, %v7188_v41  ;;  %v7371_v51 = vadd.f32 %v7370_v60, %v7297_v42  ;;  %v7512_v41 = vld [vmem:[%s10984_s18 + $0x28] sm:$0xff]  ;;  %v7631_v20 = vld [vmem:[%s10986_s20 + $0xe0] sm:$0xff] }
0x20b9   :  { %v7632_v42 = vld [vmem:[%s10986_s20 + $0xe8] sm:$0xff]  ;;  %v7615_v60 = vld [vmem:[%s10986_s20 + $0x60] sm:$0xff] }
0x20ba   :  { %v7379_v34 = vadd.f32 %v7371_v51, %v7187_v29  ;;  %v7384_v16 = vsel %vm221_vm0, %v7380_v24, 0.0  ;;  %v7514_v29 = vld [vmem:[%s10984_s18 + $0x38] sm:$0xff] }
0x20bb   :  { %7385 = vadd.xlane.f32.xlu1 %v7384_v16  ;;  %v7614_v51 = vld [vmem:[%s10986_s20 + $0x58] sm:$0xff]  ;;  %v7613_v16 = vld [vmem:[%s10986_s20 + $0x50] sm:$0xff] }
0x20bc   :  { %v7381_v10 = vsel %vm221_vm0, %v7379_v34, 0.0 }
0x20bd   :  { %7382 = vadd.xlane.f32.xlu0 %v7381_v10  ;;  %v7628_v10 = vld [vmem:[%s10986_s20 + $0xc8] sm:$0xff] }
0x2144   :  { %v7386_v12 = vpop.xlane.xlu1 %7385 }
0x2145   :  { %v7388_v35 = vmul.f32 0.03125, %v7386_v12  ;;  %v7612_v12 = vld [vmem:[%s10986_s20 + $0x48] sm:$0xff] }
0x2146   :  { %v7383_v6 = vpop.xlane.xlu0 %7382 }
0x2147   :  { %v7390_v56 = vsub.f32 %v7380_v24, %v7388_v35  ;;  %v7387_v14 = vmul.f32 0.03125, %v7383_v6  ;;  %v7630_v24 = vld [vmem:[%s10986_s20 + $0xd8] sm:$0xff]  ;;  %v7627_v35 = vld [vmem:[%s10986_s20 + $0xc0] sm:$0xff] }
0x2148   :  { %v7611_v6 = vld [vmem:[%s10986_s20 + $0x40] sm:$0xff] }
0x2149   :  { %v7389_v27 = vsub.f32 %v7379_v34, %v7387_v14  ;;  %v7392_v47 = vmul.f32 %v7390_v56, %v7390_v56  ;;  %v7629_v34 = vld [vmem:[%s10986_s20 + $0xd0] sm:$0xff]  ;;  %v7610_v14 = vld [vmem:[%s10986_s20 + $0x38] sm:$0xff] }
0x214b   :  { %v7396_v45 = vsel %vm221_vm0, %v7392_v47, 0.0  ;;  %v7391_v39 = vmul.f32 %v7389_v27, %v7389_v27  ;;  %v7609_v47 = vld [vmem:[%s10986_s20 + $0x30] sm:$0xff] }
0x214c   :  { %7397 = vadd.xlane.f32.xlu1 %v7396_v45  ;;  %v7624_v45 = vld [vmem:[%s10986_s20 + $0xa8] sm:$0xff] }
0x214d   :  { %v7393_v0 = vsel %vm221_vm0, %v7391_v39, 0.0  ;;  %v7608_v39 = vld [vmem:[%s10986_s20 + $0x28] sm:$0xff] }
0x214e   :  { %7394 = vadd.xlane.f32.xlu0 %v7393_v0  ;;  %v7623_v0 = vld [vmem:[%s10986_s20 + $0xa0] sm:$0xff] }
0x21d5   :  { %v7398_v55 = vpop.xlane.xlu1 %7397 }
0x21d6   :  { %v7400_v61 = vmul.f32 0.032258064, %v7398_v55  ;;  %v7607_v55 = vld [vmem:[%s10986_s20 + $0x20] sm:$0xff] }
0x21d7   :  { %v7395_v44 = vpop.xlane.xlu0 %7394 }
0x21d8   :  { %9091 = vrsqrt.f32 %v7400_v61  ;;  %v7399_v53 = vmul.f32 0.032258064, %v7395_v44  ;;  %vm7410_vm14 = vcmp.eq.f32.partialorder %v7400_v61, inf  ;;  %v7413_v5 = vand.u32 2147483648, %v7400_v61  ;;  %v7606_v44 = vld [vmem:[%s10986_s20 + $0x18] sm:$0xff] }
0x21d9   :  { %vm7412_vm15 = vcmp.eq.f32.partialorder %v7400_v61, 0.0 }
0x21da   :  { %9093 = vrsqrt.f32 %v7399_v53  ;;  %vm7403_vm5 = vcmp.eq.f32.partialorder %v7399_v53, inf  ;;  %v7406_v1 = vand.u32 2147483648, %v7399_v53  ;;  %vm7405_vm6 = vcmp.eq.f32.partialorder %v7399_v53, 0.0 }
0x21e5   :  { %v9092_v54 = vpop.eup %9091 }
0x21e6   :  { %v7409_v9 = vmul.f32 %v9092_v54, %v7400_v61  ;;  %v7605_v54 = vld [vmem:[%s10986_s20 + $0x10] sm:$0xff] }
0x21e7   :  { %v9094_v23 = vpop.eup %9093 }
0x21e8   :  { %v7411_v63 = vsel %vm7410_vm14, %v7400_v61, %v7409_v9  ;;  %v7402_v46 = vmul.f32 %v9094_v23, %v7399_v53  ;;  %v7622_v61 = vld [vmem:[%s10986_s20 + $0x98] sm:$0xff]  ;;  %v7620_v9 = vld [vmem:[%s10986_s20 + $0x88] sm:$0xff]  ;;  %v7619_v23 = vld [vmem:[%s10986_s20 + $0x80] sm:$0xff] }
0x21e9   :  { %v7414_v21 = vsel %vm7412_vm15, %v7413_v5, %v7411_v63  ;;  %v7604_v5 = vld [vmem:[%s10986_s20 + $0x8] sm:$0xff]  ;;  %v7603_v63 = vld [vmem:[%s10986_s20] sm:$0xff] }
0x21ea   :  { %v7416_v48 = vadd.f32 1e-12, %v7414_v21  ;;  %v7404_v22 = vsel %vm7403_vm5, %v7399_v53, %v7402_v46  ;;  %v7621_v53 = vld [vmem:[%s10986_s20 + $0x90] sm:$0xff]  ;;  %v7720_v21 = vld [vmem:[%s10988_s22 + $0x38] sm:$0xff] }
0x21eb   :  { %v7407_v43 = vsel %vm7405_vm6, %v7406_v1, %v7404_v22  ;;  %v7719_v46 = vld [vmem:[%s10988_s22 + $0x30] sm:$0xff]  ;;  %8874 = vmatpush3.msra.mxu0 %v7720_v21  ;;  %v7515_v1 = vld [vmem:[%s10985_s19] sm:$0x3] }
0x21ec   :  { %9095 = vrcp.f32 %v7416_v48  ;;  %v7415_v31 = vadd.f32 1e-12, %v7407_v43  ;;  %8875 = vmatprep.subr.mxu0 %v9300_v17  ;;  %v7718_v48 = vld [vmem:[%s10988_s22 + $0x28] sm:$0xff]  ;;  %v7520_v22 = vrot.slane %v7515_v1, %v9767_v59  ;;  %v7524_v43 = vrot.slane %v7515_v1, %v9863_v2  ;;  %v7716_v59 = vld [vmem:[%s10988_s22 + $0x18] sm:$0xff]  ;;  %v7715_v2 = vld [vmem:[%s10988_s22 + $0x10] sm:$0xff] }
0x21ed   :  { %8876 = vmatpush3.msra.mxu0 %v7719_v46 }
0x21ee   :  { %9097 = vrcp.f32 %v7415_v31  ;;  %8877 = vmatprep.subr.mxu0 %v9300_v17 }
0x21ef   :  { %8878 = vmatpush3.msra.mxu0 %v7718_v48 }
0x21f0   :  { %8879 = vmatprep.subr.mxu0 %v9300_v17 }
0x21f9   :  { %v9096_v3 = vpop.eup %9095 }
0x21fa   :  { %v7420_v25 = vmul.f32 %v9096_v3, %v7390_v56  ;;  %v7626_v56 = vld [vmem:[%s10986_s20 + $0xb8] sm:$0xff] }
0x21fb   :  { %v9098_v57 = vpop.eup %9097 }
0x21fc   :  { %v7426_v11 = vmul.f32 %v7424_v4, %v7420_v25  ;;  %v7419_v33 = vmul.f32 %v9098_v57, %v7389_v27  ;;  %v7625_v27 = vld [vmem:[%s10986_s20 + $0xb0] sm:$0xff]  ;;  %v7717_v57 = vld [vmem:[%s10988_s22 + $0x20] sm:$0xff] }
0x21fd   :  { %8880 = vmatpush3.msra.mxu0 %v7717_v57 }
0x21fe   :  { %v7432_v19 = vadd.f32 %v7430_v50, %v7426_v11  ;;  %v7425_v18 = vmul.f32 %v7424_v4, %v7419_v33  ;;  %8881 = vmatprep.subr.mxu0 %v9300_v17  ;;  %v7714_v11 = vld [vmem:[%s10988_s22 + $0x8] sm:$0xff]  ;;  %v7713_v33 = vld [vmem:[%s10988_s22] sm:$0xff] }
0x21ff   :  { %8882 = vmatpush3.msra.mxu0 %v7716_v59 }
0x2200   :  { %8867 = vmatpush3.msra.mxu1 %v7432_v19  ;;  %v7431_v15 = vadd.f32 %v7430_v50, %v7425_v18  ;;  %8883 = vmatprep.subr.mxu0 %v9300_v17  ;;  %v8082_v18 = vld [vmem:[%s10987_s21] ss:$0 sm:$0xff] }
0x2201   :  { %8868 = vmatprep.subr.mxu1 %v9300_v17  ;;  %8884 = vmatpush3.msra.mxu0 %v7715_v2 }
0x2202   :  { %8869 = vmatpush3.msra.mxu1 %v7431_v15  ;;  %8885 = vmatprep.subr.mxu0 %v9300_v17 }
0x2203   :  { %8871 = vmatmul.mubr.msk.f32.vlgmr.msra.gmra.mxu1 %vm1786_vm3, %v7433_v38  ;;  %7554 = vmatprep.subr.mxu1 %v7514_v29 }
0x2204   :  { %7555 = vmatpush1.msra.mxu1 %v7513_v37  ;;  %7594 = vmatprep.mubr.f32.mxu1 %v9300_v17 }
0x2205   :  { %7556 = vmatprep.subr.mxu1 %v7512_v41  ;;  %8886 = vmatpush3.msra.mxu0 %v7714_v11  ;;  %v7805_v41 = vld [vmem:[%s10990_s24 + $0x18] sm:$0xff] }
0x2206   :  { %7557 = vmatpush1.msra.mxu1 %v7511_v13  ;;  %8887 = vmatprep.subr.mxu0 %v9300_v17  ;;  %v7804_v13 = vld [vmem:[%s10990_s24 + $0x10] sm:$0xff] }
0x2207   :  { %7558 = vmatprep.subr.mxu1 %v7510_v26  ;;  %8888 = vmatpush3.msra.mxu0 %v7713_v33  ;;  %v7803_v26 = vld [vmem:[%s10990_s24 + $0x8] sm:$0xff] }
0x2208   :  { %7559 = vmatpush1.msra.mxu1 %v7509_v62  ;;  %8892 = vmatprep.subr.mxu0 %v9300_v17  ;;  %v7802_v62 = vld [vmem:[%s10990_s24] sm:$0xff] }
0x2209   :  { %7560 = vmatprep.subr.mxu1 %v7508_v40  ;;  %v8083_v40 = vld [vmem:[#allocation14] ss:$0 sm:$0xff] }
0x220a   :  { %7561 = vmatpush1.msra.mxu1 %v7507_v8 }
0x220b   :  { %8316 = vmatprep.subr.mxu1 %v7634_v30 }
0x22c3   :  { %v7503_v58 = vpop.f32.mrf.mxu1 }
0x22c4   :  { %8081 = vmatmul.mubr.msk.f32.vlgmr.msra.gmra.mxu1 %vm221_vm0, %v7503_v58 }
0x22c5   :  { %v8872_v28 = vpop.f32.mrf.mxu1  ;;  %8317 = vmatpush3.msra.mxu1 %v7618_v32 }
0x22c6   :  { %8318 = vmatprep.subr.mxu1 %v7633_v7  ;;  %v8085_v7 = vld [vmem:[#allocation2] ss:$0 sm:$0xff] }
0x22c7   :  { %8319 = vmatpush3.msra.mxu1 %v7617_v49 }
0x22c8   :  { %8320 = vmatprep.subr.mxu1 %v7632_v42 }
0x22c9   :  { %8321 = vmatpush3.msra.mxu1 %v7616_v36 }
0x22ca   :  { %8322 = vmatprep.subr.mxu1 %v7631_v20 }
0x22cb   :  { %8323 = vmatpush3.msra.mxu1 %v7615_v60 }
0x22cc   :  { %8324 = vmatprep.subr.mxu1 %v7630_v24 }
0x22cd   :  { %8325 = vmatpush3.msra.mxu1 %v7614_v51 }
0x22ce   :  { %8326 = vmatprep.subr.mxu1 %v7629_v34 }
0x22cf   :  { %8327 = vmatpush3.msra.mxu1 %v7613_v16 }
0x22d0   :  { %8328 = vmatprep.subr.mxu1 %v7628_v10 }
0x22d1   :  { %8329 = vmatpush3.msra.mxu1 %v7612_v12 }
0x22d2   :  { %8330 = vmatprep.subr.mxu1 %v7627_v35 }
0x22d3   :  { %8331 = vmatpush3.msra.mxu1 %v7611_v6 }
0x22d4   :  { %8332 = vmatprep.subr.mxu1 %v7626_v56 }
0x22d5   :  { %8333 = vmatpush3.msra.mxu1 %v7610_v14 }
0x22d6   :  { %8334 = vmatprep.subr.mxu1 %v7625_v27 }
0x22d7   :  { %8335 = vmatpush3.msra.mxu1 %v7609_v47 }
0x22d8   :  { %8336 = vmatprep.subr.mxu1 %v7624_v45 }
0x22d9   :  { %8337 = vmatpush3.msra.mxu1 %v7608_v39 }
0x22da   :  { %8338 = vmatprep.subr.mxu1 %v7623_v0 }
0x22db   :  { %8339 = vmatpush3.msra.mxu1 %v7607_v55 }
0x22dc   :  { %8340 = vmatprep.subr.mxu1 %v7622_v61 }
0x22dd   :  { %8341 = vmatpush3.msra.mxu1 %v7606_v44 }
0x22de   :  { %8342 = vmatprep.subr.mxu1 %v7621_v53 }
0x22df   :  { %8343 = vmatpush3.msra.mxu1 %v7605_v54 }
0x22e0   :  { %8344 = vmatprep.subr.mxu1 %v7620_v9 }
0x22e1   :  { %8345 = vmatpush3.msra.mxu1 %v7604_v5 }
0x22e2   :  { %8346 = vmatprep.subr.mxu1 %v7619_v23 }
0x22e3   :  { %8347 = vmatpush3.msra.mxu1 %v7603_v63 }
0x2384   :  { %v7596_v31 = vpop.f32.mrf.mxu1 }
0x2385   :  { %v7597_v52 = vadd.f32 %v7596_v31, %v7520_v22 }
0x2386   :  { %v7598_v4 = vpop.f32.mrf.mxu1 }
0x2387   :  { %v7599_v3 = vadd.f32 %v7598_v4, %v7524_v43  ;;  %v7601_v50 = vmax.f32 %v7597_v52, 0.0 }
0x2389   :  { %v7602_v25 = vmax.f32 %v7599_v3, 0.0 }
0x238b   :  { %7706 = vmatprep.mubr.f32.mxu1 %v7602_v25 }
0x238c   :  { %7707 = vmatmul.mubr.f32.vlgmr.msra.gmra.mxu1 %v7601_v50 }
0x244c   :  { %v8348_v19 = vpop.f32.mrf.mxu1 }
0x244e   :  { %v8349_v15 = vpop.f32.mrf.mxu1 }
0x244f   :  { %v8350_v38 = vadd.f32 %v8349_v15, %v8348_v19 }
0x2451   :  { %v7709_v29 = vadd.f32 %v8350_v38, %v8082_v18 }
0x2453   :  { %v7712_v37 = vmax.f32 %v7709_v29, 0.0 }
0x2455   :  { %8890 = vmatmul.mubr.msk.f32.vlgmr.msra.gmra.mxu0 %vm3748_vm13, %v7712_v37 }
0x2456   :  { %8893 = vmatpush3.msra.mxu0 %v7805_v41  ;;  %8900 = vmatprep.mubr.msk.f32.mxu0 %vm9303_vm1, %v9300_v17  ;;  %vm7886_vm1 = vcmask 1024  }
0x2457   :  { %8894 = vmatprep.subr.mxu0 %v9300_v17 }
0x2458   :  { %8895 = vmatpush3.msra.mxu0 %v7804_v13 }
0x2459   :  { %8896 = vmatprep.subr.mxu0 %v9300_v17 }
0x245a   :  { %8897 = vmatpush3.msra.mxu0 %v7803_v26 }
0x245b   :  { %8898 = vmatprep.subr.mxu0 %v9300_v17 }
0x245c   :  { %8899 = vmatpush3.msra.mxu0 %v7802_v62 }
0x2515   :  { %v7797_v8 = vpop.f32.mrf.mxu0 }
0x2516   :  { %v7798_v30 = vadd.f32 %v8083_v40, %v7797_v8 }
0x2517   :  { %v8891_v32 = vpop.f32.mrf.mxu0 }
0x2518   :  { %v7801_v58 = vmax.f32 %v7798_v30, 0.0 }
0x251a   :  { %8901 = vmatmul.mubr.msk.f32.vlgmr.msra.gmra.mxu0 %vm221_vm0, %v7801_v58 }
0x25da   :  { %v7882_v49 = vpop.f32.mrf.mxu0 }
0x25db   :  { %v7883_v28 = vadd.f32 %v8085_v7, %v7882_v49 }
0x25dc   :  { %v8902_v42 = vpop.f32.mrf.mxu0 }
0x25dd   :  { %7887 = vst.msk [vmem:[%s10992_s26] sm:$0x3] %vm7886_vm1, %v7883_v28 }
0x25de   :  { %7892 = vsyncpa [#allocation4], 1 }
0x25df   :  { %7893 = vsyncpa [#allocation6], 1 }
0x25e0   :  { %7894 = vsyncpa [#allocation9], 1 }
0x25e1   :  { %7895 = vsyncpa [#allocation12], 1 }
0x25e2   :  { %7896 = vsyncpa [#allocation15], 1 }

</bundles_post_ra>
